<compile_context>
chip_gen: v7x
topology: tpu7x:2x2x1
jax: 0.10.0
libtpu: 0.0.40
codegen_flags: <defaults>
</compile_context>

<pallas_src>
import functools

import jax
import jax.numpy as jnp
from jax.experimental import pallas as pl
from jax.experimental.pallas import tpu as pltpu


_VMEM_LIMIT = 48 * 1024 * 1024     # safe on v5e/v6e (128 MiB) and v7x (64 MiB)
_TM_MAX = 2048                     # row-tile cap (v7x-safe, good for v5e/v6e)


# ----------------------------------------------------------------------------
# Pallas kernels
# ----------------------------------------------------------------------------
def _mm_bias_act_kernel(x_ref, w_ref, b_ref, o_ref, *, act):
    """One row-tile step: act(x @ w + b), bf16 inputs, f32 accumulate."""
    acc = jnp.dot(x_ref[...], w_ref[...], preferred_element_type=jnp.float32)
    acc = acc + b_ref[...]                               # (1, N) broadcasts
    if act == "relu":
        acc = jnp.maximum(acc, 0.0)
    elif act == "sigmoid":
        # Exact sigmoid via the EUP tanh unit (no VPU divide); range [0, 1].
        acc = 0.5 * (jnp.tanh(0.5 * acc) + 1.0)
    o_ref[...] = acc.astype(o_ref.dtype)


def _bottleneck_kernel(x_ref, w3_ref, b3_ref, w4_ref, b4_ref, o_ref):
    """Fused encoder conv3 + decoder convT1 (both FC at 1x1 spatial):
         h = x @ W3 + b3         (no activation, matching the Sequential)
         y = relu(h @ W4 + b4)   -> bf16
    The (bm, 64) bottleneck stays in VMEM/vregs and never round-trips HBM."""
    h = jnp.dot(x_ref[...], w3_ref[...], preferred_element_type=jnp.float32)
    h = (h + b3_ref[...]).astype(w4_ref.dtype)
    y = jnp.dot(h, w4_ref[...], preferred_element_type=jnp.float32)
    y = jnp.maximum(y + b4_ref[...], 0.0)
    o_ref[...] = y.astype(o_ref.dtype)


# ----------------------------------------------------------------------------
# pallas_call wrappers
# ----------------------------------------------------------------------------
def _pick_block_m(M, tm_max=_TM_MAX):
    """8-aligned row tile giving >= 2 grid steps whenever M >= 16 (keeps both
    v7x TensorCores busy via the 'parallel' axis), capped at tm_max rows."""
    if M < 16:
        return M                                    # single full block
    return min(tm_max, 8 * pl.cdiv(pl.cdiv(M, 2), 8))


def _compiler_params():
    return pltpu.CompilerParams(
        dimension_semantics=("parallel",),
        vmem_limit_bytes=_VMEM_LIMIT,
    )


def matmul_bias_act(x, w, b, act, out_dtype):
    """act(x @ w + b): x (M, K), w (K, N) bf16, b (1, N) f32 -> (M, N)."""
    M, K = x.shape
    N = w.shape[1]
    bm = _pick_block_m(M)
    return pl.pallas_call(
        functools.partial(_mm_bias_act_kernel, act=act),
        out_shape=jax.ShapeDtypeStruct((M, N), out_dtype),
        grid=(pl.cdiv(M, bm),),
        in_specs=[
            pl.BlockSpec((bm, K), lambda i: (i, 0)),    # row tiles, pipelined
            pl.BlockSpec((K, N), lambda i: (0, 0)),     # weight resident
            pl.BlockSpec((1, N), lambda i: (0, 0)),     # bias resident
        ],
        out_specs=pl.BlockSpec((bm, N), lambda i: (i, 0)),
        compiler_params=_compiler_params(),
    )(x.astype(jnp.bfloat16), w, b)


def bottleneck(x, w3, b3, w4, b4):
    """Fused e3 + d1: (M, 1568) -> (M, 1568), both weights resident in VMEM."""
    M, K = x.shape
    H = w3.shape[1]
    N = w4.shape[1]
    bm = _pick_block_m(M)
    return pl.pallas_call(
        _bottleneck_kernel,
        out_shape=jax.ShapeDtypeStruct((M, N), jnp.bfloat16),
        grid=(pl.cdiv(M, bm),),
        in_specs=[
            pl.BlockSpec((bm, K), lambda i: (i, 0)),
            pl.BlockSpec((K, H), lambda i: (0, 0)),
            pl.BlockSpec((1, H), lambda i: (0, 0)),
            pl.BlockSpec((H, N), lambda i: (0, 0)),
            pl.BlockSpec((1, N), lambda i: (0, 0)),
        ],
        out_specs=pl.BlockSpec((bm, N), lambda i: (i, 0)),
        compiler_params=_compiler_params(),
    )(x.astype(jnp.bfloat16), w3, b3, w4, b4)


# ----------------------------------------------------------------------------
# Thin XLA glue (all O(activation bytes))
# ----------------------------------------------------------------------------
def _im2col_nhwc(x, k, stride, padding):
    """(B,H,W,C) -> patches (B*OH*OW, k*k*C) with K-order (kh, kw, C)."""
    B, H, W, C = x.shape
    xp = jnp.pad(x, ((0, 0), (padding, padding), (padding, padding), (0, 0)))
    OH = (H + 2 * padding - k) // stride + 1
    OW = (W + 2 * padding - k) // stride + 1
    cols = [xp[:, i:i + stride * OH:stride, j:j + stride * OW:stride, :]
            for i in range(k) for j in range(k)]
    return jnp.concatenate(cols, axis=-1).reshape(B * OH * OW, k * k * C), OH, OW


def _subpixel_patches(x):
    """2x2-window patches for the sub-pixel ConvTranspose.
    x: (B, I, I, C) -> (B*I*I, 4*C); taps (a, b) in {0,1}^2 read x zero-padded
    by one row/col at the bottom/right."""
    B, I, _, C = x.shape
    xp = jnp.pad(x, ((0, 0), (0, 1), (0, 1), (0, 0)))
    cols = [xp[:, a:a + I, b:b + I, :] for a in range(2) for b in range(2)]
    return jnp.concatenate(cols, axis=-1).reshape(B * I * I, 4 * C)


def _interleave_phases(y, B, I, C):
    """(B*I*I, 4*C) phase-major matmul output -> (B, 2I, 2I, C) NHWC."""
    y = y.reshape(B, I, I, 2, 2, C).transpose(0, 1, 3, 2, 4, 5)
    return y.reshape(B, 2 * I, 2 * I, C)


# ----------------------------------------------------------------------------
# One-time parameter preparation (hoisted out of the forward)
# ----------------------------------------------------------------------------
def _conv_w_mat(w):
    """PyTorch Conv2d weight (Cout, Cin, k, k) -> (k*k*Cin, Cout) matching the
    (kh, kw, C) patch K-order."""
    Cout, Cin, k, _ = w.shape
    return w.transpose(2, 3, 1, 0).reshape(k * k * Cin, Cout)


def _convT_subpixel_w_mat(w_t):
    """ConvTranspose2d weight (Cin, Cout, 3, 3), stride=2, pad=1, out_pad=1 ->
    combined sub-pixel weight (4*Cin, 4*Cout).

    Row block (a, b): 2x2-window tap x[my+a, mx+b]; column block (ry, rx):
    output phase out[2my+ry, 2mx+rx].  Tap (a, b) feeds phase (ry, rx) through
    kernel element (dy, dx) = (ry - 2a + 1, rx - 2b + 1) when it lies in [0, 3).
    """
    Cin, Cout, k, _ = w_t.shape
    rows = []
    for a in range(2):
        for b in range(2):
            cols = []
            for ry in range(2):
                for rx in range(2):
                    dy, dx = ry - 2 * a + 1, rx - 2 * b + 1
                    if 0 <= dy < k and 0 <= dx < k:
                        cols.append(w_t[:, :, dy, dx])
                    else:
                        cols.append(jnp.zeros((Cin, Cout), w_t.dtype))
            rows.append(jnp.concatenate(cols, axis=1))
    return jnp.concatenate(rows, axis=0)


def prepare_params(raw):
    """Weights -> bf16 matmul form, biases -> (1, N) f32.  Called once."""
    f32row = lambda v: v.reshape(1, -1).astype(jnp.float32)
    bf16 = lambda m: m.astype(jnp.bfloat16)
    return {
        "e1_w": bf16(_conv_w_mat(raw["e1_w"])), "e1_b": f32row(raw["e1_b"]),
        "e2_w": bf16(_conv_w_mat(raw["e2_w"])), "e2_b": f32row(raw["e2_b"]),
        # e3: 7x7 valid conv on a 7x7 map == FC on the flattened NHWC tensor.
        "e3_w": bf16(_conv_w_mat(raw["e3_w"])), "e3_b": f32row(raw["e3_b"]),
        # d1: ConvTranspose2d(64, 32, 7) on a 1x1 map == FC 64 -> 7*7*32 (NHWC).
        "d1_w": bf16(raw["d1_w"].transpose(0, 2, 3, 1).reshape(64, 7 * 7 * 32)),
        "d1_b": f32row(jnp.tile(raw["d1_b"], 7 * 7)),
        # d2/d3: stride-2 ConvTranspose as one sub-pixel matmul each.
        "d2_w": bf16(_convT_subpixel_w_mat(raw["d2_w"])),
        "d2_b": f32row(jnp.tile(raw["d2_b"], 4)),
        "d3_w": bf16(_convT_subpixel_w_mat(raw["d3_w"])),
        "d3_b": f32row(jnp.tile(raw["d3_b"], 4)),
    }


# ----------------------------------------------------------------------------
# Forward pass (matches DenoisingAutoEncoder.forward)
# ----------------------------------------------------------------------------
def dae_forward(params, x):
    """x: (B, 1, 28, 28) f32 NCHW -> (B, 1, 28, 28) f32 in [0, 1]."""
    B = x.shape[0]
    h = x.transpose(0, 2, 3, 1).astype(jnp.bfloat16)          # NCHW -> NHWC

    # Encoder ------------------------------------------------------------
    pch, _, _ = _im2col_nhwc(h, 3, 2, 1)                      # (B*196, 9)
    h = matmul_bias_act(pch, params["e1_w"], params["e1_b"], "relu",
                        jnp.bfloat16).reshape(B, 14, 14, 16)  # 28 -> 14
    pch, _, _ = _im2col_nhwc(h, 3, 2, 1)                      # (B*49, 144)
    h = matmul_bias_act(pch, params["e2_w"], params["e2_b"], "relu",
                        jnp.bfloat16)                         # 14 -> 7
    h = h.reshape(B, 7 * 7 * 32)                              # free NHWC flatten

    # Bottleneck: e3 + d1 fused in one kernel ------------------------------
    h = bottleneck(h, params["e3_w"], params["e3_b"],
                   params["d1_w"], params["d1_b"])            # 7 -> 1 -> 7
    h = h.reshape(B, 7, 7, 32)

    # Decoder (stride-2 ConvTranspose via sub-pixel matmuls) ---------------
    h = matmul_bias_act(_subpixel_patches(h), params["d2_w"], params["d2_b"],
                        "relu", jnp.bfloat16)                 # (B*49, 64)
    h = _interleave_phases(h, B, 7, 16)                       # 7 -> 14
    y = matmul_bias_act(_subpixel_patches(h), params["d3_w"], params["d3_b"],
                        "sigmoid", jnp.float32)               # (B*196, 4)
    y = _interleave_phases(y, B, 14, 1)                       # 14 -> 28
    return y.transpose(0, 3, 1, 2)                            # NHWC -> NCHW


# ----------------------------------------------------------------------------
# Parameter init (deterministic, PyTorch-default-like uniform)
# ----------------------------------------------------------------------------
def _init_conv(key, cout, cin, k):
    kw, kb = jax.random.split(key)
    bound = 1.0 / (cin * k * k) ** 0.5
    w = jax.random.uniform(kw, (cout, cin, k, k), jnp.float32, -bound, bound)
    b = jax.random.uniform(kb, (cout,), jnp.float32, -bound, bound)
    return w, b


def _init_convT(key, cin, cout, k):
    kw, kb = jax.random.split(key)
    bound = 1.0 / (cin * k * k) ** 0.5
    w = jax.random.uniform(kw, (cin, cout, k, k), jnp.float32, -bound, bound)
    b = jax.random.uniform(kb, (cout,), jnp.float32, -bound, bound)
    return w, b


def init_raw_params(key):
    ks = jax.random.split(key, 6)
    raw = {}
    raw["e1_w"], raw["e1_b"] = _init_conv(ks[0], 16, 1, 3)
    raw["e2_w"], raw["e2_b"] = _init_conv(ks[1], 32, 16, 3)
    raw["e3_w"], raw["e3_b"] = _init_conv(ks[2], 64, 32, 7)
    raw["d1_w"], raw["d1_b"] = _init_convT(ks[3], 64, 32, 7)
    raw["d2_w"], raw["d2_b"] = _init_convT(ks[4], 32, 16, 3)
    raw["d3_w"], raw["d3_b"] = _init_convT(ks[5], 16, 1, 3)
    return raw


# ----------------------------------------------------------------------------
# Pure-JAX f32 reference (mirrors the PyTorch module layer by layer)
# ----------------------------------------------------------------------------
def _conv2d_ref(x, w, b, stride, padding):
    y = jax.lax.conv_general_dilated(
        x, w, window_strides=(stride, stride),
        padding=[(padding, padding)] * 2,
        dimension_numbers=("NCHW", "OIHW", "NCHW"),
        precision=jax.lax.Precision.HIGHEST)
    return y + b.reshape(1, -1, 1, 1)


def _convT2d_ref(x, w_t, b, stride, padding, output_padding):
    k = w_t.shape[2]
    w_conv = jnp.flip(w_t, axis=(2, 3)).transpose(1, 0, 2, 3)
    lo, hi = k - 1 - padding, k - 1 - padding + output_padding
    y = jax.lax.conv_general_dilated(
        x, w_conv, window_strides=(1, 1), padding=[(lo, hi)] * 2,
        lhs_dilation=(stride, stride),
        dimension_numbers=("NCHW", "OIHW", "NCHW"),
        precision=jax.lax.Precision.HIGHEST)
    return y + b.reshape(1, -1, 1, 1)


def dae_reference(raw, x):
    h = jax.nn.relu(_conv2d_ref(x, raw["e1_w"], raw["e1_b"], 2, 1))
    h = jax.nn.relu(_conv2d_ref(h, raw["e2_w"], raw["e2_b"], 2, 1))
    h = _conv2d_ref(h, raw["e3_w"], raw["e3_b"], 1, 0)
    h = jax.nn.relu(_convT2d_ref(h, raw["d1_w"], raw["d1_b"], 1, 0, 0))
    h = jax.nn.relu(_convT2d_ref(h, raw["d2_w"], raw["d2_b"], 2, 1, 1))
    return jax.nn.sigmoid(_convT2d_ref(h, raw["d3_w"], raw["d3_b"], 2, 1, 1))


if __name__ == "__main__":
    key = jax.random.PRNGKey(0)
    k_param, k_data = jax.random.split(key)
    raw = init_raw_params(k_param)
    params = prepare_params(raw)          # one-time weight prep (hoisted)

    # Architecture implies 28x28 single-channel inputs (28 -> 14 -> 7 -> 1).
    x = jax.random.normal(k_data, (2, 1, 28, 28), jnp.float32)

    y = jax.block_until_ready(jax.jit(dae_forward)(params, x))

    assert y.shape == (2, 1, 28, 28), y.shape
    assert y.dtype == jnp.float32
    assert bool(jnp.all((y >= 0.0) & (y <= 1.0)))      # sigmoid output range
    assert bool(jnp.all(jnp.isfinite(y)))

    # Validate the bf16 kernel path against the f32 reference (loose tol).
    y_ref = jax.block_until_ready(jax.jit(dae_reference)(raw, x))
    err = float(jnp.max(jnp.abs(y - y_ref)))
    assert err < 5e-2, f"max |pallas - reference| = {err}"

    print("KERNEL_OK")
</pallas_src>

<mosaic_0001>
module attributes {stable_mosaic.version = 11 : i64} {
  func.func @_mm_bias_act_kernel(%arg0: i32, %arg1: memref<200x9xbf16, #tpu.memory_space<vmem>>, %arg2: memref<9x16xbf16, #tpu.memory_space<vmem>>, %arg3: memref<1x16xf32, #tpu.memory_space<vmem>>, %arg4: memref<200x16xbf16, #tpu.memory_space<vmem>>) attributes {dimension_semantics = [#tpu.dimension_semantics<parallel>], iteration_bounds = array<i64: 2>, scalar_prefetch = 0 : i64, scratch_operands = 0 : i64, tpu.core_type = #tpu.core_type<tc>, window_params = [{transform_indices = @transform_0, window_bounds = array<i64: 200, 9>}, {pipeline_mode = #tpu.pipeline_mode<synchronous>, transform_indices = @transform_1, window_bounds = array<i64: 9, 16>}, {pipeline_mode = #tpu.pipeline_mode<synchronous>, transform_indices = @transform_2, window_bounds = array<i64: 1, 16>}, {transform_indices = @transform_3, window_bounds = array<i64: 200, 16>}]} {
    %c0 = arith.constant 0 : index
    %c0_0 = arith.constant 0 : index
    %0 = vector.load %arg1[%c0, %c0_0] : memref<200x9xbf16, #tpu.memory_space<vmem>>, vector<200x9xbf16>
    %c0_1 = arith.constant 0 : index
    %c0_2 = arith.constant 0 : index
    %1 = vector.load %arg2[%c0_1, %c0_2] : memref<9x16xbf16, #tpu.memory_space<vmem>>, vector<9x16xbf16>
    %cst = arith.constant dense<0.000000e+00> : vector<200x16xf32>
    %2 = tpu.matmul %0, %1, %cst {dimension_numbers = #tpu.dot_dimension_numbers<[1], [0], [0], [1], [0, 0, 1, 1], [], []>} : vector<200x9xbf16>, vector<9x16xbf16>, vector<200x16xf32> -> vector<200x16xf32>
    %c0_3 = arith.constant 0 : index
    %c0_4 = arith.constant 0 : index
    %3 = vector.load %arg3[%c0_3, %c0_4] : memref<1x16xf32, #tpu.memory_space<vmem>>, vector<1x16xf32>
    %4 = vector.broadcast %3 : vector<1x16xf32> to vector<200x16xf32>
    %5 = arith.addf %2, %4 : vector<200x16xf32>
    %cst_5 = arith.constant 0.000000e+00 : f32
    %6 = vector.broadcast %cst_5 : f32 to vector<200x16xf32>
    %7 = arith.maximumf %5, %6 : vector<200x16xf32>
    %8 = arith.truncf %7 : vector<200x16xf32> to vector<200x16xbf16>
    %c0_6 = arith.constant 0 : index
    %c0_7 = arith.constant 0 : index
    %9 = vector.load %arg4[%c0_6, %c0_7] : memref<200x16xbf16, #tpu.memory_space<vmem>>, vector<200x16xbf16>
    tpu.vector_store %arg4[%c0_6, %c0_7], %8 {strides = array<i32>} : memref<200x16xbf16, #tpu.memory_space<vmem>>, vector<200x16xbf16>,
    return
  }
  func.func @transform_0(%arg0: i32) -> (i32, i32) {
    %c0_i32 = arith.constant 0 : i32
    %c0_i32_0 = arith.constant 0 : i32
    return %arg0, %c0_i32 : i32, i32
  }
  func.func @transform_1(%arg0: i32) -> (i32, i32) {
    %c0_i32 = arith.constant 0 : i32
    %c0_i32_0 = arith.constant 0 : i32
    %c0_i32_1 = arith.constant 0 : i32
    return %c0_i32, %c0_i32_0 : i32, i32
  }
  func.func @transform_2(%arg0: i32) -> (i32, i32) {
    %c0_i32 = arith.constant 0 : i32
    %c0_i32_0 = arith.constant 0 : i32
    %c0_i32_1 = arith.constant 0 : i32
    return %c0_i32, %c0_i32_0 : i32, i32
  }
  func.func @transform_3(%arg0: i32) -> (i32, i32) {
    %c0_i32 = arith.constant 0 : i32
    %c0_i32_0 = arith.constant 0 : i32
    return %arg0, %c0_i32 : i32, i32
  }
}

module attributes {stable_mosaic.version = 11 : i64} {
  func.func @_mm_bias_act_kernel(%arg0: i32, %arg1: memref<56x144xbf16, #tpu.memory_space<vmem>>, %arg2: memref<144x32xbf16, #tpu.memory_space<vmem>>, %arg3: memref<1x32xf32, #tpu.memory_space<vmem>>, %arg4: memref<56x32xbf16, #tpu.memory_space<vmem>>) attributes {dimension_semantics = [#tpu.dimension_semantics<parallel>], iteration_bounds = array<i64: 2>, scalar_prefetch = 0 : i64, scratch_operands = 0 : i64, tpu.core_type = #tpu.core_type<tc>, window_params = [{transform_indices = @transform_0, window_bounds = array<i64: 56, 144>}, {pipeline_mode = #tpu.pipeline_mode<synchronous>, transform_indices = @transform_1, window_bounds = array<i64: 144, 32>}, {pipeline_mode = #tpu.pipeline_mode<synchronous>, transform_indices = @transform_2, window_bounds = array<i64: 1, 32>}, {transform_indices = @transform_3, window_bounds = array<i64: 56, 32>}]} {
    %c0 = arith.constant 0 : index
    %c0_0 = arith.constant 0 : index
    %0 = vector.load %arg1[%c0, %c0_0] : memref<56x144xbf16, #tpu.memory_space<vmem>>, vector<56x144xbf16>
    %c0_1 = arith.constant 0 : index
    %c0_2 = arith.constant 0 : index
    %1 = vector.load %arg2[%c0_1, %c0_2] : memref<144x32xbf16, #tpu.memory_space<vmem>>, vector<144x32xbf16>
    %cst = arith.constant dense<0.000000e+00> : vector<56x32xf32>
    %2 = tpu.matmul %0, %1, %cst {dimension_numbers = #tpu.dot_dimension_numbers<[1], [0], [0], [1], [0, 0, 1, 1], [], []>} : vector<56x144xbf16>, vector<144x32xbf16>, vector<56x32xf32> -> vector<56x32xf32>
    %c0_3 = arith.constant 0 : index
    %c0_4 = arith.constant 0 : index
    %3 = vector.load %arg3[%c0_3, %c0_4] : memref<1x32xf32, #tpu.memory_space<vmem>>, vector<1x32xf32>
    %4 = vector.broadcast %3 : vector<1x32xf32> to vector<56x32xf32>
    %5 = arith.addf %2, %4 : vector<56x32xf32>
    %cst_5 = arith.constant 0.000000e+00 : f32
    %6 = vector.broadcast %cst_5 : f32 to vector<56x32xf32>
    %7 = arith.maximumf %5, %6 : vector<56x32xf32>
    %8 = arith.truncf %7 : vector<56x32xf32> to vector<56x32xbf16>
    %c0_6 = arith.constant 0 : index
    %c0_7 = arith.constant 0 : index
    %9 = vector.load %arg4[%c0_6, %c0_7] : memref<56x32xbf16, #tpu.memory_space<vmem>>, vector<56x32xbf16>
    tpu.vector_store %arg4[%c0_6, %c0_7], %8 {strides = array<i32>} : memref<56x32xbf16, #tpu.memory_space<vmem>>, vector<56x32xbf16>,
    return
  }
  func.func @transform_0(%arg0: i32) -> (i32, i32) {
    %c0_i32 = arith.constant 0 : i32
    %c0_i32_0 = arith.constant 0 : i32
    return %arg0, %c0_i32 : i32, i32
  }
  func.func @transform_1(%arg0: i32) -> (i32, i32) {
    %c0_i32 = arith.constant 0 : i32
    %c0_i32_0 = arith.constant 0 : i32
    %c0_i32_1 = arith.constant 0 : i32
    return %c0_i32, %c0_i32_0 : i32, i32
  }
  func.func @transform_2(%arg0: i32) -> (i32, i32) {
    %c0_i32 = arith.constant 0 : i32
    %c0_i32_0 = arith.constant 0 : i32
    %c0_i32_1 = arith.constant 0 : i32
    return %c0_i32, %c0_i32_0 : i32, i32
  }
  func.func @transform_3(%arg0: i32) -> (i32, i32) {
    %c0_i32 = arith.constant 0 : i32
    %c0_i32_0 = arith.constant 0 : i32
    return %arg0, %c0_i32 : i32, i32
  }
}

module attributes {stable_mosaic.version = 11 : i64} {
  func.func @_bottleneck_kernel(%arg0: i32, %arg1: memref<2x1568xbf16, #tpu.memory_space<vmem>>, %arg2: memref<1568x64xbf16, #tpu.memory_space<vmem>>, %arg3: memref<1x64xf32, #tpu.memory_space<vmem>>, %arg4: memref<64x1568xbf16, #tpu.memory_space<vmem>>, %arg5: memref<1x1568xf32, #tpu.memory_space<vmem>>, %arg6: memref<2x1568xbf16, #tpu.memory_space<vmem>>) attributes {dimension_semantics = [#tpu.dimension_semantics<parallel>], iteration_bounds = array<i64: 1>, scalar_prefetch = 0 : i64, scratch_operands = 0 : i64, tpu.core_type = #tpu.core_type<tc>, window_params = [{transform_indices = @transform_0, window_bounds = array<i64: 2, 1568>}, {pipeline_mode = #tpu.pipeline_mode<synchronous>, transform_indices = @transform_1, window_bounds = array<i64: 1568, 64>}, {pipeline_mode = #tpu.pipeline_mode<synchronous>, transform_indices = @transform_2, window_bounds = array<i64: 1, 64>}, {pipeline_mode = #tpu.pipeline_mode<synchronous>, transform_indices = @transform_3, window_bounds = array<i64: 64, 1568>}, {pipeline_mode = #tpu.pipeline_mode<synchronous>, transform_indices = @transform_4, window_bounds = array<i64: 1, 1568>}, {transform_indices = @transform_5, window_bounds = array<i64: 2, 1568>}]} {
    %c0 = arith.constant 0 : index
    %c0_0 = arith.constant 0 : index
    %0 = vector.load %arg1[%c0, %c0_0] : memref<2x1568xbf16, #tpu.memory_space<vmem>>, vector<2x1568xbf16>
    %c0_1 = arith.constant 0 : index
    %c0_2 = arith.constant 0 : index
    %1 = vector.load %arg2[%c0_1, %c0_2] : memref<1568x64xbf16, #tpu.memory_space<vmem>>, vector<1568x64xbf16>
    %cst = arith.constant dense<0.000000e+00> : vector<2x64xf32>
    %2 = tpu.matmul %0, %1, %cst {dimension_numbers = #tpu.dot_dimension_numbers<[1], [0], [0], [1], [0, 0, 1, 1], [], []>} : vector<2x1568xbf16>, vector<1568x64xbf16>, vector<2x64xf32> -> vector<2x64xf32>
    %c0_3 = arith.constant 0 : index
    %c0_4 = arith.constant 0 : index
    %3 = vector.load %arg3[%c0_3, %c0_4] : memref<1x64xf32, #tpu.memory_space<vmem>>, vector<1x64xf32>
    %4 = vector.broadcast %3 : vector<1x64xf32> to vector<2x64xf32>
    %5 = arith.addf %2, %4 : vector<2x64xf32>
    %6 = arith.truncf %5 : vector<2x64xf32> to vector<2x64xbf16>
    %c0_5 = arith.constant 0 : index
    %c0_6 = arith.constant 0 : index
    %7 = vector.load %arg4[%c0_5, %c0_6] : memref<64x1568xbf16, #tpu.memory_space<vmem>>, vector<64x1568xbf16>
    %cst_7 = arith.constant dense<0.000000e+00> : vector<2x1568xf32>
    %8 = tpu.matmul %6, %7, %cst_7 {dimension_numbers = #tpu.dot_dimension_numbers<[1], [0], [0], [1], [0, 0, 1, 1], [], []>} : vector<2x64xbf16>, vector<64x1568xbf16>, vector<2x1568xf32> -> vector<2x1568xf32>
    %c0_8 = arith.constant 0 : index
    %c0_9 = arith.constant 0 : index
    %9 = vector.load %arg5[%c0_8, %c0_9] : memref<1x1568xf32, #tpu.memory_space<vmem>>, vector<1x1568xf32>
    %10 = vector.broadcast %9 : vector<1x1568xf32> to vector<2x1568xf32>
    %11 = arith.addf %8, %10 : vector<2x1568xf32>
    %cst_10 = arith.constant 0.000000e+00 : f32
    %12 = vector.broadcast %cst_10 : f32 to vector<2x1568xf32>
    %13 = arith.maximumf %11, %12 : vector<2x1568xf32>
    %14 = arith.truncf %13 : vector<2x1568xf32> to vector<2x1568xbf16>
    %c0_11 = arith.constant 0 : index
    %c0_12 = arith.constant 0 : index
    %15 = vector.load %arg6[%c0_11, %c0_12] : memref<2x1568xbf16, #tpu.memory_space<vmem>>, vector<2x1568xbf16>
    tpu.vector_store %arg6[%c0_11, %c0_12], %14 {strides = array<i32>} : memref<2x1568xbf16, #tpu.memory_space<vmem>>, vector<2x1568xbf16>,
    return
  }
  func.func @transform_0(%arg0: i32) -> (i32, i32) {
    %c0_i32 = arith.constant 0 : i32
    %c0_i32_0 = arith.constant 0 : i32
    return %arg0, %c0_i32 : i32, i32
  }
  func.func @transform_1(%arg0: i32) -> (i32, i32) {
    %c0_i32 = arith.constant 0 : i32
    %c0_i32_0 = arith.constant 0 : i32
    %c0_i32_1 = arith.constant 0 : i32
    return %c0_i32, %c0_i32_0 : i32, i32
  }
  func.func @transform_2(%arg0: i32) -> (i32, i32) {
    %c0_i32 = arith.constant 0 : i32
    %c0_i32_0 = arith.constant 0 : i32
    %c0_i32_1 = arith.constant 0 : i32
    return %c0_i32, %c0_i32_0 : i32, i32
  }
  func.func @transform_3(%arg0: i32) -> (i32, i32) {
    %c0_i32 = arith.constant 0 : i32
    %c0_i32_0 = arith.constant 0 : i32
    %c0_i32_1 = arith.constant 0 : i32
    return %c0_i32, %c0_i32_0 : i32, i32
  }
  func.func @transform_4(%arg0: i32) -> (i32, i32) {
    %c0_i32 = arith.constant 0 : i32
    %c0_i32_0 = arith.constant 0 : i32
    %c0_i32_1 = arith.constant 0 : i32
    return %c0_i32, %c0_i32_0 : i32, i32
  }
  func.func @transform_5(%arg0: i32) -> (i32, i32) {
    %c0_i32 = arith.constant 0 : i32
    %c0_i32_0 = arith.constant 0 : i32
    return %arg0, %c0_i32 : i32, i32
  }
}

module attributes {stable_mosaic.version = 11 : i64} {
  func.func @_mm_bias_act_kernel(%arg0: i32, %arg1: memref<56x128xbf16, #tpu.memory_space<vmem>>, %arg2: memref<128x64xbf16, #tpu.memory_space<vmem>>, %arg3: memref<1x64xf32, #tpu.memory_space<vmem>>, %arg4: memref<56x64xbf16, #tpu.memory_space<vmem>>) attributes {dimension_semantics = [#tpu.dimension_semantics<parallel>], iteration_bounds = array<i64: 2>, scalar_prefetch = 0 : i64, scratch_operands = 0 : i64, tpu.core_type = #tpu.core_type<tc>, window_params = [{transform_indices = @transform_0, window_bounds = array<i64: 56, 128>}, {pipeline_mode = #tpu.pipeline_mode<synchronous>, transform_indices = @transform_1, window_bounds = array<i64: 128, 64>}, {pipeline_mode = #tpu.pipeline_mode<synchronous>, transform_indices = @transform_2, window_bounds = array<i64: 1, 64>}, {transform_indices = @transform_3, window_bounds = array<i64: 56, 64>}]} {
    %c0 = arith.constant 0 : index
    %c0_0 = arith.constant 0 : index
    %0 = vector.load %arg1[%c0, %c0_0] : memref<56x128xbf16, #tpu.memory_space<vmem>>, vector<56x128xbf16>
    %c0_1 = arith.constant 0 : index
    %c0_2 = arith.constant 0 : index
    %1 = vector.load %arg2[%c0_1, %c0_2] : memref<128x64xbf16, #tpu.memory_space<vmem>>, vector<128x64xbf16>
    %cst = arith.constant dense<0.000000e+00> : vector<56x64xf32>
    %2 = tpu.matmul %0, %1, %cst {dimension_numbers = #tpu.dot_dimension_numbers<[1], [0], [0], [1], [0, 0, 1, 1], [], []>} : vector<56x128xbf16>, vector<128x64xbf16>, vector<56x64xf32> -> vector<56x64xf32>
    %c0_3 = arith.constant 0 : index
    %c0_4 = arith.constant 0 : index
    %3 = vector.load %arg3[%c0_3, %c0_4] : memref<1x64xf32, #tpu.memory_space<vmem>>, vector<1x64xf32>
    %4 = vector.broadcast %3 : vector<1x64xf32> to vector<56x64xf32>
    %5 = arith.addf %2, %4 : vector<56x64xf32>
    %cst_5 = arith.constant 0.000000e+00 : f32
    %6 = vector.broadcast %cst_5 : f32 to vector<56x64xf32>
    %7 = arith.maximumf %5, %6 : vector<56x64xf32>
    %8 = arith.truncf %7 : vector<56x64xf32> to vector<56x64xbf16>
    %c0_6 = arith.constant 0 : index
    %c0_7 = arith.constant 0 : index
    %9 = vector.load %arg4[%c0_6, %c0_7] : memref<56x64xbf16, #tpu.memory_space<vmem>>, vector<56x64xbf16>
    tpu.vector_store %arg4[%c0_6, %c0_7], %8 {strides = array<i32>} : memref<56x64xbf16, #tpu.memory_space<vmem>>, vector<56x64xbf16>,
    return
  }
  func.func @transform_0(%arg0: i32) -> (i32, i32) {
    %c0_i32 = arith.constant 0 : i32
    %c0_i32_0 = arith.constant 0 : i32
    return %arg0, %c0_i32 : i32, i32
  }
  func.func @transform_1(%arg0: i32) -> (i32, i32) {
    %c0_i32 = arith.constant 0 : i32
    %c0_i32_0 = arith.constant 0 : i32
    %c0_i32_1 = arith.constant 0 : i32
    return %c0_i32, %c0_i32_0 : i32, i32
  }
  func.func @transform_2(%arg0: i32) -> (i32, i32) {
    %c0_i32 = arith.constant 0 : i32
    %c0_i32_0 = arith.constant 0 : i32
    %c0_i32_1 = arith.constant 0 : i32
    return %c0_i32, %c0_i32_0 : i32, i32
  }
  func.func @transform_3(%arg0: i32) -> (i32, i32) {
    %c0_i32 = arith.constant 0 : i32
    %c0_i32_0 = arith.constant 0 : i32
    return %arg0, %c0_i32 : i32, i32
  }
}

module attributes {stable_mosaic.version = 11 : i64} {
  func.func @_mm_bias_act_kernel(%arg0: i32, %arg1: memref<200x64xbf16, #tpu.memory_space<vmem>>, %arg2: memref<64x4xbf16, #tpu.memory_space<vmem>>, %arg3: memref<1x4xf32, #tpu.memory_space<vmem>>, %arg4: memref<200x4xf32, #tpu.memory_space<vmem>>) attributes {dimension_semantics = [#tpu.dimension_semantics<parallel>], iteration_bounds = array<i64: 2>, scalar_prefetch = 0 : i64, scratch_operands = 0 : i64, tpu.core_type = #tpu.core_type<tc>, window_params = [{transform_indices = @transform_0, window_bounds = array<i64: 200, 64>}, {pipeline_mode = #tpu.pipeline_mode<synchronous>, transform_indices = @transform_1, window_bounds = array<i64: 64, 4>}, {pipeline_mode = #tpu.pipeline_mode<synchronous>, transform_indices = @transform_2, window_bounds = array<i64: 1, 4>}, {transform_indices = @transform_3, window_bounds = array<i64: 200, 4>}]} {
    %c0 = arith.constant 0 : index
    %c0_0 = arith.constant 0 : index
    %0 = vector.load %arg1[%c0, %c0_0] : memref<200x64xbf16, #tpu.memory_space<vmem>>, vector<200x64xbf16>
    %c0_1 = arith.constant 0 : index
    %c0_2 = arith.constant 0 : index
    %1 = vector.load %arg2[%c0_1, %c0_2] : memref<64x4xbf16, #tpu.memory_space<vmem>>, vector<64x4xbf16>
    %cst = arith.constant dense<0.000000e+00> : vector<200x4xf32>
    %2 = tpu.matmul %0, %1, %cst {dimension_numbers = #tpu.dot_dimension_numbers<[1], [0], [0], [1], [0, 0, 1, 1], [], []>} : vector<200x64xbf16>, vector<64x4xbf16>, vector<200x4xf32> -> vector<200x4xf32>
    %c0_3 = arith.constant 0 : index
    %c0_4 = arith.constant 0 : index
    %3 = vector.load %arg3[%c0_3, %c0_4] : memref<1x4xf32, #tpu.memory_space<vmem>>, vector<1x4xf32>
    %4 = vector.broadcast %3 : vector<1x4xf32> to vector<200x4xf32>
    %5 = arith.addf %2, %4 : vector<200x4xf32>
    %cst_5 = arith.constant 5.000000e-01 : f32
    %6 = vector.broadcast %cst_5 : f32 to vector<200x4xf32>
    %7 = arith.mulf %6, %5 : vector<200x4xf32>
    %8 = math.tanh %7 : vector<200x4xf32>
    %cst_6 = arith.constant 1.000000e+00 : f32
    %9 = vector.broadcast %cst_6 : f32 to vector<200x4xf32>
    %10 = arith.addf %8, %9 : vector<200x4xf32>
    %cst_7 = arith.constant 5.000000e-01 : f32
    %11 = vector.broadcast %cst_7 : f32 to vector<200x4xf32>
    %12 = arith.mulf %11, %10 : vector<200x4xf32>
    %c0_8 = arith.constant 0 : index
    %c0_9 = arith.constant 0 : index
    %13 = vector.load %arg4[%c0_8, %c0_9] : memref<200x4xf32, #tpu.memory_space<vmem>>, vector<200x4xf32>
    tpu.vector_store %arg4[%c0_8, %c0_9], %12 {strides = array<i32>} : memref<200x4xf32, #tpu.memory_space<vmem>>, vector<200x4xf32>,
    return
  }
  func.func @transform_0(%arg0: i32) -> (i32, i32) {
    %c0_i32 = arith.constant 0 : i32
    %c0_i32_0 = arith.constant 0 : i32
    return %arg0, %c0_i32 : i32, i32
  }
  func.func @transform_1(%arg0: i32) -> (i32, i32) {
    %c0_i32 = arith.constant 0 : i32
    %c0_i32_0 = arith.constant 0 : i32
    %c0_i32_1 = arith.constant 0 : i32
    return %c0_i32, %c0_i32_0 : i32, i32
  }
  func.func @transform_2(%arg0: i32) -> (i32, i32) {
    %c0_i32 = arith.constant 0 : i32
    %c0_i32_0 = arith.constant 0 : i32
    %c0_i32_1 = arith.constant 0 : i32
    return %c0_i32, %c0_i32_0 : i32, i32
  }
  func.func @transform_3(%arg0: i32) -> (i32, i32) {
    %c0_i32 = arith.constant 0 : i32
    %c0_i32_0 = arith.constant 0 : i32
    return %arg0, %c0_i32 : i32, i32
  }
}

</mosaic_0001>

<bundles_post_ra>
// kernel: dae_forward.5
= control target key start
LH: loop header
LB: loop body
LE: loop exit
PB: predicated region body
PF: predicated region fallthrough
CT: control target
= control target key end

     0   :  { %s1330_s12 = smov 0   ;;  %s1332_s13 = smov 0   ;;  %s1610_s0 = inlined_call_operand.vmem [shape: bf16[392,9], index: 0, kind: input, shape index: {}]   ;;  %s1611_s1 = inlined_call_operand.vmem [shape: bf16[9,16], index: 1, kind: input, shape index: {}]   ;;  %s1612_s2 = inlined_call_operand.vmem [shape: f32[1,16], index: 2, kind: input, shape index: {}]   ;;  %s1613_s3 = inlined_call_operand.vmem [shape: bf16[392,16], index: 3, kind: output, shape index: {}]  }
   0x1   :  { %s1334_s14 = smov 0  }
   0x2 LB: > { %s1343_s15 = sadd.s32 4294967295, %s1273_s14   ;;  %s1345_s16 = sadd.s32 1, %s1273_s14   ;;  %s1273_s14 = sphi %s1334_s14, %s1620_s14   ;;  %s1269_s13 = sphi %s1332_s13, %s1619_s13   ;;  %s1265_s12 = sphi %s1330_s12, %s1618_s12  }
   0x3   : > { %s85_s17 = ssub.s32 %s1273_s14, %s1345_s16  ;;  %s88_s18 = sadd.s32 1, %s1269_s13 }
   0x4   : > { %p86_p0 = scmp.eq.s32.totalorder %s85_s17, 0  ;;  %p98_p1 = scmp.ne.s32.totalorder %s1269_s13, %s1265_s12 }
   0x5   : > { %p99_p2 = scmp.eq.s32.totalorder %s1343_s15, 1  ;;  %p945_p3 = scmp.ge.s32.totalorder %s1273_s14, 1 }
   0x6   : > { %s1353_s19 = scalar_select %p86_p0, %s1269_s13, %s88_s18  }
   0x7   : > { %p1355_p4 = por %p99_p2, %p98_p1  ;;  %p146_p5 = scmp.lt.s32.totalorder %s1273_s14, 3 }
   0x9   : > { %p147_p6 = pnand %p945_p3, %p146_p5 }
   0xa   : > { %vm335_vm0 = vcmask (!%p147_p6), 1043456   ;;  %v1307_v0 = vmov (!%p147_p6), 0.0   ;;  %v1201_v1 = vld [vmem:[%s1611_s1] sm:$0x1f] (!%p147_p6)   ;;  %vm336_vm1 = vcmask (!%p147_p6), 1044480   ;;  %s1363_s23 = smul.u32 (!%p147_p6), 25, %s1343_s15 }
   0xb   : > { %150 = sbr.rel (%p147_p6) target bundleno = 370 (0x172), region = 32  ;;  %1052 = vmatprep.subr.bf16.mxu0 (!%p147_p6), %v1307_v0  ;;  %1106 = vmatprep.subr.bf16.mxu1 (!%p147_p6), %v1307_v0  ;;  %v1308_v2 = vmov (!%p147_p6), 65535   ;;  %vm1309_vm2 = vmmov (!%p147_p6), 0   ;;  %vm295_vm3 = vcmask (!%p147_p6), 72704   ;;  %s170_s29 = sand.u32 (!%p147_p6), 1, %s1265_s12   ;;  %vm604_vm4 = vcmask (!%p147_p6), 125952  }
   0xc   : > { %v337_v3 = vsel (!%p147_p6), %vm335_vm0, 4294967295, %v1308_v2  ;;  %1054 = vmatprep.mubr.msk.bf16.mxu0 (!%p147_p6), %vm1309_vm2, %v1307_v0  ;;  %1082 = vmatprep.mubr.msk.bf16.mxu1 (!%p147_p6), %vm1309_vm2, %v1307_v0  ;;  %p178_p7 = scmp.lt.s32.totalorder (!%p147_p6), %s1363_s23, 48  ;;  %v1415_v19 = vld [vmem:[%s1612_s2] ss:$0 sm:$0xff] (!%p147_p6)  ;;  %s1108_s5 = smul.u32 (!%p147_p6), 100, %s170_s29 }
   0xd   : > { %v338_v4 = vsel (!%p147_p6), %vm336_vm1, %v337_v3, 0 }
   0xe   : > { %v340_v5 = vand.u32 (!%p147_p6), %v1201_v1, %v338_v4  ;;  %s1421_s6 = scalar_lea.vmem (!%p147_p6), [#allocation2], %s1108_s5  }
  0x10   : > { %1053 = vmatpush3.bf16.msra.mxu0 (!%p147_p6), %v340_v5  ;;  %1107 = vmatpush3.bf16.msra.mxu1 (!%p147_p6), %v340_v5 }
  0x12   : > { %s179_s24 = scalar_select %p178_p7, %s1363_s23, 48 }
  0x13   : > { %s638_s7 = ssub.s32 (%p1355_p4), 49, %s1363_s23  ;;  %s1037_s8 = smul.u32 (%p1355_p4), 100, %s1343_s15 }
  0x14   : > { %s946_s25 = sshll.u32 %s179_s24, 2  ;;  %p639_p8 = scmp.lt.s32.totalorder (%p1355_p4), %s638_s7, 25 }
  0x15   : > { %s1372_s28 = scalar_lea.vmem %s1610_s0, %s946_s25  ;;  %s1501_s11 = scalar_lea.vmem (%p1355_p4), %s1613_s3, %s1037_s8  }
  0x16   : > { %v1202_v6 = vld [vmem:[%s1372_s28] sm:$0xff]   ;;  %v1203_v7 = vld [vmem:[%s1372_s28 + $0x38] sm:$0xff]   ;;  %v1204_v8 = vld [vmem:[%s1372_s28 + $0x8] sm:$0xff]  }
  0x17   : > { %1055 = vmatmul.mubr.msk.bf16.vlgmr.msra.gmra.mrb[0].mxu0 %vm295_vm3, %v1202_v6  ;;  %1083 = vmatmul.mubr.msk.bf16.vlgmr.msra.gmra.mrb[0].mxu1 %vm295_vm3, %v1203_v7  ;;  %v1205_v9 = vld [vmem:[%s1372_s28 + $0x40] sm:$0xff]   ;;  %v1206_v10 = vld [vmem:[%s1372_s28 + $0x10] sm:$0xff]   ;;  %v1207_v11 = vld [vmem:[%s1372_s28 + $0x48] sm:$0xff]  }
  0x18   : > { %1058 = vmatprep.mubr.msk.bf16.mxu0 %vm1309_vm2, %v1307_v0  ;;  %1086 = vmatprep.mubr.msk.bf16.mxu1 %vm1309_vm2, %v1307_v0  ;;  %v1208_v12 = vld [vmem:[%s1372_s28 + $0x18] sm:$0xff]   ;;  %v1209_v13 = vld [vmem:[%s1372_s28 + $0x50] sm:$0xff]   ;;  %v1210_v14 = vld [vmem:[%s1372_s28 + $0x20] sm:$0xff]  }
  0x19   : > { %v1211_v15 = vld [vmem:[%s1372_s28 + $0x58] sm:$0xff]   ;;  %v1212_v16 = vld [vmem:[%s1372_s28 + $0x28] sm:$0xff]   ;;  %v1213_v17 = vld [vmem:[%s1372_s28 + $0x60] ss:$0 sps:$4 sm:$0xff]  }
  0x1a   : > { %v1214_v18 = vld [vmem:[%s1372_s28 + $0x30] sm:$0xff]  }
  0x1f   : > { %1059 = vmatmul.mubr.msk.bf16.gmra.mrb[4].mxu0 %vm295_vm3, %v1204_v8  ;;  %1087 = vmatmul.mubr.msk.bf16.gmra.mrb[4].mxu1 %vm295_vm3, %v1205_v9 }
  0x20   : > { %1062 = vmatprep.mubr.msk.bf16.mxu0 %vm1309_vm2, %v1307_v0  ;;  %1090 = vmatprep.mubr.msk.bf16.mxu1 %vm1309_vm2, %v1307_v0 }
  0x27   : > { %1063 = vmatmul.mubr.msk.bf16.gmra.mrb[8].mxu0 %vm295_vm3, %v1206_v10  ;;  %1091 = vmatmul.mubr.msk.bf16.gmra.mrb[8].mxu1 %vm295_vm3, %v1207_v11 }
  0x28   : > { %1066 = vmatprep.mubr.msk.bf16.mxu0 %vm1309_vm2, %v1307_v0  ;;  %1094 = vmatprep.mubr.msk.bf16.mxu1 %vm1309_vm2, %v1307_v0 }
  0x2f   : > { %1067 = vmatmul.mubr.msk.bf16.gmra.mrb[12].mxu0 %vm295_vm3, %v1208_v12  ;;  %1095 = vmatmul.mubr.msk.bf16.gmra.mrb[12].mxu1 %vm295_vm3, %v1209_v13 }
  0x30   : > { %1070 = vmatprep.mubr.msk.bf16.mxu0 %vm1309_vm2, %v1307_v0  ;;  %1098 = vmatprep.mubr.msk.bf16.mxu1 %vm1309_vm2, %v1307_v0 }
  0x37   : > { %1071 = vmatmul.mubr.msk.bf16.gmra.mrb[16].mxu0 %vm295_vm3, %v1210_v14  ;;  %1099 = vmatmul.mubr.msk.bf16.gmra.mrb[16].mxu1 %vm295_vm3, %v1211_v15 }
  0x38   : > { %1074 = vmatprep.mubr.msk.bf16.mxu0 %vm1309_vm2, %v1307_v0  ;;  %1102 = vmatprep.mubr.msk.bf16.mxu1 %vm1309_vm2, %v1307_v0 }
  0x3f   : > { %1075 = vmatmul.mubr.msk.bf16.gmra.mrb[20].mxu0 %vm295_vm3, %v1212_v16  ;;  %1103 = vmatmul.mubr.msk.bf16.gmra.mrb[20].mxu1 %vm295_vm3, %v1213_v17 }
  0x40   : > { %1078 = vmatprep.mubr.msk.bf16.mxu0 %vm1309_vm2, %v1307_v0 }
  0x47   : > { %1079 = vmatmul.mubr.msk.bf16.gmra.mrb[24].mxu0 %vm295_vm3, %v1214_v18 }
  0xea   : > { %v376_v20 = vpop.f32.mrb[0].mxu0  ;;  %v432_v23 = vpop.f32.mrb[0].mxu1 }
  0xeb   : > { %v377_v21 = vadd.f32 %v1415_v19, %v376_v20  ;;  %v1056_v22 = vpop.f32.mrb[1].mxu0  ;;  %v433_v25 = vadd.f32 %v1415_v19, %v432_v23  ;;  %v1084_v26 = vpop.f32.mrb[1].mxu1 }
  0xec   : > { %v379_v24 = vpop.f32.mrb[2].mxu0  ;;  %v435_v30 = vpop.f32.mrb[2].mxu1 }
  0xed   : > { %v478_v27 = vmax.f32 %v377_v21, 0.0  ;;  %v380_v28 = vadd.f32 %v1415_v19, %v379_v24  ;;  %v1057_v29 = vpop.f32.mrb[3].mxu0  ;;  %v492_v31 = vmax.f32 %v433_v25, 0.0  ;;  %v436_v32 = vadd.f32 %v1415_v19, %v435_v30  ;;  %v1085_v33 = vpop.f32.mrb[3].mxu1 }
  0xef   : > { %v1012_v34 = vpack.c.bf16 %v478_v27, %v478_v27  ;;  %v479_v35 = vmax.f32 %v380_v28, 0.0  ;;  %v1026_v36 = vpack.c.bf16 %v492_v31, %v492_v31  ;;  %v493_v37 = vmax.f32 %v436_v32, 0.0 }
  0xf1   : > { %605 = vst.msk [vmem:[%s1421_s6] sm:$0xf] %vm604_vm4, %v1012_v34  ;;  %v1013_v38 = vpack.c.bf16 %v479_v35, %v479_v35  ;;  %619 = vst.msk [vmem:[%s1421_s6 + $0x38] sm:$0xf] %vm604_vm4, %v1026_v36  ;;  %v1027_v40 = vpack.c.bf16 %v493_v37, %v493_v37 }
  0xf2   : > { %v384_v39 = vpop.f32.mrb[4].mxu0  ;;  %v440_v43 = vpop.f32.mrb[4].mxu1 }
  0xf3   : > { %606 = vst.msk [vmem:[%s1421_s6 + $0x4] sm:$0xf] %vm604_vm4, %v1013_v38  ;;  %v385_v41 = vadd.f32 %v1415_v19, %v384_v39  ;;  %v1060_v42 = vpop.f32.mrb[5].mxu0  ;;  %620 = vst.msk [vmem:[%s1421_s6 + $0x3c] sm:$0xf] %vm604_vm4, %v1027_v40  ;;  %v441_v45 = vadd.f32 %v1415_v19, %v440_v43  ;;  %v1088_v46 = vpop.f32.mrb[5].mxu1 }
  0xf4   : > { %v387_v44 = vpop.f32.mrb[6].mxu0  ;;  %v443_v50 = vpop.f32.mrb[6].mxu1 }
  0xf5   : > { %v480_v47 = vmax.f32 %v385_v41, 0.0  ;;  %v388_v48 = vadd.f32 %v1415_v19, %v387_v44  ;;  %v1061_v49 = vpop.f32.mrb[7].mxu0  ;;  %v494_v51 = vmax.f32 %v441_v45, 0.0  ;;  %v444_v52 = vadd.f32 %v1415_v19, %v443_v50  ;;  %v1089_v53 = vpop.f32.mrb[7].mxu1 }
  0xf7   : > { %v1014_v54 = vpack.c.bf16 %v480_v47, %v480_v47  ;;  %v481_v55 = vmax.f32 %v388_v48, 0.0  ;;  %v1028_v56 = vpack.c.bf16 %v494_v51, %v494_v51  ;;  %v495_v57 = vmax.f32 %v444_v52, 0.0 }
  0xf9   : > { %607 = vst.msk [vmem:[%s1421_s6 + $0x8] sm:$0xf] %vm604_vm4, %v1014_v54  ;;  %v1015_v58 = vpack.c.bf16 %v481_v55, %v481_v55  ;;  %621 = vst.msk [vmem:[%s1421_s6 + $0x40] sm:$0xf] %vm604_vm4, %v1028_v56  ;;  %v1029_v60 = vpack.c.bf16 %v495_v57, %v495_v57 }
  0xfa   : > { %v392_v59 = vpop.f32.mrb[8].mxu0  ;;  %v448_v63 = vpop.f32.mrb[8].mxu1 }
  0xfb   : > { %608 = vst.msk [vmem:[%s1421_s6 + $0xc] sm:$0xf] %vm604_vm4, %v1015_v58  ;;  %v393_v61 = vadd.f32 %v1415_v19, %v392_v59  ;;  %v1064_v62 = vpop.f32.mrb[9].mxu0  ;;  %622 = vst.msk [vmem:[%s1421_s6 + $0x44] sm:$0xf] %vm604_vm4, %v1029_v60  ;;  %v449_v1 = vadd.f32 %v1415_v19, %v448_v63  ;;  %v1092_v2 = vpop.f32.mrb[9].mxu1 }
  0xfc   : > { %v395_v0 = vpop.f32.mrb[10].mxu0  ;;  %v451_v6 = vpop.f32.mrb[10].mxu1 }
  0xfd   : > { %v482_v3 = vmax.f32 %v393_v61, 0.0  ;;  %v396_v4 = vadd.f32 %v1415_v19, %v395_v0  ;;  %v1065_v5 = vpop.f32.mrb[11].mxu0  ;;  %v496_v7 = vmax.f32 %v449_v1, 0.0  ;;  %v452_v8 = vadd.f32 %v1415_v19, %v451_v6  ;;  %v1093_v9 = vpop.f32.mrb[11].mxu1 }
  0xff   : > { %v1016_v10 = vpack.c.bf16 %v482_v3, %v482_v3  ;;  %v483_v11 = vmax.f32 %v396_v4, 0.0  ;;  %v1030_v12 = vpack.c.bf16 %v496_v7, %v496_v7  ;;  %v497_v13 = vmax.f32 %v452_v8, 0.0 }
 0x101   : > { %609 = vst.msk [vmem:[%s1421_s6 + $0x10] sm:$0xf] %vm604_vm4, %v1016_v10  ;;  %v1017_v14 = vpack.c.bf16 %v483_v11, %v483_v11  ;;  %623 = vst.msk [vmem:[%s1421_s6 + $0x48] sm:$0xf] %vm604_vm4, %v1030_v12  ;;  %v1031_v16 = vpack.c.bf16 %v497_v13, %v497_v13 }
 0x102   : > { %v400_v15 = vpop.f32.mrb[12].mxu0  ;;  %v456_v20 = vpop.f32.mrb[12].mxu1 }
 0x103   : > { %610 = vst.msk [vmem:[%s1421_s6 + $0x14] sm:$0xf] %vm604_vm4, %v1017_v14  ;;  %v401_v17 = vadd.f32 %v1415_v19, %v400_v15  ;;  %v1068_v18 = vpop.f32.mrb[13].mxu0  ;;  %624 = vst.msk [vmem:[%s1421_s6 + $0x4c] sm:$0xf] %vm604_vm4, %v1031_v16  ;;  %v457_v22 = vadd.f32 %v1415_v19, %v456_v20  ;;  %v1096_v23 = vpop.f32.mrb[13].mxu1 }
 0x104   : > { %v403_v21 = vpop.f32.mrb[14].mxu0  ;;  %v459_v27 = vpop.f32.mrb[14].mxu1 }
 0x105   : > { %v484_v24 = vmax.f32 %v401_v17, 0.0  ;;  %v404_v25 = vadd.f32 %v1415_v19, %v403_v21  ;;  %v1069_v26 = vpop.f32.mrb[15].mxu0  ;;  %v498_v28 = vmax.f32 %v457_v22, 0.0  ;;  %v460_v29 = vadd.f32 %v1415_v19, %v459_v27  ;;  %v1097_v30 = vpop.f32.mrb[15].mxu1 }
 0x107   : > { %v1018_v31 = vpack.c.bf16 %v484_v24, %v484_v24  ;;  %v485_v32 = vmax.f32 %v404_v25, 0.0  ;;  %v1032_v33 = vpack.c.bf16 %v498_v28, %v498_v28  ;;  %v499_v34 = vmax.f32 %v460_v29, 0.0 }
 0x109   : > { %611 = vst.msk [vmem:[%s1421_s6 + $0x18] sm:$0xf] %vm604_vm4, %v1018_v31  ;;  %v1019_v35 = vpack.c.bf16 %v485_v32, %v485_v32  ;;  %625 = vst.msk [vmem:[%s1421_s6 + $0x50] sm:$0xf] %vm604_vm4, %v1032_v33  ;;  %v1033_v37 = vpack.c.bf16 %v499_v34, %v499_v34 }
 0x10a   : > { %v408_v36 = vpop.f32.mrb[16].mxu0  ;;  %v464_v40 = vpop.f32.mrb[16].mxu1 }
 0x10b   : > { %612 = vst.msk [vmem:[%s1421_s6 + $0x1c] sm:$0xf] %vm604_vm4, %v1019_v35  ;;  %v409_v38 = vadd.f32 %v1415_v19, %v408_v36  ;;  %v1072_v39 = vpop.f32.mrb[17].mxu0  ;;  %626 = vst.msk [vmem:[%s1421_s6 + $0x54] sm:$0xf] %vm604_vm4, %v1033_v37  ;;  %v465_v42 = vadd.f32 %v1415_v19, %v464_v40  ;;  %v1100_v43 = vpop.f32.mrb[17].mxu1 }
 0x10c   : > { %v411_v41 = vpop.f32.mrb[18].mxu0  ;;  %v467_v47 = vpop.f32.mrb[18].mxu1 }
 0x10d   : > { %v486_v44 = vmax.f32 %v409_v38, 0.0  ;;  %v412_v45 = vadd.f32 %v1415_v19, %v411_v41  ;;  %v1073_v46 = vpop.f32.mrb[19].mxu0  ;;  %v500_v48 = vmax.f32 %v465_v42, 0.0  ;;  %v468_v49 = vadd.f32 %v1415_v19, %v467_v47  ;;  %v1101_v50 = vpop.f32.mrb[19].mxu1 }
 0x10f   : > { %v1020_v51 = vpack.c.bf16 %v486_v44, %v486_v44  ;;  %v487_v52 = vmax.f32 %v412_v45, 0.0  ;;  %v1034_v53 = vpack.c.bf16 %v500_v48, %v500_v48  ;;  %v501_v54 = vmax.f32 %v468_v49, 0.0 }
 0x111   : > { %613 = vst.msk [vmem:[%s1421_s6 + $0x20] sm:$0xf] %vm604_vm4, %v1020_v51  ;;  %v1021_v55 = vpack.c.bf16 %v487_v52, %v487_v52  ;;  %627 = vst.msk [vmem:[%s1421_s6 + $0x58] sm:$0xf] %vm604_vm4, %v1034_v53  ;;  %v1035_v57 = vpack.c.bf16 %v501_v54, %v501_v54 }
 0x112   : > { %v416_v56 = vpop.f32.mrb[20].mxu0  ;;  %v472_v60 = vpop.f32.mrb[20].mxu1 }
 0x113   : > { %614 = vst.msk [vmem:[%s1421_s6 + $0x24] sm:$0xf] %vm604_vm4, %v1021_v55  ;;  %v417_v58 = vadd.f32 %v1415_v19, %v416_v56  ;;  %v1076_v59 = vpop.f32.mrb[21].mxu0  ;;  %628 = vst.msk [vmem:[%s1421_s6 + $0x5c] sm:$0xf] %vm604_vm4, %v1035_v57  ;;  %v473_v62 = vadd.f32 %v1415_v19, %v472_v60  ;;  %v1104_v63 = vpop.f32.mrb[21].mxu1 }
 0x114   : > { %v419_v61 = vpop.f32.mrb[22].mxu0  ;;  %v475_v3 = vpop.f32.mrb[22].mxu1 }
 0x115   : > { %v488_v0 = vmax.f32 %v417_v58, 0.0  ;;  %v420_v1 = vadd.f32 %v1415_v19, %v419_v61  ;;  %v1077_v2 = vpop.f32.mrb[23].mxu0  ;;  %v502_v4 = vmax.f32 %v473_v62, 0.0  ;;  %v1105_v5 = vpop.f32.mrb[23].mxu1 }
 0x117   : > { %v1022_v6 = vpack.c.bf16 %v488_v0, %v488_v0  ;;  %v489_v7 = vmax.f32 %v420_v1, 0.0  ;;  %v1036_v8 = vpack.c.bf16 %v502_v4, %v502_v4 }
 0x119   : > { %615 = vst.msk [vmem:[%s1421_s6 + $0x28] sm:$0xf] %vm604_vm4, %v1022_v6  ;;  %v1023_v9 = vpack.c.bf16 %v489_v7, %v489_v7  ;;  %629 = vst.msk [vmem:[%s1421_s6 + $0x60] sm:$0xf] %vm604_vm4, %v1036_v8 }
 0x11a   : > { %v424_v10 = vpop.f32.mrb[24].mxu0 }
 0x11b   : > { %616 = vst.msk [vmem:[%s1421_s6 + $0x2c] sm:$0xf] %vm604_vm4, %v1023_v9  ;;  %v425_v11 = vadd.f32 %v1415_v19, %v424_v10  ;;  %v1080_v12 = vpop.f32.mrb[25].mxu0 }
 0x11c   : > { %v427_v13 = vpop.f32.mrb[26].mxu0 }
 0x11d   : > { %v490_v14 = vmax.f32 %v425_v11, 0.0  ;;  %v428_v15 = vadd.f32 %v1415_v19, %v427_v13  ;;  %v1081_v16 = vpop.f32.mrb[27].mxu0  ;;  %636 = sbr.rel (!%p1355_p4) target bundleno = 370 (0x172), region = 36 }
 0x11f   : > { %v1024_v17 = vpack.c.bf16 %v490_v14, %v490_v14  ;;  %v491_v18 = vmax.f32 %v428_v15, 0.0 }
 0x121   : > { %617 = vst.msk [vmem:[%s1421_s6 + $0x30] sm:$0xf] %vm604_vm4, %v1024_v17  ;;  %v1025_v20 = vpack.c.bf16 %v491_v18, %v491_v18 }
 0x123   : > { %618 = vst.msk [vmem:[%s1421_s6 + $0x34] sm:$0xf] %vm604_vm4, %v1025_v20 }
 0x124   : > { %s1622_s7 = smov (!%p639_p8, %s638_s7), 25 }
 0x125   : > { %s1000_s12 = sshll.u32 %s1622_s7, 6 }
 0x126   : > { %p1003_p9 = scmp.eq.s32.totalorder %s1000_s12, 0 }
 0x127   : > { %1215 = sdivrem.u32 (!%p1003_p9), %s1622_s7, 25 }
 0x128   : > { %647 = sbr.rel (%p1003_p9) target bundleno = 370 (0x172), region = 40 }
 0x130   : > { %s1507_s14 = spop.drf %1215 }
 0x131   : > { %p1004_p10 = scmp.le.s32.totalorder %s1507_s14, 0 }
 0x132   : > { %s1615_s15 = smov (!%p1004_p10), %s1501_s11  ;;  %s1616_s17 = smov (!%p1004_p10), %s1421_s6 }
 0x133   : > { %898 = sbr.rel (%p1004_p10) target bundleno = 341 (0x155), region = 112  ;;  %s1516_s18 = smov (!%p1004_p10), 0  }
 0x134   : > { %s1518_s20 = smov (!%p1004_p10), 0  }
 0x13a LB: >> { %v664_v19 = vld [vmem:[%s1281_s17] sm:$0xf]  ;;  %v666_v21 = vld [vmem:[%s1281_s17 + $0x4] sm:$0xf]  ;;  %v668_v22 = vld [vmem:[%s1281_s17 + $0x8] sm:$0xf]  ;;  %s1289_s20 = sphi %s1518_s20, %s658_s20   ;;  %s1285_s18 = sphi %s1516_s18, %s1617_s18   ;;  %s1281_s17 = sphi %s1616_s17, %s719_s17   ;;  %s1277_s15 = sphi %s1615_s15, %s720_s15  }
 0x13b   : >> { %665 = vst [vmem:[%s1277_s15] sm:$0xf] %v664_v19  ;;  %667 = vst [vmem:[%s1277_s15 + $0x4] sm:$0xf] %v666_v21  ;;  %v670_v23 = vld [vmem:[%s1281_s17 + $0xc] sm:$0xf]  ;;  %s714_s21 = sadd.s32 1, %s1285_s18 }
 0x13c   : >> { %669 = vst [vmem:[%s1277_s15 + $0x8] sm:$0xf] %v668_v22  ;;  %v672_v24 = vld [vmem:[%s1281_s17 + $0x10] sm:$0xf]  ;;  %v674_v25 = vld [vmem:[%s1281_s17 + $0x14] sm:$0xf]  ;;  %p715_p11 = scmp.ge.s32.totalorder %s714_s21, %s1507_s14 }
 0x13d   : >> { %671 = vst [vmem:[%s1277_s15 + $0xc] sm:$0xf] %v670_v23  ;;  %673 = vst [vmem:[%s1277_s15 + $0x10] sm:$0xf] %v672_v24  ;;  %v676_v26 = vld [vmem:[%s1281_s17 + $0x18] sm:$0xf] }
 0x13e   : >> { %675 = vst [vmem:[%s1277_s15 + $0x14] sm:$0xf] %v674_v25  ;;  %v678_v27 = vld [vmem:[%s1281_s17 + $0x1c] sm:$0xf]  ;;  %v680_v28 = vld [vmem:[%s1281_s17 + $0x20] sm:$0xf] }
 0x13f   : >> { %677 = vst [vmem:[%s1277_s15 + $0x18] sm:$0xf] %v676_v26  ;;  %679 = vst [vmem:[%s1277_s15 + $0x1c] sm:$0xf] %v678_v27  ;;  %v682_v29 = vld [vmem:[%s1281_s17 + $0x24] sm:$0xf] }
 0x140   : >> { %681 = vst [vmem:[%s1277_s15 + $0x20] sm:$0xf] %v680_v28  ;;  %v684_v30 = vld [vmem:[%s1281_s17 + $0x28] sm:$0xf]  ;;  %v686_v31 = vld [vmem:[%s1281_s17 + $0x2c] sm:$0xf] }
 0x141   : >> { %683 = vst [vmem:[%s1277_s15 + $0x24] sm:$0xf] %v682_v29  ;;  %685 = vst [vmem:[%s1277_s15 + $0x28] sm:$0xf] %v684_v30  ;;  %v688_v32 = vld [vmem:[%s1281_s17 + $0x30] sm:$0xf] }
 0x142   : >> { %687 = vst [vmem:[%s1277_s15 + $0x2c] sm:$0xf] %v686_v31  ;;  %v690_v33 = vld [vmem:[%s1281_s17 + $0x34] sm:$0xf]  ;;  %v692_v34 = vld [vmem:[%s1281_s17 + $0x38] sm:$0xf] }
 0x143   : >> { %689 = vst [vmem:[%s1277_s15 + $0x30] sm:$0xf] %v688_v32  ;;  %691 = vst [vmem:[%s1277_s15 + $0x34] sm:$0xf] %v690_v33  ;;  %v694_v35 = vld [vmem:[%s1281_s17 + $0x3c] sm:$0xf] }
 0x144   : >> { %693 = vst [vmem:[%s1277_s15 + $0x38] sm:$0xf] %v692_v34  ;;  %v696_v36 = vld [vmem:[%s1281_s17 + $0x40] sm:$0xf]  ;;  %v698_v37 = vld [vmem:[%s1281_s17 + $0x44] sm:$0xf] }
 0x145   : >> { %695 = vst [vmem:[%s1277_s15 + $0x3c] sm:$0xf] %v694_v35  ;;  %697 = vst [vmem:[%s1277_s15 + $0x40] sm:$0xf] %v696_v36  ;;  %v700_v38 = vld [vmem:[%s1281_s17 + $0x48] sm:$0xf] }
 0x146   : >> { %699 = vst [vmem:[%s1277_s15 + $0x44] sm:$0xf] %v698_v37  ;;  %v702_v39 = vld [vmem:[%s1281_s17 + $0x4c] sm:$0xf]  ;;  %v704_v40 = vld [vmem:[%s1281_s17 + $0x50] sm:$0xf] }
 0x147   : >> { %701 = vst [vmem:[%s1277_s15 + $0x48] sm:$0xf] %v700_v38  ;;  %703 = vst [vmem:[%s1277_s15 + $0x4c] sm:$0xf] %v702_v39  ;;  %v706_v41 = vld [vmem:[%s1281_s17 + $0x54] sm:$0xf] }
 0x148   : >> { %705 = vst [vmem:[%s1277_s15 + $0x50] sm:$0xf] %v704_v40  ;;  %v708_v42 = vld [vmem:[%s1281_s17 + $0x58] sm:$0xf]  ;;  %v710_v43 = vld [vmem:[%s1281_s17 + $0x5c] sm:$0xf] }
 0x149   : >> { %707 = vst [vmem:[%s1277_s15 + $0x54] sm:$0xf] %v706_v41  ;;  %709 = vst [vmem:[%s1277_s15 + $0x58] sm:$0xf] %v708_v42  ;;  %v712_v44 = vld [vmem:[%s1281_s17 + $0x60] sm:$0xf] }
 0x14a   : >> { %711 = vst [vmem:[%s1277_s15 + $0x5c] sm:$0xf] %v710_v43  ;;  %713 = vst [vmem:[%s1277_s15 + $0x60] sm:$0xf] %v712_v44  ;;  %s1624_s21 = smov (%p715_p11, %s714_s21), 0  ;;  %s658_s20 = sadd.s32 1, %s1289_s20  }
 0x14b   : >> { %s717_s22 = smul.u32 100, %s1624_s21  ;;  %p657_p12 = scmp.ge.s32.totalorder %s658_s20, %s1507_s14 }
 0x14c   : >> { %s1617_s18 = smov %s1624_s21 }
 0x14d   : >> { %s719_s17 = scalar_lea.vmem %s1421_s6, %s717_s22 [#allocation2]   ;;  %s720_s15 = scalar_lea.vmem %s1501_s11, %s717_s22  }
 0x14e   : > { %660 = sbr.rel (!%p657_p12) target bundleno = 314 (0x13a), region = 118 }
 0x155 PF: > { %1217 = sdivrem.u32 %s1622_s7, 25 }
 0x156   : > { %s1005_s23 = smul.u32 100, %s1507_s14 }
 0x158   : > { %s725_s24 = scalar_lea.vmem %s1421_s6, %s1005_s23 [#allocation2]   ;;  %s727_s25 = scalar_lea.vmem %s1501_s11, %s1005_s23  }
 0x15e   : > { %s1218_s26 = spop.drf %1217 }
 0x15f   : > { %p1007_p13 = scmp.le.s32.totalorder %s1218_s26, 0 }
 0x160   : > { %s1291_s27 = smov (!%p1007_p13), %s727_s25   ;;  %s1295_s28 = smov (!%p1007_p13), %s725_s24  }
 0x161   : > { %912 = sbr.rel (%p1007_p13) target bundleno = 370 (0x172), region = 123  ;;  %s1299_s29 = smov (!%p1007_p13), 0  }
 0x162   : > { %s1303_s30 = smov (!%p1007_p13), 0  }
 0x168 LB: >> { %v737_v45 = vld [vmem:[%s1297_s28] sm:$0xf]  ;;  %s739_s4 = sadd.s32 1, %s1301_s29  ;;  %s731_s30 = sadd.s32 1, %s1305_s30   ;;  %s1305_s30 = sphi %s1303_s30, %s731_s30   ;;  %s1301_s29 = sphi %s1299_s29, %s1300_s29   ;;  %s1297_s28 = sphi %s1295_s28, %s744_s28   ;;  %s1293_s27 = sphi %s1291_s27, %s745_s27  }
 0x169   : >> { %738 = vst [vmem:[%s1293_s27] sm:$0xf] %v737_v45  ;;  %p740_p0 = scmp.ge.s32.totalorder %s739_s4, %s1218_s26  ;;  %p730_p1 = scmp.ge.s32.totalorder %s731_s30, %s1218_s26 }
 0x16b   : >> { %s1626_s4 = smov (%p740_p0, %s739_s4), 0  ;;  %733 = sbr.rel (!%p730_p1) target bundleno = 360 (0x168), region = 129 }
 0x16c   : >> { %s1008_s5 = sshll.u32 %s1626_s4, 2  ;;  %s1300_s29 = smov %s1626_s4  }
 0x16d   : >> { %s744_s28 = scalar_lea.vmem %s725_s24, %s1008_s5 [#allocation2]   ;;  %s745_s27 = scalar_lea.vmem %s727_s25, %s1008_s5  }
 0x172 PF: > { %p10_p2 = scmp.ge.s32.totalorder %s1345_s16, 4   ;;  %s1618_s12 = smov %s1269_s13 }
 0x173   : > { %s1619_s13 = smov %s1353_s19  ;;  %s1620_s14 = smov %s1345_s16 }
 0x174   :  { %12 = sbr.rel (!%p10_p2) target bundleno = 2 (0x2), region = 140 }

// kernel: dae_forward.6
= control target key start
LH: loop header
LB: loop body
LE: loop exit
PB: predicated region body
PF: predicated region fallthrough
CT: control target
= control target key end

     0   :  { %s979_s12 = smov 0   ;;  %s981_s13 = smov 0   ;;  %s1132_s0 = inlined_call_operand.vmem [shape: bf16[98,144], index: 0, kind: input, shape index: {}]   ;;  %s1133_s1 = inlined_call_operand.vmem [shape: bf16[144,32], index: 1, kind: input, shape index: {}]   ;;  %s1134_s2 = inlined_call_operand.vmem [shape: f32[1,32], index: 2, kind: input, shape index: {}]   ;;  %s1135_s3 = inlined_call_operand.vmem [shape: bf16[98,32], index: 3, kind: output, shape index: {}]  }
   0x1   :  { %s983_s14 = smov 0  }
   0x2 LB: > { %s992_s15 = sadd.s32 4294967295, %s924_s14   ;;  %s994_s16 = sadd.s32 1, %s924_s14   ;;  %s924_s14 = sphi %s983_s14, %s1142_s14   ;;  %s920_s13 = sphi %s981_s13, %s1141_s13   ;;  %s916_s12 = sphi %s979_s12, %s1140_s12  }
   0x3   : > { %s85_s17 = ssub.s32 %s924_s14, %s994_s16  ;;  %s88_s18 = sadd.s32 1, %s920_s13 }
   0x4   : > { %p86_p0 = scmp.eq.s32.totalorder %s85_s17, 0  ;;  %p98_p1 = scmp.ne.s32.totalorder %s920_s13, %s916_s12 }
   0x5   : > { %p99_p2 = scmp.eq.s32.totalorder %s992_s15, 1  ;;  %p684_p3 = scmp.ge.s32.totalorder %s924_s14, 1 }
   0x6   : > { %s1002_s19 = scalar_select %p86_p0, %s920_s13, %s88_s18  }
   0x7   : > { %p1004_p4 = por %p99_p2, %p98_p1  ;;  %p149_p5 = scmp.lt.s32.totalorder %s924_s14, 3 }
   0x9   : > { %p150_p6 = pnand %p684_p3, %p149_p5 }
   0xa   : > { %v846_v0 = vld [vmem:[%s1133_s1] sm:$0xff] (!%p150_p6)   ;;  %v958_v1 = vmov (!%p150_p6), 0   ;;  %s1012_s23 = smul.u32 (!%p150_p6), 7, %s992_s15  ;;  %v847_v2 = vld [vmem:[%s1133_s1 + $0x8] sm:$0xff] (!%p150_p6)   ;;  %v848_v3 = vld [vmem:[%s1133_s1 + $0x10] sm:$0xff] (!%p150_p6)   ;;  %vm320_vm0 = vcmask (!%p150_p6), 130048  }
   0xb   : > { %153 = sbr.rel (%p150_p6) target bundleno = 342 (0x156), region = 32  ;;  %333 = vmatprep.subr.bf16.mxu0 (!%p150_p6), %v958_v1  ;;  %737 = vmatprep.subr.bf16.mxu1 (!%p150_p6), %v958_v1  ;;  %v849_v4 = vld [vmem:[%s1133_s1 + $0x18] sm:$0xff] (!%p150_p6)   ;;  %v850_v7 = vld [vmem:[%s1133_s1 + $0x20] sm:$0xff] (!%p150_p6)   ;;  %v851_v8 = vld [vmem:[%s1133_s1 + $0x28] sm:$0xff] (!%p150_p6)   ;;  %s175_s25 = sand.u32 (!%p150_p6), 1, %s916_s12   ;;  %vm433_vm1 = vcmask (!%p150_p6), 257024  }
   0xc   : > { %334 = vmatpush1.bf16.msra.mxu0 (!%p150_p6), %v846_v0  ;;  %746 = vmatpush1.bf16.msra.mxu1 (!%p150_p6), %v846_v0  ;;  %p184_p7 = scmp.lt.s32.totalorder (!%p150_p6), %s1012_s23, 12  ;;  %v852_v9 = vld [vmem:[%s1133_s1 + $0x30] sm:$0xff] (!%p150_p6)   ;;  %v853_v10 = vld [vmem:[%s1133_s1 + $0x38] sm:$0xff] (!%p150_p6)   ;;  %v854_v11 = vld [vmem:[%s1133_s1 + $0x40] sm:$0xff] (!%p150_p6)   ;;  %s755_s28 = smul.u32 (!%p150_p6), 28, %s175_s25 }
   0xd   : > { %335 = vmatprep.subr.bf16.mxu0 (!%p150_p6), %v958_v1  ;;  %738 = vmatprep.subr.bf16.mxu1 (!%p150_p6), %v958_v1  ;;  %v687_v19 = vld [vmem:[%s1134_s2] ss:$0 sm:$0xff] (!%p150_p6) }
   0xe   : > { %s1060_s12 = scalar_lea.vmem (!%p150_p6), [#allocation2], %s755_s28  }
  0x10   : > { %336 = vmatpush1.bf16.msra.mxu0 (!%p150_p6), %v847_v2  ;;  %747 = vmatpush1.bf16.msra.mxu1 (!%p150_p6), %v847_v2 }
  0x11   : > { %337 = vmatprep.subr.bf16.mxu0 (!%p150_p6), %v958_v1  ;;  %739 = vmatprep.subr.bf16.mxu1 (!%p150_p6), %v958_v1 }
  0x12   : > { %s185_s26 = scalar_select %p184_p7, %s1012_s23, 12 }
  0x13   : > { %s736_s30 = smul.u32 (%p1004_p4), 28, %s992_s15 }
  0x14   : > { %s728_s29 = sshll.u32 %s185_s26, 3  ;;  %338 = vmatpush1.bf16.msra.mxu0 %v848_v3  ;;  %748 = vmatpush1.bf16.msra.mxu1 %v848_v3 }
  0x15   : > { %s1025_s5 = scalar_lea.vmem %s1132_s0, %s728_s29  ;;  %339 = vmatprep.subr.bf16.mxu0 %v958_v1  ;;  %740 = vmatprep.subr.bf16.mxu1 %v958_v1  ;;  %s449_s29 = ssub.s32 (%p1004_p4), 13, %s1012_s23 }
  0x16   : > { %v857_v5 = vld [vmem:[%s1025_s5 + $0x4] ss:$8 sps:$4 sm:$0xff]   ;;  %v207_v12 = vld [vmem:[%s1025_s5 + $0x30] sm:$0xff]  ;;  %v855_v13 = vld [vmem:[%s1025_s5] ss:$8 sps:$4 sm:$0xff]   ;;  %p450_p8 = scmp.lt.s32.totalorder (%p1004_p4), %s449_s29, 7  ;;  %s1083_s6 = scalar_lea.vmem (%p1004_p4), %s1135_s3, %s736_s30  }
  0x17   : > { %v860_v6 = vld [vmem:[%s1025_s5 + $0x24] ss:$8 sps:$4 sm:$0xff]   ;;  %705 = vmatprep.mubr.msk.bf16.mxu0 %vm320_vm0, %v857_v5  ;;  %v858_v14 = vld [vmem:[%s1025_s5 + $0x20] ss:$8 sps:$4 sm:$0xff]   ;;  %v861_v15 = vld [vmem:[%s1025_s5 + $0x14] ss:$8 sps:$4 sm:$0xff]   ;;  %v695_v16 = vcombine.high %v207_v12, %v207_v12  ;;  %v694_v18 = vcombine.low %v207_v12, %v207_v12 }
  0x18   : > { %707 = vmatprep.mubr.msk.bf16.mxu1 %vm320_vm0, %v860_v6  ;;  %340 = vmatpush1.bf16.msra.mxu0 %v849_v4  ;;  %v864_v17 = vld [vmem:[%s1025_s5 + $0x10] ss:$8 sps:$4 sm:$0xff]  }
  0x19   : > { %749 = vmatpush1.bf16.msra.mxu1 %v849_v4  ;;  %341 = vmatprep.subr.bf16.mxu0 %v958_v1 }
  0x1a   : > { %741 = vmatprep.subr.bf16.mxu1 %v958_v1 }
  0x1c   : > { %342 = vmatpush1.bf16.msra.mxu0 %v850_v7 }
  0x1d   : > { %750 = vmatpush1.bf16.msra.mxu1 %v850_v7  ;;  %343 = vmatprep.subr.bf16.mxu0 %v958_v1 }
  0x1e   : > { %742 = vmatprep.subr.bf16.mxu1 %v958_v1 }
  0x20   : > { %344 = vmatpush1.bf16.msra.mxu0 %v851_v8 }
  0x21   : > { %751 = vmatpush1.bf16.msra.mxu1 %v851_v8  ;;  %345 = vmatprep.subr.bf16.mxu0 %v958_v1 }
  0x22   : > { %743 = vmatprep.subr.bf16.mxu1 %v958_v1 }
  0x24   : > { %346 = vmatpush1.bf16.msra.mxu0 %v852_v9 }
  0x25   : > { %752 = vmatpush1.bf16.msra.mxu1 %v852_v9  ;;  %347 = vmatprep.subr.bf16.mxu0 %v958_v1 }
  0x26   : > { %744 = vmatprep.subr.bf16.mxu1 %v958_v1 }
  0x28   : > { %348 = vmatpush1.bf16.msra.mxu0 %v853_v10 }
  0x29   : > { %753 = vmatpush1.bf16.msra.mxu1 %v853_v10  ;;  %349 = vmatprep.subr.bf16.mxu0 %v958_v1 }
  0x2a   : > { %745 = vmatprep.subr.bf16.mxu1 %v958_v1 }
  0x2c   : > { %350 = vmatpush1.bf16.msra.mxu0 %v854_v11 }
  0x2d   : > { %754 = vmatpush1.bf16.msra.mxu1 %v854_v11 }
  0x2f   : > { %366 = vmatmul.mubr.bf16.vlgmr.msra.gmra.mrb[0].mxu0 %v855_v13 }
  0x30   : > { %382 = vmatmul.mubr.bf16.vlgmr.msra.gmra.mrb[0].mxu1 %v858_v14  ;;  %706 = vmatprep.mubr.msk.bf16.mxu0 %vm320_vm0, %v861_v15 }
  0x31   : > { %708 = vmatprep.mubr.msk.bf16.mxu1 %vm320_vm0, %v695_v16 }
  0x37   : > { %374 = vmatmul.mubr.bf16.gmra.mrb[4].mxu0 %v864_v17 }
  0x38   : > { %390 = vmatmul.mubr.bf16.gmra.mrb[4].mxu1 %v694_v18 }
 0x102   : > { %v367_v20 = vpop.f32.mrb[0].mxu0 }
 0x103   : > { %v383_v21 = vpop.f32.mrb[0].mxu1  ;;  %v368_v22 = vadd.f32 %v687_v19, %v367_v20  ;;  %v369_v24 = vpop.f32.mrb[1].mxu0 }
 0x104   : > { %v384_v23 = vadd.f32 %v687_v19, %v383_v21  ;;  %v385_v25 = vpop.f32.mrb[1].mxu1  ;;  %v370_v26 = vpop.f32.mrb[2].mxu0 }
 0x105   : > { %v386_v27 = vpop.f32.mrb[2].mxu1  ;;  %v397_v28 = vmax.f32 %v368_v22, 0.0  ;;  %v371_v30 = vadd.f32 %v687_v19, %v370_v26  ;;  %v372_v32 = vpop.f32.mrb[3].mxu0 }
 0x106   : > { %v401_v29 = vmax.f32 %v384_v23, 0.0  ;;  %v387_v31 = vadd.f32 %v687_v19, %v386_v27  ;;  %v388_v33 = vpop.f32.mrb[3].mxu1 }
 0x107   : > { %v729_v34 = vpack.c.bf16 %v397_v28, %v397_v28  ;;  %v398_v36 = vmax.f32 %v371_v30, 0.0 }
 0x108   : > { %v733_v35 = vpack.c.bf16 %v401_v29, %v401_v29  ;;  %v402_v37 = vmax.f32 %v387_v31, 0.0 }
 0x109   : > { %434 = vst.msk [vmem:[%s1060_s12] sm:$0xf] %vm433_vm1, %v729_v34  ;;  %v730_v38 = vpack.c.bf16 %v398_v36, %v398_v36 }
 0x10a   : > { %438 = vst.msk [vmem:[%s1060_s12 + $0x10] sm:$0xf] %vm433_vm1, %v733_v35  ;;  %v734_v39 = vpack.c.bf16 %v402_v37, %v402_v37  ;;  %v375_v40 = vpop.f32.mrb[4].mxu0 }
 0x10b   : > { %v391_v41 = vpop.f32.mrb[4].mxu1  ;;  %435 = vst.msk [vmem:[%s1060_s12 + $0x4] sm:$0xf] %vm433_vm1, %v730_v38  ;;  %v376_v42 = vadd.f32 %v687_v19, %v375_v40  ;;  %v377_v44 = vpop.f32.mrb[5].mxu0 }
 0x10c   : > { %439 = vst.msk [vmem:[%s1060_s12 + $0x14] sm:$0xf] %vm433_vm1, %v734_v39  ;;  %v392_v43 = vadd.f32 %v687_v19, %v391_v41  ;;  %v393_v45 = vpop.f32.mrb[5].mxu1  ;;  %v378_v46 = vpop.f32.mrb[6].mxu0 }
 0x10d   : > { %v394_v47 = vpop.f32.mrb[6].mxu1  ;;  %v399_v48 = vmax.f32 %v376_v42, 0.0  ;;  %v379_v50 = vadd.f32 %v687_v19, %v378_v46  ;;  %v380_v51 = vpop.f32.mrb[7].mxu0  ;;  %447 = sbr.rel (!%p1004_p4) target bundleno = 342 (0x156), region = 36 }
 0x10e   : > { %v403_v49 = vmax.f32 %v392_v43, 0.0  ;;  %v395_v52 = vpop.f32.mrb[7].mxu1 }
 0x10f   : > { %v731_v53 = vpack.c.bf16 %v399_v48, %v399_v48  ;;  %v400_v55 = vmax.f32 %v379_v50, 0.0 }
 0x110   : > { %v735_v54 = vpack.c.bf16 %v403_v49, %v403_v49 }
 0x111   : > { %436 = vst.msk [vmem:[%s1060_s12 + $0x8] sm:$0xf] %vm433_vm1, %v731_v53  ;;  %v732_v56 = vpack.c.bf16 %v400_v55, %v400_v55 }
 0x112   : > { %440 = vst.msk [vmem:[%s1060_s12 + $0x18] sm:$0xf] %vm433_vm1, %v735_v54 }
 0x113   : > { %437 = vst.msk [vmem:[%s1060_s12 + $0xc] sm:$0xf] %vm433_vm1, %v732_v56 }
 0x114   : > { %s1144_s29 = smov (!%p450_p8, %s449_s29), 7 }
 0x115   : > { %s716_s7 = sshll.u32 %s1144_s29, 6 }
 0x116   : > { %p719_p9 = scmp.eq.s32.totalorder %s716_s7, 0 }
 0x117   : > { %866 = sdivrem.u32 (!%p719_p9), %s1144_s29, 7 }
 0x118   : > { %458 = sbr.rel (%p719_p9) target bundleno = 342 (0x156), region = 40 }
 0x120   : > { %s1089_s20 = spop.drf %866 }
 0x121   : > { %p720_p10 = scmp.le.s32.totalorder %s1089_s20, 0 }
 0x122   : > { %s1137_s15 = smov (!%p720_p10), %s1083_s6  ;;  %s1138_s23 = smov (!%p720_p10), %s1060_s12 }
 0x123   : > { %637 = sbr.rel (%p720_p10) target bundleno = 313 (0x139), region = 112  ;;  %s1098_s8 = smov (!%p720_p10), 0  }
 0x124   : > { %s1100_s9 = smov (!%p720_p10), 0  }
 0x12a LB: >> { %v475_v57 = vld [vmem:[%s932_s23] sm:$0xf]  ;;  %v477_v58 = vld [vmem:[%s932_s23 + $0x4] sm:$0xf]  ;;  %v479_v59 = vld [vmem:[%s932_s23 + $0x8] sm:$0xf]  ;;  %s940_s9 = sphi %s1100_s9, %s469_s9   ;;  %s936_s8 = sphi %s1098_s8, %s1139_s8   ;;  %s932_s23 = sphi %s1138_s23, %s494_s23   ;;  %s928_s15 = sphi %s1137_s15, %s495_s15  }
 0x12b   : >> { %476 = vst [vmem:[%s928_s15] sm:$0xf] %v475_v57  ;;  %478 = vst [vmem:[%s928_s15 + $0x4] sm:$0xf] %v477_v58  ;;  %v481_v60 = vld [vmem:[%s932_s23 + $0xc] sm:$0xf]  ;;  %s489_s10 = sadd.s32 1, %s936_s8 }
 0x12c   : >> { %480 = vst [vmem:[%s928_s15 + $0x8] sm:$0xf] %v479_v59  ;;  %v483_v61 = vld [vmem:[%s932_s23 + $0x10] sm:$0xf]  ;;  %v485_v62 = vld [vmem:[%s932_s23 + $0x14] sm:$0xf]  ;;  %p490_p11 = scmp.ge.s32.totalorder %s489_s10, %s1089_s20 }
 0x12d   : >> { %482 = vst [vmem:[%s928_s15 + $0xc] sm:$0xf] %v481_v60  ;;  %484 = vst [vmem:[%s928_s15 + $0x10] sm:$0xf] %v483_v61  ;;  %v487_v63 = vld [vmem:[%s932_s23 + $0x18] sm:$0xf] }
 0x12e   : >> { %486 = vst [vmem:[%s928_s15 + $0x14] sm:$0xf] %v485_v62  ;;  %488 = vst [vmem:[%s928_s15 + $0x18] sm:$0xf] %v487_v63  ;;  %s1146_s10 = smov (%p490_p11, %s489_s10), 0  ;;  %s469_s9 = sadd.s32 1, %s940_s9  }
 0x12f   : >> { %s492_s11 = smul.u32 28, %s1146_s10  ;;  %p468_p12 = scmp.ge.s32.totalorder %s469_s9, %s1089_s20 }
 0x130   : >> { %s1139_s8 = smov %s1146_s10 }
 0x131   : >> { %s494_s23 = scalar_lea.vmem %s1060_s12, %s492_s11 [#allocation2]   ;;  %s495_s15 = scalar_lea.vmem %s1083_s6, %s492_s11  }
 0x132   : > { %471 = sbr.rel (!%p468_p12) target bundleno = 298 (0x12a), region = 118 }
 0x139 PF: > { %868 = sdivrem.u32 %s1144_s29, 7 }
 0x13a   : > { %s721_s14 = smul.u32 28, %s1089_s20 }
 0x13c   : > { %s500_s17 = scalar_lea.vmem %s1060_s12, %s721_s14 [#allocation2]   ;;  %s502_s18 = scalar_lea.vmem %s1083_s6, %s721_s14  }
 0x142   : > { %s869_s21 = spop.drf %868 }
 0x143   : > { %p723_p13 = scmp.le.s32.totalorder %s869_s21, 0 }
 0x144   : > { %s942_s22 = smov (!%p723_p13), %s502_s18   ;;  %s946_s24 = smov (!%p723_p13), %s500_s17  }
 0x145   : > { %651 = sbr.rel (%p723_p13) target bundleno = 342 (0x156), region = 123  ;;  %s950_s25 = smov (!%p723_p13), 0  }
 0x146   : > { %s954_s26 = smov (!%p723_p13), 0  }
 0x14c LB: >> { %v512_v0 = vld [vmem:[%s948_s24] sm:$0xf]  ;;  %s514_s27 = sadd.s32 1, %s952_s25  ;;  %s506_s26 = sadd.s32 1, %s956_s26   ;;  %s956_s26 = sphi %s954_s26, %s506_s26   ;;  %s952_s25 = sphi %s950_s25, %s951_s25   ;;  %s948_s24 = sphi %s946_s24, %s519_s24   ;;  %s944_s22 = sphi %s942_s22, %s520_s22  }
 0x14d   : >> { %513 = vst [vmem:[%s944_s22] sm:$0xf] %v512_v0  ;;  %p515_p0 = scmp.ge.s32.totalorder %s514_s27, %s869_s21  ;;  %p505_p1 = scmp.ge.s32.totalorder %s506_s26, %s869_s21 }
 0x14f   : >> { %s1148_s27 = smov (%p515_p0, %s514_s27), 0  ;;  %508 = sbr.rel (!%p505_p1) target bundleno = 332 (0x14c), region = 129 }
 0x150   : >> { %s724_s28 = sshll.u32 %s1148_s27, 2  ;;  %s951_s25 = smov %s1148_s27  }
 0x151   : >> { %s519_s24 = scalar_lea.vmem %s500_s17, %s724_s28 [#allocation2]   ;;  %s520_s22 = scalar_lea.vmem %s502_s18, %s724_s28  }
 0x156 PF: > { %p10_p2 = scmp.ge.s32.totalorder %s994_s16, 4   ;;  %s1140_s12 = smov %s920_s13 }
 0x157   : > { %s1141_s13 = smov %s1002_s19  ;;  %s1142_s14 = smov %s994_s16 }
 0x158   :  { %12 = sbr.rel (!%p10_p2) target bundleno = 2 (0x2), region = 140 }

// kernel: dae_forward.8
= control target key start
LH: loop header
LB: loop body
LE: loop exit
PB: predicated region body
PF: predicated region fallthrough
CT: control target
= control target key end

     0   :  { %s952_s12 = smov 0   ;;  %s954_s13 = smov 0   ;;  %s1095_s0 = inlined_call_operand.vmem [shape: bf16[98,128], index: 0, kind: input, shape index: {}]   ;;  %s1096_s1 = inlined_call_operand.vmem [shape: bf16[128,64], index: 1, kind: input, shape index: {}]   ;;  %s1097_s2 = inlined_call_operand.vmem [shape: f32[1,64], index: 2, kind: input, shape index: {}]   ;;  %s1098_s3 = inlined_call_operand.vmem [shape: bf16[98,64], index: 3, kind: output, shape index: {}]  }
   0x1   :  { %s956_s14 = smov 0  }
   0x2 LB: > { %s965_s15 = sadd.s32 4294967295, %s898_s14   ;;  %s967_s16 = sadd.s32 1, %s898_s14   ;;  %s898_s14 = sphi %s956_s14, %s1105_s14   ;;  %s894_s13 = sphi %s954_s13, %s1104_s13   ;;  %s890_s12 = sphi %s952_s12, %s1103_s12  }
   0x3   : > { %s85_s17 = ssub.s32 %s898_s14, %s967_s16  ;;  %s88_s18 = sadd.s32 1, %s894_s13 }
   0x4   : > { %p86_p0 = scmp.eq.s32.totalorder %s85_s17, 0  ;;  %p98_p1 = scmp.ne.s32.totalorder %s894_s13, %s890_s12 }
   0x5   : > { %p99_p2 = scmp.eq.s32.totalorder %s965_s15, 1  ;;  %p644_p3 = scmp.ge.s32.totalorder %s898_s14, 1 }
   0x6   : > { %s975_s19 = scalar_select %p86_p0, %s894_s13, %s88_s18  }
   0x7   : > { %p977_p4 = por %p99_p2, %p98_p1  ;;  %p146_p5 = scmp.lt.s32.totalorder %s898_s14, 3 }
   0x9   : > { %p147_p6 = pnand %p644_p3, %p146_p5 }
   0xa   : > { %v828_v0 = vld [vmem:[%s1096_s1] sm:$0xff] (!%p147_p6)   ;;  %s985_s23 = smul.u32 (!%p147_p6), 7, %s965_s15  ;;  %v829_v1 = vld [vmem:[%s1096_s1 + $0x8] sm:$0xff] (!%p147_p6)   ;;  %v830_v2 = vld [vmem:[%s1096_s1 + $0x10] sm:$0xff] (!%p147_p6)   ;;  %s170_s22 = sand.u32 (!%p147_p6), 1, %s890_s12   ;;  %vm393_vm0 = vcmask (!%p147_p6), 519168  }
   0xb   : > { %150 = sbr.rel (%p147_p6) target bundleno = 331 (0x14b), region = 32  ;;  %698 = vmatprep.subr.bf16.mxu0 (!%p147_p6), %v828_v0  ;;  %722 = vmatprep.subr.bf16.mxu1 (!%p147_p6), %v828_v0  ;;  %v831_v3 = vld [vmem:[%s1096_s1 + $0x18] sm:$0xff] (!%p147_p6)   ;;  %v832_v6 = vld [vmem:[%s1096_s1 + $0x20] sm:$0xff] (!%p147_p6)   ;;  %v833_v7 = vld [vmem:[%s1096_s1 + $0x28] sm:$0xff] (!%p147_p6)  }
   0xc   : > { %p178_p7 = scmp.lt.s32.totalorder (!%p147_p6), %s985_s23, 12  ;;  %699 = vmatpush3.bf16.msra.mxu0 (!%p147_p6), %v828_v0  ;;  %730 = vmatpush3.bf16.msra.mxu1 (!%p147_p6), %v828_v0  ;;  %v834_v8 = vld [vmem:[%s1096_s1 + $0x30] sm:$0xff] (!%p147_p6)   ;;  %v835_v9 = vld [vmem:[%s1096_s1 + $0x38] sm:$0xff] (!%p147_p6)   ;;  %v646_v12 = vld [vmem:[%s1097_s2] ss:$0 sm:$0xff] (!%p147_p6)  ;;  %s738_s26 = smul.u32 (!%p147_p6), 28, %s170_s22 }
   0xd   : > { %700 = vmatprep.subr.bf16.mxu0 (!%p147_p6), %v829_v1  ;;  %723 = vmatprep.subr.bf16.mxu1 (!%p147_p6), %v829_v1 }
   0xe   : > { %s1023_s12 = scalar_lea.vmem (!%p147_p6), [#allocation2], %s738_s26  }
  0x10   : > { %701 = vmatpush3.bf16.msra.mxu0 (!%p147_p6), %v829_v1  ;;  %731 = vmatpush3.bf16.msra.mxu1 (!%p147_p6), %v829_v1 }
  0x11   : > { %702 = vmatprep.subr.bf16.mxu0 (!%p147_p6), %v830_v2  ;;  %724 = vmatprep.subr.bf16.mxu1 (!%p147_p6), %v830_v2 }
  0x12   : > { %s179_s28 = scalar_select %p178_p7, %s985_s23, 12 }
  0x13   : > { %s409_s27 = ssub.s32 (%p977_p4), 13, %s985_s23 }
  0x14   : > { %s645_s29 = sshll.u32 %s179_s28, 2  ;;  %703 = vmatpush3.bf16.msra.mxu0 %v830_v2  ;;  %732 = vmatpush3.bf16.msra.mxu1 %v830_v2  ;;  %s685_s28 = smul.u32 (%p977_p4), 28, %s965_s15 }
  0x15   : > { %s1001_s7 = scalar_lea.vmem %s1095_s0, %s645_s29  ;;  %704 = vmatprep.subr.bf16.mxu0 %v831_v3  ;;  %725 = vmatprep.subr.bf16.mxu1 %v831_v3  ;;  %p410_p8 = scmp.lt.s32.totalorder (%p977_p4), %s409_s27, 7 }
  0x16   : > { %v836_v4 = vld [vmem:[%s1001_s7] sm:$0xff]   ;;  %v837_v5 = vld [vmem:[%s1001_s7 + $0x10] sm:$0xff]   ;;  %v838_v10 = vld [vmem:[%s1001_s7 + $0x8] sm:$0xff]   ;;  %s1046_s4 = scalar_lea.vmem (%p977_p4), %s1098_s3, %s685_s28  }
  0x17   : > { %714 = vmatprep.mubr.bf16.mxu0 %v836_v4  ;;  %718 = vmatprep.mubr.bf16.mxu1 %v837_v5  ;;  %v839_v11 = vld [vmem:[%s1001_s7 + $0x18] ss:$0 sps:$4 sm:$0xff]  }
  0x18   : > { %705 = vmatpush3.bf16.msra.mxu0 %v831_v3  ;;  %733 = vmatpush3.bf16.msra.mxu1 %v831_v3 }
  0x19   : > { %706 = vmatprep.subr.bf16.mxu0 %v832_v6  ;;  %726 = vmatprep.subr.bf16.mxu1 %v832_v6 }
  0x1c   : > { %707 = vmatpush3.bf16.msra.mxu0 %v832_v6  ;;  %734 = vmatpush3.bf16.msra.mxu1 %v832_v6 }
  0x1d   : > { %708 = vmatprep.subr.bf16.mxu0 %v833_v7  ;;  %727 = vmatprep.subr.bf16.mxu1 %v833_v7 }
  0x20   : > { %709 = vmatpush3.bf16.msra.mxu0 %v833_v7  ;;  %735 = vmatpush3.bf16.msra.mxu1 %v833_v7 }
  0x21   : > { %710 = vmatprep.subr.bf16.mxu0 %v834_v8  ;;  %728 = vmatprep.subr.bf16.mxu1 %v834_v8 }
  0x24   : > { %711 = vmatpush3.bf16.msra.mxu0 %v834_v8  ;;  %736 = vmatpush3.bf16.msra.mxu1 %v834_v8 }
  0x25   : > { %712 = vmatprep.subr.bf16.mxu0 %v835_v9  ;;  %729 = vmatprep.subr.bf16.mxu1 %v835_v9 }
  0x28   : > { %713 = vmatpush3.bf16.msra.mxu0 %v835_v9  ;;  %737 = vmatpush3.bf16.msra.mxu1 %v835_v9 }
  0x2b   : > { %715 = vmatmul.mubr.bf16.vlgmr.msra.gmra.mrb[0].mxu0 %v838_v10  ;;  %719 = vmatmul.mubr.bf16.vlgmr.msra.gmra.mrb[0].mxu1 %v839_v11 }
  0xfe   : > { %v716_v13 = vpop.f32.mrb[0].mxu0  ;;  %v720_v14 = vpop.f32.mrb[0].mxu1 }
  0xff   : > { %v336_v15 = vadd.f32 %v716_v13, %v646_v12  ;;  %v352_v16 = vadd.f32 %v720_v14, %v646_v12  ;;  %v327_v17 = vpop.f32.mrb[1].mxu0  ;;  %v343_v18 = vpop.f32.mrb[1].mxu1 }
 0x100   : > { %v328_v19 = vadd.f32 %v646_v12, %v327_v17  ;;  %v344_v20 = vadd.f32 %v646_v12, %v343_v18  ;;  %v717_v21 = vpop.f32.mrb[2].mxu0  ;;  %v721_v22 = vpop.f32.mrb[2].mxu1 }
 0x101   : > { %v359_v23 = vmax.f32 %v336_v15, 0.0  ;;  %v363_v24 = vmax.f32 %v352_v16, 0.0  ;;  %v339_v25 = vadd.f32 %v717_v21, %v646_v12  ;;  %v330_v26 = vpop.f32.mrb[3].mxu0  ;;  %v346_v27 = vpop.f32.mrb[3].mxu1 }
 0x102   : > { %v357_v28 = vmax.f32 %v328_v19, 0.0  ;;  %v361_v29 = vmax.f32 %v344_v20, 0.0  ;;  %v331_v30 = vadd.f32 %v646_v12, %v330_v26  ;;  %v347_v31 = vadd.f32 %v646_v12, %v346_v27  ;;  %407 = sbr.rel (!%p977_p4) target bundleno = 331 (0x14b), region = 36 }
 0x103   : > { %v680_v32 = vpack.c.bf16 %v359_v23, %v359_v23  ;;  %v684_v33 = vpack.c.bf16 %v363_v24, %v363_v24  ;;  %v360_v34 = vmax.f32 %v339_v25, 0.0 }
 0x104   : > { %v678_v35 = vpack.c.bf16 %v357_v28, %v357_v28  ;;  %v682_v36 = vpack.c.bf16 %v361_v29, %v361_v29  ;;  %v358_v37 = vmax.f32 %v331_v30, 0.0  ;;  %v362_v38 = vmax.f32 %v347_v31, 0.0 }
 0x105   : > { %396 = vst.msk [vmem:[%s1023_s12 + $0x8] sm:$0xf] %vm393_vm0, %v680_v32  ;;  %400 = vst.msk [vmem:[%s1023_s12 + $0x18] sm:$0xf] %vm393_vm0, %v684_v33  ;;  %v681_v39 = vpack.c.bf16 %v360_v34, %v360_v34 }
 0x106   : > { %394 = vst.msk [vmem:[%s1023_s12] sm:$0xf] %vm393_vm0, %v678_v35  ;;  %398 = vst.msk [vmem:[%s1023_s12 + $0x10] sm:$0xf] %vm393_vm0, %v682_v36  ;;  %v679_v40 = vpack.c.bf16 %v358_v37, %v358_v37  ;;  %v683_v41 = vpack.c.bf16 %v362_v38, %v362_v38 }
 0x107   : > { %397 = vst.msk [vmem:[%s1023_s12 + $0xc] sm:$0xf] %vm393_vm0, %v681_v39 }
 0x108   : > { %395 = vst.msk [vmem:[%s1023_s12 + $0x4] sm:$0xf] %vm393_vm0, %v679_v40  ;;  %399 = vst.msk [vmem:[%s1023_s12 + $0x14] sm:$0xf] %vm393_vm0, %v683_v41 }
 0x109   : > { %s1107_s27 = smov (!%p410_p8, %s409_s27), 7 }
 0x10a   : > { %s666_s5 = sshll.u32 %s1107_s27, 6 }
 0x10b   : > { %p669_p9 = scmp.eq.s32.totalorder %s666_s5, 0 }
 0x10c   : > { %840 = sdivrem.u32 (!%p669_p9), %s1107_s27, 7 }
 0x10d   : > { %418 = sbr.rel (%p669_p9) target bundleno = 331 (0x14b), region = 40 }
 0x115   : > { %s1052_s20 = spop.drf %840 }
 0x116   : > { %p670_p10 = scmp.le.s32.totalorder %s1052_s20, 0 }
 0x117   : > { %s1100_s15 = smov (!%p670_p10), %s1046_s4  ;;  %s1101_s23 = smov (!%p670_p10), %s1023_s12 }
 0x118   : > { %597 = sbr.rel (%p670_p10) target bundleno = 302 (0x12e), region = 112  ;;  %s1061_s6 = smov (!%p670_p10), 0  }
 0x119   : > { %s1063_s7 = smov (!%p670_p10), 0  }
 0x11f LB: >> { %v435_v42 = vld [vmem:[%s906_s23] sm:$0xf]  ;;  %v437_v43 = vld [vmem:[%s906_s23 + $0x4] sm:$0xf]  ;;  %v439_v44 = vld [vmem:[%s906_s23 + $0x8] sm:$0xf]  ;;  %s914_s7 = sphi %s1063_s7, %s429_s7   ;;  %s910_s6 = sphi %s1061_s6, %s1102_s6   ;;  %s906_s23 = sphi %s1101_s23, %s454_s23   ;;  %s902_s15 = sphi %s1100_s15, %s455_s15  }
 0x120   : >> { %436 = vst [vmem:[%s902_s15] sm:$0xf] %v435_v42  ;;  %438 = vst [vmem:[%s902_s15 + $0x4] sm:$0xf] %v437_v43  ;;  %v441_v45 = vld [vmem:[%s906_s23 + $0xc] sm:$0xf]  ;;  %s449_s8 = sadd.s32 1, %s910_s6 }
 0x121   : >> { %440 = vst [vmem:[%s902_s15 + $0x8] sm:$0xf] %v439_v44  ;;  %v443_v46 = vld [vmem:[%s906_s23 + $0x10] sm:$0xf]  ;;  %v445_v47 = vld [vmem:[%s906_s23 + $0x14] sm:$0xf]  ;;  %p450_p11 = scmp.ge.s32.totalorder %s449_s8, %s1052_s20 }
 0x122   : >> { %442 = vst [vmem:[%s902_s15 + $0xc] sm:$0xf] %v441_v45  ;;  %444 = vst [vmem:[%s902_s15 + $0x10] sm:$0xf] %v443_v46  ;;  %v447_v48 = vld [vmem:[%s906_s23 + $0x18] sm:$0xf] }
 0x123   : >> { %446 = vst [vmem:[%s902_s15 + $0x14] sm:$0xf] %v445_v47  ;;  %448 = vst [vmem:[%s902_s15 + $0x18] sm:$0xf] %v447_v48  ;;  %s1109_s8 = smov (%p450_p11, %s449_s8), 0  ;;  %s429_s7 = sadd.s32 1, %s914_s7  }
 0x124   : >> { %s452_s9 = smul.u32 28, %s1109_s8  ;;  %p428_p12 = scmp.ge.s32.totalorder %s429_s7, %s1052_s20 }
 0x125   : >> { %s1102_s6 = smov %s1109_s8 }
 0x126   : >> { %s454_s23 = scalar_lea.vmem %s1023_s12, %s452_s9 [#allocation2]   ;;  %s455_s15 = scalar_lea.vmem %s1046_s4, %s452_s9  }
 0x127   : > { %431 = sbr.rel (!%p428_p12) target bundleno = 287 (0x11f), region = 118 }
 0x12e PF: > { %842 = sdivrem.u32 %s1107_s27, 7 }
 0x12f   : > { %s671_s10 = smul.u32 28, %s1052_s20 }
 0x131   : > { %s460_s11 = scalar_lea.vmem %s1023_s12, %s671_s10 [#allocation2]   ;;  %s462_s14 = scalar_lea.vmem %s1046_s4, %s671_s10  }
 0x137   : > { %s843_s17 = spop.drf %842 }
 0x138   : > { %p673_p13 = scmp.le.s32.totalorder %s843_s17, 0 }
 0x139   : > { %s916_s18 = smov (!%p673_p13), %s462_s14   ;;  %s920_s21 = smov (!%p673_p13), %s460_s11  }
 0x13a   : > { %611 = sbr.rel (%p673_p13) target bundleno = 331 (0x14b), region = 123  ;;  %s924_s22 = smov (!%p673_p13), 0  }
 0x13b   : > { %s928_s24 = smov (!%p673_p13), 0  }
 0x141 LB: >> { %v472_v49 = vld [vmem:[%s922_s21] sm:$0xf]  ;;  %s474_s25 = sadd.s32 1, %s926_s22  ;;  %s466_s24 = sadd.s32 1, %s930_s24   ;;  %s930_s24 = sphi %s928_s24, %s466_s24   ;;  %s926_s22 = sphi %s924_s22, %s925_s22   ;;  %s922_s21 = sphi %s920_s21, %s479_s21   ;;  %s918_s18 = sphi %s916_s18, %s480_s18  }
 0x142   : >> { %473 = vst [vmem:[%s918_s18] sm:$0xf] %v472_v49  ;;  %p475_p0 = scmp.ge.s32.totalorder %s474_s25, %s843_s17  ;;  %p465_p1 = scmp.ge.s32.totalorder %s466_s24, %s843_s17 }
 0x144   : >> { %s1111_s25 = smov (%p475_p0, %s474_s25), 0  ;;  %468 = sbr.rel (!%p465_p1) target bundleno = 321 (0x141), region = 129 }
 0x145   : >> { %s674_s26 = sshll.u32 %s1111_s25, 2  ;;  %s925_s22 = smov %s1111_s25  }
 0x146   : >> { %s479_s21 = scalar_lea.vmem %s460_s11, %s674_s26 [#allocation2]   ;;  %s480_s18 = scalar_lea.vmem %s462_s14, %s674_s26  }
 0x14b PF: > { %p10_p2 = scmp.ge.s32.totalorder %s967_s16, 4   ;;  %s1103_s12 = smov %s894_s13 }
 0x14c   : > { %s1104_s13 = smov %s975_s19  ;;  %s1105_s14 = smov %s967_s16 }
 0x14d   :  { %12 = sbr.rel (!%p10_p2) target bundleno = 2 (0x2), region = 140 }

// kernel: dae_forward.7
= control target key start
LH: loop header
LB: loop body
LE: loop exit
PB: predicated region body
PF: predicated region fallthrough
CT: control target
= control target key end

     0   :  { %v2529_v22 = vmov 1966171168   ;;  %v232_v24 = vlaneseq  ;;  %vm2531_vm0 = vmmov 0   ;;  %vm916_vm1 = vcmask 261120   ;;  %s3132_s1 = inlined_call_operand.vmem [shape: bf16[1568,64], index: 1, kind: input, shape index: {}]   ;;  %s3133_s0 = inlined_call_operand.vmem [shape: bf16[2,1568], index: 0, kind: input, shape index: {}]   ;;  %s3134_s3 = inlined_call_operand.vmem [shape: bf16[64,1568], index: 3, kind: input, shape index: {}]   ;;  %s3135_s2 = inlined_call_operand.vmem [shape: f32[1,64], index: 2, kind: input, shape index: {}]   ;;  %s3136_s4 = inlined_call_operand.vmem [shape: f32[1,1568], index: 4, kind: input, shape index: {}]   ;;  %s3137_s5 = inlined_call_operand.vmem [shape: bf16[2,1568], index: 5, kind: output, shape index: {}]  }
   0x1   :  { %v2353_v0 = vld [vmem:[%s3132_s1 + $0x40] sm:$0xff]   ;;  %v2357_v4 = vld [vmem:[%s3132_s1 + $0x48] sm:$0xff]   ;;  %v2361_v8 = vld [vmem:[%s3132_s1 + $0x50] sm:$0xff]   ;;  %v230_v23 = vunpack.c.l.s4 %v2529_v22  ;;  %vm1590_vm2 = vcmask 523264   ;;  %vm2010_vm3 = vcmask 1040384   ;;  %vm2011_vm4 = vcmask 1041409  }
   0x2   :  { %v2354_v1 = vld [vmem:[%s3132_s1] sm:$0xff]   ;;  %2189 = vmatprep.subr.bf16.mxu0 %v2353_v0  ;;  %v2358_v5 = vld [vmem:[%s3132_s1 + $0x8] sm:$0xff]   ;;  %v2362_v9 = vld [vmem:[%s3132_s1 + $0x10] sm:$0xff]   ;;  %v2641_v30 = vshrl.u32 %v232_v24, 7  ;;  %vm2013_vm6 = vcmask 1042434   ;;  %vm2015_vm8 = vcmask 1043459  }
   0x3   :  { %v2355_v2 = vld [vmem:[%s3132_s1 + $0xc0] sm:$0xff]   ;;  %2190 = vmatpush3.bf16.msra.mxu0 %v2354_v1  ;;  %v2359_v6 = vld [vmem:[%s3132_s1 + $0xc8] sm:$0xff]   ;;  %v2363_v10 = vld [vmem:[%s3132_s1 + $0xd0] sm:$0xff]   ;;  %v231_v29 = vunpack.c.0.s8 %v230_v23  ;;  %vm2017_vm10 = vcmask 258052  }
   0x4   :  { %v2356_v3 = vld [vmem:[%s3132_s1 + $0x80] sm:$0xff]   ;;  %2211 = vmatprep.subr.bf16.mxu1 %v2355_v2  ;;  %2191 = vmatprep.subr.bf16.mxu0 %v2357_v4  ;;  %v2360_v7 = vld [vmem:[%s3132_s1 + $0x88] sm:$0xff]   ;;  %v2364_v11 = vld [vmem:[%s3132_s1 + $0x90] sm:$0xff]  }
   0x5   :  { %2212 = vmatpush3.bf16.msra.mxu1 %v2356_v3  ;;  %v2365_v12 = vld [vmem:[%s3132_s1 + $0x58] sm:$0xff]   ;;  %v2369_v16 = vld [vmem:[%s3132_s1 + $0x60] sm:$0xff]   ;;  %v2373_v20 = vld [vmem:[%s3132_s1 + $0x68] sm:$0xff]   ;;  %v2656_v35 = vsub.s32 %v231_v29, %v2641_v30 }
   0x6   :  { %2213 = vmatprep.subr.bf16.mxu1 %v2359_v6  ;;  %v2366_v13 = vld [vmem:[%s3132_s1 + $0x18] sm:$0xff]   ;;  %v2370_v17 = vld [vmem:[%s3132_s1 + $0x20] sm:$0xff]   ;;  %v2374_v21 = vld [vmem:[%s3132_s1 + $0x28] sm:$0xff]  }
   0x7   :  { %2192 = vmatpush3.bf16.msra.mxu0 %v2358_v5  ;;  %v2367_v14 = vld [vmem:[%s3132_s1 + $0xd8] sm:$0xff]   ;;  %v2371_v18 = vld [vmem:[%s3132_s1 + $0xe0] sm:$0xff]   ;;  %v2375_v25 = vld [vmem:[%s3132_s1 + $0xe8] sm:$0xff]  }
   0x8   :  { %2193 = vmatprep.subr.bf16.mxu0 %v2361_v8  ;;  %v2368_v15 = vld [vmem:[%s3132_s1 + $0x98] sm:$0xff]   ;;  %v2372_v19 = vld [vmem:[%s3132_s1 + $0xa0] sm:$0xff]   ;;  %v2376_v26 = vld [vmem:[%s3132_s1 + $0xa8] sm:$0xff]  }
   0x9   :  { %2214 = vmatpush3.bf16.msra.mxu1 %v2360_v7  ;;  %v2377_v27 = vld [vmem:[%s3132_s1 + $0x70] sm:$0xff]   ;;  %v2381_v33 = vld [vmem:[%s3132_s1 + $0x78] sm:$0xff]   ;;  %v21_v38 = vld [vmem:[%s3133_s0] sm:$0xff] }
   0xa   :  { %2215 = vmatprep.subr.bf16.mxu1 %v2363_v10  ;;  %v2378_v28 = vld [vmem:[%s3132_s1 + $0x30] sm:$0xff]   ;;  %v2382_v34 = vld [vmem:[%s3132_s1 + $0x38] sm:$0xff]   ;;  %v228_v39 = vcombine.high %v21_v38, %v21_v38  ;;  %v235_v40 = vrot.slane %v21_v38, %v2656_v35  ;;  %v2387_v41 = vld [vmem:[%s3132_s1 + $0x140] sm:$0xff]  }
   0xb   :  { %2194 = vmatpush3.bf16.msra.mxu0 %v2362_v9  ;;  %v2379_v31 = vld [vmem:[%s3132_s1 + $0xf0] sm:$0xff]   ;;  %v2383_v36 = vld [vmem:[%s3132_s1 + $0xf8] sm:$0xff]   ;;  %v2389_v44 = vld [vmem:[%s3132_s1 + $0x1c0] sm:$0xff]  }
   0xc   :  { %2195 = vmatprep.subr.bf16.mxu0 %v2365_v12  ;;  %v2380_v32 = vld [vmem:[%s3132_s1 + $0xb0] sm:$0xff]   ;;  %v2384_v37 = vld [vmem:[%s3132_s1 + $0xb8] sm:$0xff]   ;;  %v243_v42 = vcombine.high %v235_v40, %v235_v40  ;;  %v251_v43 = vrot.slane %v235_v40, %v2656_v35  ;;  %v2676_v45 = vrot.slane %v228_v39, %v2656_v35  ;;  %v2388_v47 = vld [vmem:[%s3132_s1 + $0x100] sm:$0xff]  }
   0xd   :  { %2216 = vmatpush3.bf16.msra.mxu1 %v2364_v11  ;;  %v2391_v50 = vld [vmem:[%s3132_s1 + $0x148] sm:$0xff]   ;;  %v2390_v52 = vld [vmem:[%s3132_s1 + $0x180] sm:$0xff]   ;;  %v2395_v57 = vld [vmem:[%s3132_s1 + $0x150] sm:$0xff]  }
   0xe   :  { %2217 = vmatprep.subr.bf16.mxu1 %v2367_v14  ;;  %v265_v46 = vrot.slane %v243_v42, %v2656_v35  ;;  %v244_v48 = vcombine.high %v2676_v45, %v2676_v45  ;;  %v273_v49 = vcombine.high %v251_v43, %v251_v43  ;;  %v2393_v54 = vld [vmem:[%s3132_s1 + $0x1c8] sm:$0xff]   ;;  %v2397_v59 = vld [vmem:[%s3132_s1 + $0x1d0] sm:$0xff]   ;;  %v2399_v61 = vld [vmem:[%s3132_s1 + $0x158] sm:$0xff]  }
   0xf   :  { %2196 = vmatpush3.bf16.msra.mxu0 %v2366_v13  ;;  %v2392_v55 = vld [vmem:[%s3132_s1 + $0x108] sm:$0xff]   ;;  %v2396_v60 = vld [vmem:[%s3132_s1 + $0x110] sm:$0xff]   ;;  %v2401_v63 = vld [vmem:[%s3132_s1 + $0x1d8] sm:$0xff]  }
  0x10   :  { %2197 = vmatprep.subr.bf16.mxu0 %v2369_v16  ;;  %952 = vmatprep.mubr.bf16.mxu0 %v265_v46  ;;  %v275_v51 = vcombine.high %v265_v46, %v265_v46  ;;  %v272_v53 = vrot.slane %v244_v48, %v2656_v35  ;;  %v2394_v58 = vld [vmem:[%s3132_s1 + $0x188] sm:$0xff]   ;;  %v2398_v62 = vld [vmem:[%s3132_s1 + $0x190] sm:$0xff]   ;;  %v2400_v0 = vld [vmem:[%s3132_s1 + $0x118] sm:$0xff]  }
  0x11   :  { %2218 = vmatpush3.bf16.msra.mxu1 %v2368_v15  ;;  %v2403_v1 = vld [vmem:[%s3132_s1 + $0x160] sm:$0xff]   ;;  %v2402_v2 = vld [vmem:[%s3132_s1 + $0x198] sm:$0xff]   ;;  %v2736_v5 = vld [vmem:[%s3133_s0 + $0x8] sm:$0x1f] }
  0x12   :  { %2219 = vmatprep.subr.bf16.mxu1 %v2371_v18  ;;  %992 = vmatprep.mubr.bf16.mxu1 %v275_v51  ;;  %v276_v56 = vcombine.high %v272_v53, %v272_v53  ;;  %v2405_v3 = vld [vmem:[%s3132_s1 + $0x1e0] sm:$0xff]   ;;  %v2407_v6 = vld [vmem:[%s3132_s1 + $0x168] sm:$0xff]   ;;  %v2411_v10 = vld [vmem:[%s3132_s1 + $0x170] sm:$0xff]   ;;  %v2758_v12 = vrot.slane %v2736_v5, %v2656_v35 }
  0x13   :  { %2198 = vmatpush3.bf16.msra.mxu0 %v2370_v17  ;;  %v2404_v4 = vld [vmem:[%s3132_s1 + $0x120] sm:$0xff]   ;;  %v2409_v8 = vld [vmem:[%s3132_s1 + $0x1e8] sm:$0xff]   ;;  %v2413_v13 = vld [vmem:[%s3132_s1 + $0x1f0] sm:$0xff]  }
  0x14   :  { %2199 = vmatprep.subr.bf16.mxu0 %v2373_v20  ;;  %v2406_v7 = vld [vmem:[%s3132_s1 + $0x1a0] sm:$0xff]   ;;  %v2408_v9 = vld [vmem:[%s3132_s1 + $0x128] sm:$0xff]   ;;  %v2412_v14 = vld [vmem:[%s3132_s1 + $0x130] sm:$0xff]   ;;  %v292_v17 = vcombine.high %v2758_v12, %v2758_v12  ;;  %v258_v20 = vrot.slane %v2676_v45, %v2656_v35 }
  0x15   :  { %2220 = vmatpush3.bf16.msra.mxu1 %v2372_v19  ;;  %v2410_v11 = vld [vmem:[%s3132_s1 + $0x1a8] sm:$0xff]   ;;  %v2415_v15 = vld [vmem:[%s3132_s1 + $0x178] sm:$0xff]   ;;  %v2414_v16 = vld [vmem:[%s3132_s1 + $0x1b0] sm:$0xff]  }
  0x16   :  { %2221 = vmatprep.subr.bf16.mxu1 %v2375_v25  ;;  %v2417_v18 = vld [vmem:[%s3132_s1 + $0x1f8] sm:$0xff]   ;;  %v313_v23 = vrot.slane %v292_v17, %v2656_v35  ;;  %v2421_v24 = vld [vmem:[%s3132_s1 + $0x2c0] sm:$0xff]   ;;  %v2430_v39 = vld [vmem:[%s3132_s1 + $0x290] sm:$0xff]  }
  0x17   :  { %2200 = vmatpush3.bf16.msra.mxu0 %v2374_v21  ;;  %v2416_v19 = vld [vmem:[%s3132_s1 + $0x138] sm:$0xff]   ;;  %v2419_v21 = vld [vmem:[%s3132_s1 + $0x240] sm:$0xff]   ;;  %v2439_v46 = vld [vmem:[%s3132_s1 + $0x268] sm:$0xff]  }
  0x18   :  { %2201 = vmatprep.subr.bf16.mxu0 %v2377_v27  ;;  %v2418_v22 = vld [vmem:[%s3132_s1 + $0x1b8] sm:$0xff]   ;;  %v2420_v25 = vld [vmem:[%s3132_s1 + $0x200] sm:$0xff]   ;;  %v2423_v27 = vld [vmem:[%s3132_s1 + $0x248] sm:$0xff]   ;;  %v315_v29 = vcombine.high %v313_v23, %v313_v23 }
  0x19   :  { %2222 = vmatpush3.bf16.msra.mxu1 %v2376_v26  ;;  %v274_v26 = vcombine.high %v258_v20, %v258_v20  ;;  %v2431_v38 = vld [vmem:[%s3132_s1 + $0x258] sm:$0xff]   ;;  %v2435_v42 = vld [vmem:[%s3132_s1 + $0x260] sm:$0xff]   ;;  %v2441_v48 = vld [vmem:[%s3132_s1 + $0x2e8] sm:$0xff]  }
  0x1a   :  { %2223 = vmatprep.subr.bf16.mxu1 %v2379_v31  ;;  %v2425_v31 = vld [vmem:[%s3132_s1 + $0x2c8] sm:$0xff]   ;;  %v2433_v40 = vld [vmem:[%s3132_s1 + $0x2d8] sm:$0xff]   ;;  %v2436_v45 = vld [vmem:[%s3132_s1 + $0x220] sm:$0xff]  }
  0x1b   :  { %2202 = vmatpush3.bf16.msra.mxu0 %v2378_v28  ;;  %v2422_v28 = vld [vmem:[%s3132_s1 + $0x280] sm:$0xff]   ;;  %v2442_v51 = vld [vmem:[%s3132_s1 + $0x2a8] sm:$0xff]   ;;  %vm2012_vm5 = vmor %vm2011_vm4, %vm2010_vm3 }
  0x1c   :  { %2203 = vmatprep.subr.bf16.mxu0 %v2381_v33  ;;  %v2427_v33 = vld [vmem:[%s3132_s1 + $0x250] sm:$0xff]   ;;  %v2471_v17 = vld [vmem:[%s3134_s3 + $0x138] ss:$52 sps:$4 sm:$0xff]   ;;  %vm2014_vm7 = vmor %vm2013_vm6, %vm2012_vm5 }
  0x1d   :  { %2224 = vmatpush3.bf16.msra.mxu1 %v2380_v32  ;;  %v2424_v32 = vld [vmem:[%s3132_s1 + $0x208] sm:$0xff]   ;;  %vm2016_vm9 = vmor %vm2015_vm8, %vm2014_vm7 }
  0x1e   :  { %2225 = vmatprep.subr.bf16.mxu1 %v2383_v36  ;;  %v2429_v36 = vld [vmem:[%s3132_s1 + $0x2d0] sm:$0xff]   ;;  %vm2018_vm11 = vmor %vm2017_vm10, %vm2016_vm9 }
  0x1f   :  { %2204 = vmatpush3.bf16.msra.mxu0 %v2382_v34  ;;  %v2426_v34 = vld [vmem:[%s3132_s1 + $0x288] sm:$0xff]  }
  0x20   :  { %2233 = vmatprep.subr.bf16.mxu0 %v2387_v41  ;;  %v2432_v41 = vld [vmem:[%s3132_s1 + $0x218] sm:$0xff]  }
  0x21   :  { %2226 = vmatpush3.bf16.msra.mxu1 %v2384_v37  ;;  %v2428_v37 = vld [vmem:[%s3132_s1 + $0x210] sm:$0xff]  }
  0x22   :  { %2255 = vmatprep.subr.bf16.mxu1 %v2389_v44  ;;  %953 = vmatmul.mubr.bf16.vlgmr.msra.gmra.mrb[0].mxu0 %v251_v43  ;;  %v2434_v43 = vld [vmem:[%s3132_s1 + $0x298] sm:$0xff]   ;;  %v2437_v44 = vld [vmem:[%s3132_s1 + $0x2e0] sm:$0xff]  }
  0x23   :  { %2234 = vmatpush3.bf16.msra.mxu0 %v2388_v47  ;;  %1032 = vmatprep.mubr.bf16.mxu0 %v272_v53  ;;  %v2438_v47 = vld [vmem:[%s3132_s1 + $0x2a0] sm:$0xff]   ;;  %v2444_v53 = vld [vmem:[%s3132_s1 + $0x230] sm:$0xff]  }
  0x24   :  { %993 = vmatmul.mubr.bf16.vlgmr.msra.gmra.mrb[0].mxu1 %v273_v49  ;;  %2235 = vmatprep.subr.bf16.mxu0 %v2391_v50  ;;  %v2440_v49 = vld [vmem:[%s3132_s1 + $0x228] sm:$0xff]   ;;  %v2443_v50 = vld [vmem:[%s3132_s1 + $0x270] sm:$0xff]  }
  0x25   :  { %2256 = vmatpush3.bf16.msra.mxu1 %v2390_v52  ;;  %1072 = vmatprep.mubr.bf16.mxu1 %v276_v56  ;;  %v2445_v52 = vld [vmem:[%s3132_s1 + $0x2f0] sm:$0xff]   ;;  %v2449_v56 = vld [vmem:[%s3132_s1 + $0x2f8] sm:$0xff]  }
  0x26   :  { %2257 = vmatprep.subr.bf16.mxu1 %v2393_v54  ;;  %v2447_v54 = vld [vmem:[%s3132_s1 + $0x278] sm:$0xff]  }
  0x27   :  { %2236 = vmatpush3.bf16.msra.mxu0 %v2392_v55  ;;  %v2446_v55 = vld [vmem:[%s3132_s1 + $0x2b0] sm:$0xff]  }
  0x28   :  { %2237 = vmatprep.subr.bf16.mxu0 %v2395_v57  ;;  %v2448_v57 = vld [vmem:[%s3132_s1 + $0x238] sm:$0xff]  }
  0x29   :  { %2258 = vmatpush3.bf16.msra.mxu1 %v2394_v58  ;;  %v299_v58 = vrot.slane %v2758_v12, %v2656_v35  ;;  %v2470_v12 = vld [vmem:[%s3134_s3 + $0xdc] ss:$52 sps:$4 sm:$0xff]  }
  0x2a   :  { %2259 = vmatprep.subr.bf16.mxu1 %v2397_v59  ;;  %v2450_v59 = vld [vmem:[%s3132_s1 + $0x2b8] sm:$0xff]  }
  0x2b   :  { %2238 = vmatpush3.bf16.msra.mxu0 %v2396_v60  ;;  %v277_v60 = vcombine.high %v2736_v5, %v2736_v5  ;;  %v2456_v5 = vld [vmem:[%s3134_s3 + $0x8] ss:$52 sps:$4 sm:$0xff]  }
  0x2c   :  { %2239 = vmatprep.subr.bf16.mxu0 %v2399_v61  ;;  %v2451_v61 = vld [vmem:[%s3132_s1 + $0x300] sm:$0xff]  }
  0x2d   :  { %2260 = vmatpush3.bf16.msra.mxu1 %v2398_v62  ;;  %v2530_v62 = vmov 0.0  }
  0x2e   :  { %2261 = vmatprep.subr.bf16.mxu1 %v2401_v63  ;;  %v314_v63 = vcombine.high %v299_v58, %v299_v58 }
  0x2f   :  { %2240 = vmatpush3.bf16.msra.mxu0 %v2400_v0  ;;  %v291_v0 = vrot.slane %v277_v60, %v2656_v35 }
  0x30   :  { %2241 = vmatprep.subr.bf16.mxu0 %v2403_v1  ;;  %v2452_v1 = vld [vmem:[%s3132_s1 + $0x308] sm:$0xff]  }
  0x31   :  { %2262 = vmatpush3.bf16.msra.mxu1 %v2402_v2  ;;  %v306_v2 = vrot.slane %v291_v0, %v2656_v35 }
  0x32   :  { %2263 = vmatprep.subr.bf16.mxu1 %v2405_v3  ;;  %v2453_v3 = vld [vmem:[%s3134_s3] ss:$52 sps:$4 sm:$0xff]  }
  0x33   :  { %2242 = vmatpush3.bf16.msra.mxu0 %v2404_v4  ;;  %v2455_v4 = vld [vmem:[%s3134_s3 + $0x4] ss:$52 sps:$4 sm:$0xff]  }
  0x34   :  { %2243 = vmatprep.subr.bf16.mxu0 %v2407_v6  ;;  %v2458_v6 = vld [vmem:[%s3134_s3 + $0xc] ss:$52 sps:$4 sm:$0xff]  }
  0x35   :  { %2264 = vmatpush3.bf16.msra.mxu1 %v2406_v7  ;;  %v2459_v7 = vld [vmem:[%s3134_s3 + $0x68] ss:$52 sps:$4 sm:$0xff]  }
  0x36   :  { %2265 = vmatprep.subr.bf16.mxu1 %v2409_v8  ;;  %v2461_v8 = vld [vmem:[%s3134_s3 + $0x6c] ss:$52 sps:$4 sm:$0xff]  }
  0x37   :  { %2244 = vmatpush3.bf16.msra.mxu0 %v2408_v9  ;;  %v2462_v9 = vld [vmem:[%s3134_s3 + $0x70] ss:$52 sps:$4 sm:$0xff]  }
  0x38   :  { %2245 = vmatprep.subr.bf16.mxu0 %v2411_v10  ;;  %v2464_v10 = vld [vmem:[%s3134_s3 + $0x74] ss:$52 sps:$4 sm:$0xff]  }
  0x39   :  { %2266 = vmatpush3.bf16.msra.mxu1 %v2410_v11  ;;  %v2467_v11 = vld [vmem:[%s3134_s3 + $0xd4] ss:$52 sps:$4 sm:$0xff]  }
  0x3a   :  { %2267 = vmatprep.subr.bf16.mxu1 %v2413_v13  ;;  %v2465_v13 = vld [vmem:[%s3134_s3 + $0xd0] ss:$52 sps:$4 sm:$0xff]  }
  0x3b   :  { %2246 = vmatpush3.bf16.msra.mxu0 %v2412_v14  ;;  %v2468_v14 = vld [vmem:[%s3134_s3 + $0xd8] ss:$52 sps:$4 sm:$0xff]  }
  0x3c   :  { %2247 = vmatprep.subr.bf16.mxu0 %v2415_v15  ;;  %v2473_v15 = vld [vmem:[%s3134_s3 + $0x13c] ss:$52 sps:$4 sm:$0xff]  }
  0x3d   :  { %2268 = vmatpush3.bf16.msra.mxu1 %v2414_v16  ;;  %v2476_v16 = vld [vmem:[%s3134_s3 + $0x144] ss:$52 sps:$4 sm:$0xff]  }
  0x3e   :  { %2269 = vmatprep.subr.bf16.mxu1 %v2417_v18  ;;  %v2474_v18 = vld [vmem:[%s3134_s3 + $0x140] ss:$52 sps:$4 sm:$0xff]  }
  0x3f   :  { %2248 = vmatpush3.bf16.msra.mxu0 %v2416_v19  ;;  %v2479_v19 = vld [vmem:[%s3134_s3 + $0x14] ss:$52 sps:$4 sm:$0xff]  }
  0x40   :  { %2277 = vmatprep.subr.bf16.mxu0 %v2419_v21  ;;  %v2482_v21 = vld [vmem:[%s3134_s3 + $0x1c] ss:$52 sps:$4 sm:$0xff]  }
  0x41   :  { %2270 = vmatpush3.bf16.msra.mxu1 %v2418_v22 }
  0x42   :  { %1033 = vmatmul.mubr.bf16.vlgmr.msra.gmra.mrb[4].mxu0 %v258_v20  ;;  %2299 = vmatprep.subr.bf16.mxu1 %v2421_v24  ;;  %v2532_v20 = vmov 0  }
  0x43   :  { %2278 = vmatpush3.bf16.msra.mxu0 %v2420_v25  ;;  %1112 = vmatprep.mubr.bf16.mxu0 %v313_v23  ;;  %v2024_v23 = vld [vmem:[%s3135_s2] ss:$0 sm:$0xff] }
  0x44   :  { %1073 = vmatmul.mubr.bf16.vlgmr.msra.gmra.mrb[4].mxu1 %v274_v26  ;;  %2279 = vmatprep.subr.bf16.mxu0 %v2423_v27 }
  0x45   :  { %2300 = vmatpush3.bf16.msra.mxu1 %v2422_v28  ;;  %1152 = vmatprep.mubr.bf16.mxu1 %v315_v29 }
  0x46   :  { %2301 = vmatprep.subr.bf16.mxu1 %v2425_v31 }
  0x47   :  { %2280 = vmatpush3.bf16.msra.mxu0 %v2424_v32 }
  0x48   :  { %2281 = vmatprep.subr.bf16.mxu0 %v2427_v33 }
  0x49   :  { %2302 = vmatpush3.bf16.msra.mxu1 %v2426_v34 }
  0x4a   :  { %2303 = vmatprep.subr.bf16.mxu1 %v2429_v36 }
  0x4b   :  { %2282 = vmatpush3.bf16.msra.mxu0 %v2428_v37 }
  0x4c   :  { %2283 = vmatprep.subr.bf16.mxu0 %v2431_v38 }
  0x4d   :  { %2304 = vmatpush3.bf16.msra.mxu1 %v2430_v39 }
  0x4e   :  { %2305 = vmatprep.subr.bf16.mxu1 %v2433_v40 }
  0x4f   :  { %2284 = vmatpush3.bf16.msra.mxu0 %v2432_v41 }
  0x50   :  { %2285 = vmatprep.subr.bf16.mxu0 %v2435_v42 }
  0x51   :  { %2306 = vmatpush3.bf16.msra.mxu1 %v2434_v43 }
  0x52   :  { %2307 = vmatprep.subr.bf16.mxu1 %v2437_v44 }
  0x53   :  { %2286 = vmatpush3.bf16.msra.mxu0 %v2436_v45 }
  0x54   :  { %2287 = vmatprep.subr.bf16.mxu0 %v2439_v46 }
  0x55   :  { %2308 = vmatpush3.bf16.msra.mxu1 %v2438_v47 }
  0x56   :  { %2309 = vmatprep.subr.bf16.mxu1 %v2441_v48 }
  0x57   :  { %2288 = vmatpush3.bf16.msra.mxu0 %v2440_v49 }
  0x58   :  { %2289 = vmatprep.subr.bf16.mxu0 %v2443_v50 }
  0x59   :  { %2310 = vmatpush3.bf16.msra.mxu1 %v2442_v51 }
  0x5a   :  { %2311 = vmatprep.subr.bf16.mxu1 %v2445_v52 }
  0x5b   :  { %2290 = vmatpush3.bf16.msra.mxu0 %v2444_v53 }
  0x5c   :  { %2291 = vmatprep.subr.bf16.mxu0 %v2447_v54 }
  0x5d   :  { %2312 = vmatpush3.bf16.msra.mxu1 %v2446_v55 }
  0x5e   :  { %2313 = vmatprep.subr.bf16.mxu1 %v2449_v56 }
  0x5f   :  { %2292 = vmatpush3.bf16.msra.mxu0 %v2448_v57 }
  0x60   :  { %2329 = vmatprep.subr.bf16.mxu0 %v2530_v62 }
  0x61   :  { %2314 = vmatpush3.bf16.msra.mxu1 %v2450_v59 }
  0x62   :  { %1113 = vmatmul.mubr.bf16.vlgmr.msra.gmra.mrb[8].mxu0 %v299_v58  ;;  %1594 = vmatprep.subr.bf16.mxu1 %v2455_v4 }
  0x63   :  { %2330 = vmatpush3.bf16.msra.mxu0 %v2451_v61  ;;  %2333 = vmatprep.mubr.msk.bf16.mxu0 %vm2531_vm0, %v2530_v62 }
  0x64   :  { %1153 = vmatmul.mubr.bf16.vlgmr.msra.gmra.mrb[8].mxu1 %v314_v63  ;;  %2331 = vmatprep.subr.bf16.mxu0 %v2530_v62 }
  0x65   :  { %1595 = vmatpush1.bf16.msra.mxu1 %v2453_v3  ;;  %1626 = vmatprep.mubr.bf16.mxu1 %v2532_v20  ;;  %v2480_v3 = vld [vmem:[%s3134_s3 + $0x18] ss:$52 sps:$4 sm:$0xff]  }
  0x66   :  { %1596 = vmatprep.subr.bf16.mxu1 %v2461_v8  ;;  %v2483_v8 = vld [vmem:[%s3134_s3 + $0x78] ss:$52 sps:$4 sm:$0xff]  }
  0x67   :  { %2332 = vmatpush3.bf16.msra.mxu0 %v2452_v1 }
  0x68   :  { %1635 = vmatprep.subr.bf16.mxu0 %v2458_v6  ;;  %v2485_v6 = vld [vmem:[%s3134_s3 + $0x7c] ss:$52 sps:$4 sm:$0xff]  }
  0x69   :  { %1597 = vmatpush1.bf16.msra.mxu1 %v2459_v7  ;;  %v2488_v7 = vld [vmem:[%s3134_s3 + $0x84] ss:$52 sps:$4 sm:$0xff]  }
  0x6a   :  { %2334 = vmatmul.mubr.msk.bf16.vlgmr.msra.gmra.mrb[12].mxu0 %vm916_vm1, %v306_v2  ;;  %1598 = vmatprep.subr.bf16.mxu1 %v2467_v11  ;;  %v2477_v2 = vld [vmem:[%s3134_s3 + $0x10] ss:$52 sps:$4 sm:$0xff]   ;;  %v2494_v11 = vld [vmem:[%s3134_s3 + $0xec] ss:$52 sps:$4 sm:$0xff]  }
  0x6b   :  { %1636 = vmatpush1.bf16.msra.mxu0 %v2456_v5  ;;  %1667 = vmatprep.mubr.bf16.mxu0 %v2532_v20 }
  0x6c   :  { %1637 = vmatprep.subr.bf16.mxu0 %v2464_v10  ;;  %v2491_v10 = vld [vmem:[%s3134_s3 + $0xe4] ss:$52 sps:$4 sm:$0xff]  }
  0x6d   :  { %1599 = vmatpush1.bf16.msra.mxu1 %v2465_v13  ;;  %v2492_v13 = vld [vmem:[%s3134_s3 + $0xe8] ss:$52 sps:$4 sm:$0xff]  }
  0x6e   :  { %1600 = vmatprep.subr.bf16.mxu1 %v2473_v15  ;;  %v2500_v15 = vld [vmem:[%s3134_s3 + $0x154] ss:$52 sps:$4 sm:$0xff]  }
  0x6f   :  { %1638 = vmatpush1.bf16.msra.mxu0 %v2462_v9  ;;  %v2486_v9 = vld [vmem:[%s3134_s3 + $0x80] ss:$52 sps:$4 sm:$0xff]  }
  0x70   :  { %1639 = vmatprep.subr.bf16.mxu0 %v2470_v12  ;;  %v2489_v12 = vld [vmem:[%s3134_s3 + $0xe0] ss:$52 sps:$4 sm:$0xff]  }
  0x71   :  { %1601 = vmatpush1.bf16.msra.mxu1 %v2471_v17  ;;  %v2498_v17 = vld [vmem:[%s3134_s3 + $0x150] ss:$52 sps:$4 sm:$0xff]  }
  0x72   :  { %1676 = vmatprep.subr.bf16.mxu1 %v2479_v19  ;;  %v2506_v19 = vld [vmem:[%s3134_s3 + $0x2c] ss:$52 sps:$4 sm:$0xff]  }
  0x73   :  { %1640 = vmatpush1.bf16.msra.mxu0 %v2468_v14  ;;  %v2497_v14 = vld [vmem:[%s3134_s3 + $0x14c] ss:$52 sps:$4 sm:$0xff]  }
  0x74   :  { %1641 = vmatprep.subr.bf16.mxu0 %v2476_v16  ;;  %v2495_v16 = vld [vmem:[%s3134_s3 + $0x148] ss:$52 sps:$4 sm:$0xff]  }
  0x77   :  { %1642 = vmatpush1.bf16.msra.mxu0 %v2474_v18  ;;  %v2503_v18 = vld [vmem:[%s3134_s3 + $0x24] ss:$52 sps:$4 sm:$0xff]  }
  0x78   :  { %1717 = vmatprep.subr.bf16.mxu0 %v2482_v21  ;;  %v2501_v21 = vld [vmem:[%s3134_s3 + $0x20] ss:$52 sps:$4 sm:$0xff]  }
  0xf5   :  { %v2205_v22 = vpop.f32.mrb[0].mxu0 }
  0xf6   :  { %v2206_v24 = vpop.f32.mrb[1].mxu0 }
  0xf7   :  { %v2207_v25 = vadd.f32 %v2206_v24, %v2205_v22  ;;  %v2208_v26 = vpop.f32.mrb[2].mxu0  ;;  %v2227_v27 = vpop.f32.mrb[0].mxu1  ;;  %v2504_v22 = vld [vmem:[%s3134_s3 + $0x28] ss:$52 sps:$4 sm:$0xff]  }
  0xf8   :  { %v2209_v28 = vpop.f32.mrb[3].mxu0  ;;  %v2228_v29 = vpop.f32.mrb[1].mxu1  ;;  %v2512_v24 = vld [vmem:[%s3134_s3 + $0x94] ss:$52 sps:$4 sm:$0xff]   ;;  %v2510_v26 = vld [vmem:[%s3134_s3 + $0x90] ss:$52 sps:$4 sm:$0xff]  }
  0xf9   :  { %v955_v31 = vadd.f32 %v2207_v25, %v2024_v23  ;;  %v2229_v32 = vadd.f32 %v2228_v29, %v2227_v27  ;;  %v2230_v33 = vpop.f32.mrb[2].mxu1  ;;  %v2509_v23 = vld [vmem:[%s3134_s3 + $0x8c] ss:$52 sps:$4 sm:$0xff]   ;;  %v2507_v25 = vld [vmem:[%s3134_s3 + $0x88] ss:$52 sps:$4 sm:$0xff]  }
  0xfa   :  { %v2231_v34 = vpop.f32.mrb[3].mxu1  ;;  %v2515_v27 = vld [vmem:[%s3134_s3 + $0xf4] ss:$52 sps:$4 sm:$0xff]   ;;  %v2518_v28 = vld [vmem:[%s3134_s3 + $0xfc] ss:$52 sps:$4 sm:$0xff]  }
  0xfb   :  { %v995_v36 = vadd.f32 %v2229_v32, %v955_v31  ;;  %v2513_v29 = vld [vmem:[%s3134_s3 + $0xf0] ss:$52 sps:$4 sm:$0xff]   ;;  %v2516_v31 = vld [vmem:[%s3134_s3 + $0xf8] ss:$52 sps:$4 sm:$0xff]   ;;  %v2522_v34 = vld [vmem:[%s3134_s3 + $0x160] ss:$52 sps:$4 sm:$0xff]  }
  0xfc   :  { %v2521_v32 = vld [vmem:[%s3134_s3 + $0x15c] ss:$52 sps:$4 sm:$0xff]   ;;  %v2519_v33 = vld [vmem:[%s3134_s3 + $0x158] ss:$52 sps:$4 sm:$0xff]  }
 0x115   :  { %v2249_v37 = vpop.f32.mrb[4].mxu0 }
 0x116   :  { %v2250_v38 = vpop.f32.mrb[5].mxu0 }
 0x117   :  { %v2251_v39 = vadd.f32 %v2250_v38, %v2249_v37  ;;  %v2252_v40 = vpop.f32.mrb[6].mxu0  ;;  %v2271_v41 = vpop.f32.mrb[4].mxu1  ;;  %v2526_v37 = vld [vmem:[%s3134_s3 + $0x98] ss:$52 sps:$4 sm:$0xff]   ;;  %v2527_v38 = vld [vmem:[%s3134_s3 + $0x100] ss:$52 sps:$4 sm:$0xff]  }
 0x118   :  { %v2253_v42 = vpop.f32.mrb[7].mxu0  ;;  %v2272_v43 = vpop.f32.mrb[5].mxu1  ;;  %v1263_v40 = vsub.s32 0, %v2641_v30 }
 0x119   :  { %v1035_v44 = vadd.f32 %v2251_v39, %v995_v36  ;;  %v2273_v45 = vadd.f32 %v2272_v43, %v2271_v41  ;;  %v2274_v46 = vpop.f32.mrb[6].mxu1  ;;  %v2525_v36 = vld [vmem:[%s3134_s3 + $0x30] ss:$52 sps:$4 sm:$0xff]   ;;  %v2528_v39 = vld [vmem:[%s3134_s3 + $0x168] ss:$52 sps:$4 sm:$0xff]   ;;  %v1271_v41 = vsub.s32 2, %v2641_v30 }
 0x11a   :  { %v2275_v47 = vpop.f32.mrb[7].mxu1  ;;  %v1257_v42 = vld [vmem:[%s3136_s4] sm:$0xff]  ;;  %v1267_v43 = vsub.s32 1, %v2641_v30 }
 0x11b   :  { %v1075_v48 = vadd.f32 %v2273_v45, %v1035_v44  ;;  %v1275_v44 = vsub.s32 3, %v2641_v30  ;;  %v1264_v45 = vrot.slane %v1257_v42, %v1263_v40 }
 0x11c   :  { %v1268_v46 = vrot.slane %v1257_v42, %v1267_v43 }
 0x11d   :  { %v1276_v47 = vrot.slane %v1257_v42, %v1275_v44 }
 0x135   :  { %v2293_v49 = vpop.f32.mrb[8].mxu0 }
 0x136   :  { %v2294_v50 = vpop.f32.mrb[9].mxu0 }
 0x137   :  { %v2295_v51 = vadd.f32 %v2294_v50, %v2293_v49  ;;  %v2315_v52 = vpop.f32.mrb[8].mxu1  ;;  %v2296_v53 = vpop.f32.mrb[10].mxu0 }
 0x138   :  { %v2316_v54 = vpop.f32.mrb[9].mxu1  ;;  %v2297_v55 = vpop.f32.mrb[11].mxu0 }
 0x139   :  { %v1115_v56 = vadd.f32 %v2295_v51, %v1075_v48  ;;  %v2317_v57 = vadd.f32 %v2316_v54, %v2315_v52  ;;  %v2318_v58 = vpop.f32.mrb[10].mxu1 }
 0x13a   :  { %v2319_v59 = vpop.f32.mrb[11].mxu1 }
 0x13b   :  { %v1155_v60 = vadd.f32 %v2317_v57, %v1115_v56 }
 0x13d   :  { %v1194_v61 = vpop.f32.mrb[12].mxu0 }
 0x13e   :  { %v1195_v63 = vadd.f32 %v1194_v61, %v1155_v60  ;;  %v2335_v0 = vpop.f32.mrb[13].mxu0 }
 0x13f   :  { %v1197_v1 = vpop.f32.mrb[14].mxu0 }
 0x140   :  { %v2963_v4 = vpack.c.bf16 %v1195_v63, %v1195_v63  ;;  %v2336_v5 = vpop.f32.mrb[15].mxu0 }
 0x141   :  { %v1279_v5 = vsub.s32 4, %v2641_v30 }
 0x142   :  { %2176 = vmatmul.mubr.msk.bf16.vlgmr.msra.gmra.mrb[12].mxu1 %vm1590_vm2, %v2963_v4  ;;  %2177 = vmatmul.mubr.msk.bf16.vlgmr.msra.gmra.mrb[16].mxu0 %vm1590_vm2, %v2963_v4 }
 0x143   :  { %1677 = vmatpush1.bf16.msra.mxu1 %v2477_v2  ;;  %1718 = vmatpush1.bf16.msra.mxu0 %v2480_v3 }
 0x144   :  { %1678 = vmatprep.subr.bf16.mxu1 %v2485_v6  ;;  %1719 = vmatprep.subr.bf16.mxu0 %v2488_v7  ;;  %v1287_v6 = vsub.s32 6, %v2641_v30 }
 0x145   :  { %1708 = vmatprep.mubr.bf16.mxu1 %v2532_v20  ;;  %1749 = vmatprep.mubr.bf16.mxu0 %v2532_v20 }
 0x147   :  { %1679 = vmatpush1.bf16.msra.mxu1 %v2483_v8  ;;  %1720 = vmatpush1.bf16.msra.mxu0 %v2486_v9  ;;  %v1283_v8 = vsub.s32 5, %v2641_v30  ;;  %v1291_v9 = vsub.s32 7, %v2641_v30 }
 0x148   :  { %1680 = vmatprep.subr.bf16.mxu1 %v2491_v10  ;;  %1721 = vmatprep.subr.bf16.mxu0 %v2494_v11  ;;  %v1280_v10 = vrot.slane %v1257_v42, %v1279_v5  ;;  %v1288_v11 = vrot.slane %v1257_v42, %v1287_v6 }
 0x14b   :  { %1681 = vmatpush1.bf16.msra.mxu1 %v2489_v12  ;;  %1722 = vmatpush1.bf16.msra.mxu0 %v2492_v13  ;;  %v1284_v12 = vrot.slane %v1257_v42, %v1283_v8  ;;  %v1292_v13 = vrot.slane %v1257_v42, %v1291_v9 }
 0x14c   :  { %1682 = vmatprep.subr.bf16.mxu1 %v2497_v14  ;;  %1723 = vmatprep.subr.bf16.mxu0 %v2500_v15 }
 0x14f   :  { %1683 = vmatpush1.bf16.msra.mxu1 %v2495_v16  ;;  %1724 = vmatpush1.bf16.msra.mxu0 %v2498_v17 }
 0x150   :  { %1758 = vmatprep.subr.bf16.mxu1 %v2503_v18  ;;  %1799 = vmatprep.subr.bf16.mxu0 %v2506_v19 }
 0x152   :  { %2178 = vmatmul.mubr.msk.bf16.vlgmr.msra.gmra.mrb[16].mxu1 %vm1590_vm2, %v2963_v4  ;;  %2179 = vmatmul.mubr.msk.bf16.vlgmr.msra.gmra.mrb[20].mxu0 %vm1590_vm2, %v2963_v4 }
 0x153   :  { %1759 = vmatpush1.bf16.msra.mxu1 %v2501_v21  ;;  %1800 = vmatpush1.bf16.msra.mxu0 %v2504_v22 }
 0x154   :  { %1760 = vmatprep.subr.bf16.mxu1 %v2509_v23  ;;  %1801 = vmatprep.subr.bf16.mxu0 %v2512_v24 }
 0x155   :  { %1790 = vmatprep.mubr.bf16.mxu1 %v2532_v20  ;;  %1831 = vmatprep.mubr.bf16.mxu0 %v2532_v20  ;;  %v2524_v20 = vld [vmem:[%s3134_s3 + $0x164] ss:$52 sps:$4 sm:$0xff]  }
 0x157   :  { %1761 = vmatpush1.bf16.msra.mxu1 %v2507_v25  ;;  %1802 = vmatpush1.bf16.msra.mxu0 %v2510_v26 }
 0x158   :  { %1762 = vmatprep.subr.bf16.mxu1 %v2515_v27  ;;  %1803 = vmatprep.subr.bf16.mxu0 %v2518_v28 }
 0x15b   :  { %1763 = vmatpush1.bf16.msra.mxu1 %v2513_v29  ;;  %1804 = vmatpush1.bf16.msra.mxu0 %v2516_v31 }
 0x15c   :  { %1764 = vmatprep.subr.bf16.mxu1 %v2521_v32  ;;  %1805 = vmatprep.subr.bf16.mxu0 %v2524_v20 }
 0x15f   :  { %1765 = vmatpush1.bf16.msra.mxu1 %v2519_v33  ;;  %1806 = vmatpush1.bf16.msra.mxu0 %v2522_v34 }
 0x160   :  { %2337 = vmatprep.subr.bf16.mxu1 %v2530_v62 }
 0x162   :  { %2180 = vmatmul.mubr.msk.bf16.vlgmr.msra.gmra.mrb[20].mxu1 %vm1590_vm2, %v2963_v4  ;;  %2181 = vmatmul.mubr.msk.bf16.vlgmr.msra.gmra.mrb[24].mxu0 %vm1590_vm2, %v2963_v4 }
 0x163   :  { %2338 = vmatpush3.bf16.msra.mxu1 %v2525_v36  ;;  %2345 = vmatprep.mubr.msk.bf16.mxu1 %vm2531_vm0, %v2530_v62 }
 0x164   :  { %2339 = vmatprep.subr.bf16.mxu1 %v2530_v62 }
 0x167   :  { %2340 = vmatpush3.bf16.msra.mxu1 %v2526_v37  ;;  %v1258_v37 = vld [vmem:[%s3136_s4 + $0x8] sm:$0x1f] }
 0x168   :  { %2341 = vmatprep.subr.bf16.mxu1 %v2530_v62 }
 0x16b   :  { %2342 = vmatpush3.bf16.msra.mxu1 %v2527_v38 }
 0x16c   :  { %2343 = vmatprep.subr.bf16.mxu1 %v2530_v62  ;;  %v1272_v62 = vrot.slane %v1257_v42, %v1271_v41  ;;  %v1296_v42 = vrot.slane %v1258_v37, %v1263_v40 }
 0x16f   :  { %2344 = vmatpush3.bf16.msra.mxu1 %v2528_v39 }
 0x172   :  { %2346 = vmatmul.mubr.msk.bf16.vlgmr.msra.gmra.mrb[24].mxu1 %vm1590_vm2, %v2963_v4 }
 0x215   :  { %v1628_v48 = vpop.f32.mrb[12].mxu1  ;;  %v1669_v49 = vpop.f32.mrb[16].mxu0 }
 0x216   :  { %v1629_v50 = vadd.f32 %v1628_v48, %v1264_v45  ;;  %v1670_v51 = vadd.f32 %v1669_v49, %v1272_v62  ;;  %v1630_v52 = vpop.f32.mrb[13].mxu1  ;;  %v1671_v53 = vpop.f32.mrb[17].mxu0  ;;  %v1304_v45 = vrot.slane %v1258_v37, %v1271_v41 }
 0x217   :  { %v1631_v54 = vadd.f32 %v1630_v52, %v1268_v46  ;;  %v1672_v55 = vadd.f32 %v1671_v53, %v1276_v47  ;;  %v1632_v56 = vpop.f32.mrb[14].mxu1  ;;  %v1673_v57 = vpop.f32.mrb[18].mxu0  ;;  %v1300_v46 = vrot.slane %v1258_v37, %v1267_v43  ;;  %v1308_v47 = vrot.slane %v1258_v37, %v1275_v44 }
 0x218   :  { %v1880_v58 = vmax.f32 %v1629_v50, 0.0  ;;  %v1882_v59 = vmax.f32 %v1670_v51, 0.0  ;;  %v1633_v60 = vpop.f32.mrb[15].mxu1  ;;  %v1674_v61 = vpop.f32.mrb[19].mxu0 }
 0x219   :  { %v1881_v63 = vmax.f32 %v1631_v54, 0.0  ;;  %v1883_v0 = vmax.f32 %v1672_v55, 0.0 }
 0x21b   :  { %v2183_v1 = vpack.c.bf16 %v1881_v63, %v1880_v58  ;;  %v2184_v2 = vpack.c.bf16 %v1883_v0, %v1882_v59 }
 0x21d   :  { %v1929_v3 = vrot.slane %v2183_v1, %v2656_v35  ;;  %v1936_v4 = vrot.slane %v2184_v2, %v2656_v35  ;;  %v1312_v1 = vrot.slane %v1258_v37, %v1279_v5 }
 0x21f   :  { %v1951_v7 = vcombine.low %v1929_v3, %v1936_v4 }
 0x221   :  { %v1959_v38 = vrot.slane %v1951_v7, %v2656_v35 }
 0x225   :  { %v1710_v14 = vpop.f32.mrb[16].mxu1  ;;  %v1751_v15 = vpop.f32.mrb[20].mxu0 }
 0x226   :  { %v1711_v16 = vadd.f32 %v1710_v14, %v1280_v10  ;;  %v1752_v17 = vadd.f32 %v1751_v15, %v1288_v11  ;;  %v1712_v18 = vpop.f32.mrb[17].mxu1  ;;  %v1753_v19 = vpop.f32.mrb[21].mxu0 }
 0x227   :  { %v1713_v21 = vadd.f32 %v1712_v18, %v1284_v12  ;;  %v1754_v22 = vadd.f32 %v1753_v19, %v1292_v13  ;;  %v1714_v23 = vpop.f32.mrb[18].mxu1  ;;  %v1755_v24 = vpop.f32.mrb[22].mxu0 }
 0x228   :  { %v1884_v25 = vmax.f32 %v1711_v16, 0.0  ;;  %v1886_v26 = vmax.f32 %v1752_v17, 0.0  ;;  %v1715_v27 = vpop.f32.mrb[19].mxu1  ;;  %v1756_v28 = vpop.f32.mrb[23].mxu0 }
 0x229   :  { %v1885_v29 = vmax.f32 %v1713_v21, 0.0  ;;  %v1887_v31 = vmax.f32 %v1754_v22, 0.0 }
 0x22b   :  { %v2185_v32 = vpack.c.bf16 %v1885_v29, %v1884_v25  ;;  %v2186_v20 = vpack.c.bf16 %v1887_v31, %v1886_v26 }
 0x22d   :  { %v1943_v33 = vrot.slane %v2185_v32, %v2656_v35  ;;  %v1950_v34 = vrot.slane %v2186_v20, %v2656_v35 }
 0x22f   :  { %v1952_v36 = vcombine.low %v1943_v33, %v1950_v34 }
 0x231   :  { %v1966_v39 = vrot.slane %v1952_v36, %v2656_v35 }
 0x233   :  { %v1967_v62 = vcombine.low %v1959_v38, %v1966_v39 }
 0x235   :  { %2009 = vst [vmem:[%s3137_s5] sm:$0xff] %v1967_v62  ;;  %v1792_v48 = vpop.f32.mrb[20].mxu1  ;;  %v1833_v49 = vpop.f32.mrb[24].mxu0 }
 0x236   :  { %v1793_v50 = vadd.f32 %v1792_v48, %v1296_v42  ;;  %v1834_v51 = vadd.f32 %v1833_v49, %v1304_v45  ;;  %v1794_v52 = vpop.f32.mrb[21].mxu1  ;;  %v1835_v40 = vpop.f32.mrb[25].mxu0 }
 0x237   :  { %v1795_v53 = vadd.f32 %v1794_v52, %v1300_v46  ;;  %v1836_v54 = vadd.f32 %v1835_v40, %v1308_v47  ;;  %v1796_v41 = vpop.f32.mrb[22].mxu1  ;;  %v1837_v55 = vpop.f32.mrb[26].mxu0 }
 0x238   :  { %v1888_v56 = vmax.f32 %v1793_v50, 0.0  ;;  %v1890_v57 = vmax.f32 %v1834_v51, 0.0  ;;  %v1797_v43 = vpop.f32.mrb[23].mxu1  ;;  %v1838_v58 = vpop.f32.mrb[27].mxu0 }
 0x239   :  { %v1889_v30 = vmax.f32 %v1795_v53, 0.0  ;;  %v1891_v44 = vmax.f32 %v1836_v54, 0.0 }
 0x23b   :  { %v2187_v59 = vpack.c.bf16 %v1889_v30, %v1888_v56  ;;  %v2188_v60 = vpack.c.bf16 %v1891_v44, %v1890_v57 }
 0x23d   :  { %v1976_v61 = vrot.slane %v2187_v59, %v2656_v35  ;;  %v1983_v63 = vrot.slane %v2188_v60, %v2656_v35 }
 0x23f   :  { %v1991_v0 = vcombine.low %v1976_v61, %v1983_v63 }
 0x241   :  { %v1998_v11 = vrot.slane %v1991_v0, %v2656_v35 }
 0x245   :  { %v1874_v2 = vpop.f32.mrb[24].mxu1 }
 0x246   :  { %v1875_v3 = vadd.f32 %v1874_v2, %v1312_v1  ;;  %v2347_v4 = vpop.f32.mrb[25].mxu1 }
 0x247   :  { %v1877_v6 = vpop.f32.mrb[26].mxu1 }
 0x248   :  { %v1892_v7 = vmax.f32 %v1875_v3, 0.0  ;;  %v2348_v8 = vpop.f32.mrb[27].mxu1 }
 0x24a   :  { %v1905_v9 = vpack.c.bf16 %v1892_v7, %v1892_v7 }
 0x24c   :  { %v1990_v10 = vrot.slane %v1905_v9, %v2656_v35 }
 0x24e   :  { %v2005_v5 = vrot.slane %v1990_v10, %v2656_v35 }
 0x250   :  { %v2006_v12 = vcombine.low %v1998_v11, %v2005_v5 }
 0x252   :  { %2019 = vst.msk [vmem:[%s3137_s5 + $0x8] sm:$0x1f] %vm2018_vm11, %v2006_v12 }

// kernel: dae_forward.9
= control target key start
LH: loop header
LB: loop body
LE: loop exit
PB: predicated region body
PF: predicated region fallthrough
CT: control target
= control target key end

     0   :  { %s1342_s12 = smov 0   ;;  %s1344_s13 = smov 0   ;;  %s1653_s0 = inlined_call_operand.vmem [shape: bf16[392,64], index: 0, kind: input, shape index: {}]   ;;  %s1654_s1 = inlined_call_operand.vmem [shape: bf16[64,4], index: 1, kind: input, shape index: {}]   ;;  %s1655_s2 = inlined_call_operand.vmem [shape: f32[1,4], index: 2, kind: input, shape index: {}]   ;;  %s1656_s3 = inlined_call_operand.vmem [shape: f32[392,4], index: 3, kind: output, shape index: {}]  }
   0x1   :  { %s1346_s14 = smov 0  }
   0x2 LB: > { %s1355_s15 = sadd.s32 4294967295, %s1286_s14   ;;  %s1357_s16 = sadd.s32 1, %s1286_s14   ;;  %s1286_s14 = sphi %s1346_s14, %s1665_s14   ;;  %s1282_s13 = sphi %s1344_s13, %s1664_s13   ;;  %s1278_s12 = sphi %s1342_s12, %s1663_s12  }
   0x3   : > { %s85_s17 = ssub.s32 %s1286_s14, %s1357_s16  ;;  %s88_s18 = sadd.s32 1, %s1282_s13 }
   0x4   : > { %p86_p0 = scmp.eq.s32.totalorder %s85_s17, 0  ;;  %p98_p1 = scmp.ne.s32.totalorder %s1282_s13, %s1278_s12 }
   0x5   : > { %p99_p2 = scmp.eq.s32.totalorder %s1355_s15, 1  ;;  %p938_p3 = scmp.ge.s32.totalorder %s1286_s14, 1 }
   0x6   : > { %s1365_s19 = scalar_select %p86_p0, %s1282_s13, %s88_s18  }
   0x7   : > { %p1367_p4 = por %p99_p2, %p98_p1  ;;  %p146_p5 = scmp.lt.s32.totalorder %s1286_s14, 3 }
   0x9   : > { %p147_p6 = pnand %p938_p3, %p146_p5 }
   0xa   : > { %v1161_v0 = vld [vmem:[%s1654_s1] sm:$0xff] (!%p147_p6)   ;;  %v1320_v1 = vmov (!%p147_p6), 0.0   ;;  %v1162_v2 = vld [vmem:[%s1654_s1 + $0x8] sm:$0xff] (!%p147_p6)   ;;  %s1380_s25 = smul.u32 (!%p147_p6), 25, %s1355_s15  ;;  %vm1321_vm0 = vmmov (!%p147_p6), 0   ;;  %v1163_v3 = vld [vmem:[%s1654_s1 + $0x10] sm:$0xff] (!%p147_p6)  }
   0xb   : > { %150 = sbr.rel (%p147_p6) target bundleno = 374 (0x176), region = 32  ;;  %1001 = vmatprep.subr.bf16.mxu0 (!%p147_p6), %v1320_v1  ;;  %1061 = vmatprep.subr.bf16.mxu1 (!%p147_p6), %v1320_v1  ;;  %v1164_v4 = vld [vmem:[%s1654_s1 + $0x18] sm:$0xff] (!%p147_p6)   ;;  %vm320_vm1 = vcmask (!%p147_p6), 523264   ;;  %v1456_v18 = vld [vmem:[%s1655_s2] ss:$0 sm:$0xff] (!%p147_p6)  ;;  %s170_s10 = sand.u32 (!%p147_p6), 1, %s1278_s12  }
   0xc   : > { %1002 = vmatpush3.bf16.msra.mxu0 (!%p147_p6), %v1161_v0  ;;  %1065 = vmatpush3.bf16.msra.mxu1 (!%p147_p6), %v1161_v0  ;;  %p178_p7 = scmp.lt.s32.totalorder (!%p147_p6), %s1380_s25, 48  ;;  %s1069_s11 = smul.u32 (!%p147_p6), 200, %s170_s10  ;;  %vm596_vm2 = vcmask (!%p147_p6), 31744  }
   0xd   : > { %1003 = vmatprep.subr.bf16.mxu0 (!%p147_p6), %v1320_v1  ;;  %1062 = vmatprep.subr.bf16.mxu1 (!%p147_p6), %v1320_v1 }
   0xe   : > { %1009 = vmatprep.mubr.msk.bf16.mxu0 (!%p147_p6), %vm1321_vm0, %v1320_v1  ;;  %1037 = vmatprep.mubr.msk.bf16.mxu1 (!%p147_p6), %vm1321_vm0, %v1320_v1  ;;  %s1470_s12 = scalar_lea.vmem (!%p147_p6), [#allocation2], %s1069_s11  }
  0x10   : > { %1004 = vmatpush3.bf16.msra.mxu0 (!%p147_p6), %v1162_v2  ;;  %1066 = vmatpush3.bf16.msra.mxu1 (!%p147_p6), %v1162_v2 }
  0x11   : > { %1005 = vmatprep.subr.bf16.mxu0 (!%p147_p6), %v1320_v1  ;;  %1063 = vmatprep.subr.bf16.mxu1 (!%p147_p6), %v1320_v1 }
  0x12   : > { %s179_s28 = scalar_select %p178_p7, %s1380_s25, 48 }
  0x13   : > { %s630_s14 = ssub.s32 (%p1367_p4), 49, %s1380_s25  ;;  %s983_s17 = smul.u32 (%p1367_p4), 200, %s1355_s15 }
  0x14   : > { %s939_s29 = sshll.u32 %s179_s28, 2  ;;  %1006 = vmatpush3.bf16.msra.mxu0 %v1163_v3  ;;  %1067 = vmatpush3.bf16.msra.mxu1 %v1163_v3  ;;  %p631_p8 = scmp.lt.s32.totalorder (%p1367_p4), %s630_s14, 25 }
  0x15   : > { %s1398_s5 = scalar_lea.vmem %s1653_s0, %s939_s29  ;;  %1007 = vmatprep.subr.bf16.mxu0 %v1320_v1  ;;  %1064 = vmatprep.subr.bf16.mxu1 %v1320_v1  ;;  %s1543_s22 = scalar_lea.vmem (%p1367_p4), %s1656_s3, %s983_s17  }
  0x16   : > { %v1165_v5 = vld [vmem:[%s1398_s5] sm:$0xff]   ;;  %v1166_v6 = vld [vmem:[%s1398_s5 + $0x38] sm:$0xff]   ;;  %v1167_v7 = vld [vmem:[%s1398_s5 + $0x8] sm:$0xff]  }
  0x17   : > { %v1168_v8 = vld [vmem:[%s1398_s5 + $0x40] sm:$0xff]   ;;  %v1169_v9 = vld [vmem:[%s1398_s5 + $0x10] sm:$0xff]   ;;  %v1170_v10 = vld [vmem:[%s1398_s5 + $0x48] sm:$0xff]  }
  0x18   : > { %1008 = vmatpush3.bf16.msra.mxu0 %v1164_v4  ;;  %1068 = vmatpush3.bf16.msra.mxu1 %v1164_v4  ;;  %v1171_v11 = vld [vmem:[%s1398_s5 + $0x18] sm:$0xff]   ;;  %v1172_v12 = vld [vmem:[%s1398_s5 + $0x50] sm:$0xff]   ;;  %v1173_v13 = vld [vmem:[%s1398_s5 + $0x20] sm:$0xff]  }
  0x19   : > { %v1174_v14 = vld [vmem:[%s1398_s5 + $0x58] sm:$0xff]   ;;  %v1175_v15 = vld [vmem:[%s1398_s5 + $0x28] sm:$0xff]   ;;  %v1176_v16 = vld [vmem:[%s1398_s5 + $0x60] ss:$0 sps:$4 sm:$0xff]  }
  0x1a   : > { %v1177_v17 = vld [vmem:[%s1398_s5 + $0x30] sm:$0xff]  }
  0x1b   : > { %1010 = vmatmul.mubr.msk.bf16.vlgmr.msra.gmra.mrb[0].mxu0 %vm320_vm1, %v1165_v5  ;;  %1038 = vmatmul.mubr.msk.bf16.vlgmr.msra.gmra.mrb[0].mxu1 %vm320_vm1, %v1166_v6 }
  0x1c   : > { %1013 = vmatprep.mubr.msk.bf16.mxu0 %vm1321_vm0, %v1320_v1  ;;  %1041 = vmatprep.mubr.msk.bf16.mxu1 %vm1321_vm0, %v1320_v1 }
  0x23   : > { %1014 = vmatmul.mubr.msk.bf16.gmra.mrb[4].mxu0 %vm320_vm1, %v1167_v7  ;;  %1042 = vmatmul.mubr.msk.bf16.gmra.mrb[4].mxu1 %vm320_vm1, %v1168_v8 }
  0x24   : > { %1017 = vmatprep.mubr.msk.bf16.mxu0 %vm1321_vm0, %v1320_v1  ;;  %1045 = vmatprep.mubr.msk.bf16.mxu1 %vm1321_vm0, %v1320_v1 }
  0x2b   : > { %1018 = vmatmul.mubr.msk.bf16.gmra.mrb[8].mxu0 %vm320_vm1, %v1169_v9  ;;  %1046 = vmatmul.mubr.msk.bf16.gmra.mrb[8].mxu1 %vm320_vm1, %v1170_v10 }
  0x2c   : > { %1021 = vmatprep.mubr.msk.bf16.mxu0 %vm1321_vm0, %v1320_v1  ;;  %1049 = vmatprep.mubr.msk.bf16.mxu1 %vm1321_vm0, %v1320_v1 }
  0x33   : > { %1022 = vmatmul.mubr.msk.bf16.gmra.mrb[12].mxu0 %vm320_vm1, %v1171_v11  ;;  %1050 = vmatmul.mubr.msk.bf16.gmra.mrb[12].mxu1 %vm320_vm1, %v1172_v12 }
  0x34   : > { %1025 = vmatprep.mubr.msk.bf16.mxu0 %vm1321_vm0, %v1320_v1  ;;  %1053 = vmatprep.mubr.msk.bf16.mxu1 %vm1321_vm0, %v1320_v1 }
  0x3b   : > { %1026 = vmatmul.mubr.msk.bf16.gmra.mrb[16].mxu0 %vm320_vm1, %v1173_v13  ;;  %1054 = vmatmul.mubr.msk.bf16.gmra.mrb[16].mxu1 %vm320_vm1, %v1174_v14 }
  0x3c   : > { %1029 = vmatprep.mubr.msk.bf16.mxu0 %vm1321_vm0, %v1320_v1  ;;  %1057 = vmatprep.mubr.msk.bf16.mxu1 %vm1321_vm0, %v1320_v1 }
  0x43   : > { %1030 = vmatmul.mubr.msk.bf16.gmra.mrb[20].mxu0 %vm320_vm1, %v1175_v15  ;;  %1058 = vmatmul.mubr.msk.bf16.gmra.mrb[20].mxu1 %vm320_vm1, %v1176_v16 }
  0x44   : > { %1033 = vmatprep.mubr.msk.bf16.mxu0 %vm1321_vm0, %v1320_v1 }
  0x4b   : > { %1034 = vmatmul.mubr.msk.bf16.gmra.mrb[24].mxu0 %vm320_vm1, %v1177_v17 }
  0xee   : > { %v394_v19 = vpop.f32.mrb[0].mxu0  ;;  %v450_v20 = vpop.f32.mrb[0].mxu1 }
  0xef   : > { %v395_v21 = vadd.f32 %v1456_v18, %v394_v19  ;;  %v1011_v22 = vpop.f32.mrb[1].mxu0  ;;  %v451_v23 = vadd.f32 %v1456_v18, %v450_v20  ;;  %v1039_v24 = vpop.f32.mrb[1].mxu1 }
  0xf0   : > { %v397_v25 = vpop.f32.mrb[2].mxu0  ;;  %v453_v26 = vpop.f32.mrb[2].mxu1 }
  0xf1   : > { %v496_v27 = vmul.f32 0.5, %v395_v21  ;;  %v398_v28 = vadd.f32 %v1456_v18, %v397_v25  ;;  %v1012_v29 = vpop.f32.mrb[3].mxu0  ;;  %v510_v30 = vmul.f32 0.5, %v451_v23  ;;  %v454_v31 = vadd.f32 %v1456_v18, %v453_v26  ;;  %v1040_v32 = vpop.f32.mrb[3].mxu1 }
  0xf3   : > { %1178 = vtanh.f32 %v496_v27  ;;  %v497_v33 = vmul.f32 0.5, %v398_v28  ;;  %v511_v34 = vmul.f32 0.5, %v454_v31 }
  0xf4   : > { %1180 = vtanh.f32 %v510_v30 }
  0xf5   : > { %1182 = vtanh.f32 %v497_v33 }
  0xf6   : > { %v402_v35 = vpop.f32.mrb[4].mxu0  ;;  %1184 = vtanh.f32 %v511_v34  ;;  %v458_v36 = vpop.f32.mrb[4].mxu1 }
  0xf7   : > { %v403_v37 = vadd.f32 %v1456_v18, %v402_v35  ;;  %v1015_v38 = vpop.f32.mrb[5].mxu0  ;;  %v459_v39 = vadd.f32 %v1456_v18, %v458_v36  ;;  %v1043_v40 = vpop.f32.mrb[5].mxu1 }
  0xf8   : > { %v405_v41 = vpop.f32.mrb[6].mxu0  ;;  %v461_v42 = vpop.f32.mrb[6].mxu1 }
  0xf9   : > { %v498_v43 = vmul.f32 0.5, %v403_v37  ;;  %v406_v44 = vadd.f32 %v1456_v18, %v405_v41  ;;  %v1016_v45 = vpop.f32.mrb[7].mxu0  ;;  %v512_v46 = vmul.f32 0.5, %v459_v39  ;;  %v462_v47 = vadd.f32 %v1456_v18, %v461_v42  ;;  %v1044_v48 = vpop.f32.mrb[7].mxu1 }
  0xfb   : > { %1186 = vtanh.f32 %v498_v43  ;;  %v499_v49 = vmul.f32 0.5, %v406_v44  ;;  %v513_v50 = vmul.f32 0.5, %v462_v47 }
  0xfc   : > { %1188 = vtanh.f32 %v512_v46 }
  0xfd   : > { %v1179_v51 = vpop.eup %1178  ;;  %1190 = vtanh.f32 %v499_v49 }
  0xfe   : > { %v1181_v52 = vpop.eup %1180  ;;  %v546_v53 = vadd.f32 1.0, %v1179_v51  ;;  %v410_v54 = vpop.f32.mrb[8].mxu0  ;;  %1192 = vtanh.f32 %v513_v50 }
  0xff   : > { %v466_v55 = vpop.f32.mrb[8].mxu1  ;;  %v1183_v56 = vpop.eup %1182  ;;  %v560_v57 = vadd.f32 1.0, %v1181_v52  ;;  %v411_v58 = vadd.f32 %v1456_v18, %v410_v54 }
 0x100   : > { %v1019_v59 = vpop.f32.mrb[9].mxu0  ;;  %v467_v60 = vadd.f32 %v1456_v18, %v466_v55  ;;  %v1047_v61 = vpop.f32.mrb[9].mxu1  ;;  %v571_v63 = vmul.f32 0.5, %v546_v53  ;;  %v547_v0 = vadd.f32 1.0, %v1183_v56 }
 0x101   : > { %v1185_v62 = vpop.eup %1184  ;;  %v413_v1 = vpop.f32.mrb[10].mxu0  ;;  %v585_v3 = vmul.f32 0.5, %v560_v57  ;;  %v500_v5 = vmul.f32 0.5, %v411_v58 }
 0x102   : > { %v469_v2 = vpop.f32.mrb[10].mxu1  ;;  %v561_v4 = vadd.f32 1.0, %v1185_v62  ;;  %v414_v6 = vadd.f32 %v1456_v18, %v413_v1  ;;  %v1020_v7 = vpop.f32.mrb[11].mxu0  ;;  %597 = vst.msk [vmem:[%s1470_s12] sm:$0xff] %vm596_vm2, %v571_v63  ;;  %v572_v9 = vmul.f32 0.5, %v547_v0  ;;  %v514_v10 = vmul.f32 0.5, %v467_v60 }
 0x103   : > { %v1048_v8 = vpop.f32.mrb[11].mxu1  ;;  %v470_v11 = vadd.f32 %v1456_v18, %v469_v2  ;;  %611 = vst.msk [vmem:[%s1470_s12 + $0x70] sm:$0xff] %vm596_vm2, %v585_v3  ;;  %1194 = vtanh.f32 %v500_v5 }
 0x104   : > { %v586_v12 = vmul.f32 0.5, %v561_v4  ;;  %v501_v13 = vmul.f32 0.5, %v414_v6  ;;  %598 = vst.msk [vmem:[%s1470_s12 + $0x8] sm:$0xff] %vm596_vm2, %v572_v9  ;;  %1196 = vtanh.f32 %v514_v10 }
 0x105   : > { %v515_v14 = vmul.f32 0.5, %v470_v11  ;;  %v1187_v15 = vpop.eup %1186 }
 0x106   : > { %612 = vst.msk [vmem:[%s1470_s12 + $0x78] sm:$0xff] %vm596_vm2, %v586_v12  ;;  %1198 = vtanh.f32 %v501_v13  ;;  %v1189_v16 = vpop.eup %1188  ;;  %v548_v17 = vadd.f32 1.0, %v1187_v15  ;;  %v418_v19 = vpop.f32.mrb[12].mxu0 }
 0x107   : > { %1200 = vtanh.f32 %v515_v14  ;;  %v474_v20 = vpop.f32.mrb[12].mxu1  ;;  %v1191_v21 = vpop.eup %1190  ;;  %v562_v22 = vadd.f32 1.0, %v1189_v16  ;;  %v419_v23 = vadd.f32 %v1456_v18, %v418_v19 }
 0x108   : > { %v1023_v24 = vpop.f32.mrb[13].mxu0  ;;  %v475_v25 = vadd.f32 %v1456_v18, %v474_v20  ;;  %v1051_v26 = vpop.f32.mrb[13].mxu1  ;;  %v573_v28 = vmul.f32 0.5, %v548_v17  ;;  %v549_v29 = vadd.f32 1.0, %v1191_v21 }
 0x109   : > { %v1193_v27 = vpop.eup %1192  ;;  %v421_v30 = vpop.f32.mrb[14].mxu0  ;;  %v587_v32 = vmul.f32 0.5, %v562_v22  ;;  %v502_v34 = vmul.f32 0.5, %v419_v23 }
 0x10a   : > { %v477_v31 = vpop.f32.mrb[14].mxu1  ;;  %v563_v33 = vadd.f32 1.0, %v1193_v27  ;;  %v422_v35 = vadd.f32 %v1456_v18, %v421_v30  ;;  %v1024_v36 = vpop.f32.mrb[15].mxu0  ;;  %599 = vst.msk [vmem:[%s1470_s12 + $0x10] sm:$0xff] %vm596_vm2, %v573_v28  ;;  %v574_v38 = vmul.f32 0.5, %v549_v29  ;;  %v516_v39 = vmul.f32 0.5, %v475_v25 }
 0x10b   : > { %v1052_v37 = vpop.f32.mrb[15].mxu1  ;;  %v478_v40 = vadd.f32 %v1456_v18, %v477_v31  ;;  %613 = vst.msk [vmem:[%s1470_s12 + $0x80] sm:$0xff] %vm596_vm2, %v587_v32  ;;  %1202 = vtanh.f32 %v502_v34 }
 0x10c   : > { %v588_v41 = vmul.f32 0.5, %v563_v33  ;;  %v503_v42 = vmul.f32 0.5, %v422_v35  ;;  %600 = vst.msk [vmem:[%s1470_s12 + $0x18] sm:$0xff] %vm596_vm2, %v574_v38  ;;  %1204 = vtanh.f32 %v516_v39 }
 0x10d   : > { %v517_v43 = vmul.f32 0.5, %v478_v40  ;;  %v1195_v44 = vpop.eup %1194 }
 0x10e   : > { %614 = vst.msk [vmem:[%s1470_s12 + $0x88] sm:$0xff] %vm596_vm2, %v588_v41  ;;  %1206 = vtanh.f32 %v503_v42  ;;  %v1197_v45 = vpop.eup %1196  ;;  %v550_v46 = vadd.f32 1.0, %v1195_v44  ;;  %v426_v47 = vpop.f32.mrb[16].mxu0 }
 0x10f   : > { %1208 = vtanh.f32 %v517_v43  ;;  %v482_v48 = vpop.f32.mrb[16].mxu1  ;;  %v564_v50 = vadd.f32 1.0, %v1197_v45  ;;  %v427_v51 = vadd.f32 %v1456_v18, %v426_v47  ;;  %v1027_v52 = vpop.f32.mrb[17].mxu0 }
 0x110   : > { %v1199_v49 = vpop.eup %1198  ;;  %v483_v53 = vadd.f32 %v1456_v18, %v482_v48  ;;  %v1055_v54 = vpop.f32.mrb[17].mxu1  ;;  %v575_v56 = vmul.f32 0.5, %v550_v46 }
 0x111   : > { %v1201_v55 = vpop.eup %1200  ;;  %v551_v57 = vadd.f32 1.0, %v1199_v49  ;;  %v429_v58 = vpop.f32.mrb[18].mxu0  ;;  %v589_v60 = vmul.f32 0.5, %v564_v50  ;;  %v504_v62 = vmul.f32 0.5, %v427_v51 }
 0x112   : > { %v485_v59 = vpop.f32.mrb[18].mxu1  ;;  %v565_v61 = vadd.f32 1.0, %v1201_v55  ;;  %v430_v63 = vadd.f32 %v1456_v18, %v429_v58  ;;  %v1028_v0 = vpop.f32.mrb[19].mxu0  ;;  %601 = vst.msk [vmem:[%s1470_s12 + $0x20] sm:$0xff] %vm596_vm2, %v575_v56  ;;  %v518_v3 = vmul.f32 0.5, %v483_v53 }
 0x113   : > { %v1056_v1 = vpop.f32.mrb[19].mxu1  ;;  %v576_v2 = vmul.f32 0.5, %v551_v57  ;;  %v486_v4 = vadd.f32 %v1456_v18, %v485_v59  ;;  %615 = vst.msk [vmem:[%s1470_s12 + $0x90] sm:$0xff] %vm596_vm2, %v589_v60  ;;  %1210 = vtanh.f32 %v504_v62 }
 0x114   : > { %v590_v5 = vmul.f32 0.5, %v565_v61  ;;  %v505_v6 = vmul.f32 0.5, %v430_v63  ;;  %1212 = vtanh.f32 %v518_v3 }
 0x115   : > { %602 = vst.msk [vmem:[%s1470_s12 + $0x28] sm:$0xff] %vm596_vm2, %v576_v2  ;;  %v519_v7 = vmul.f32 0.5, %v486_v4  ;;  %v1203_v8 = vpop.eup %1202 }
 0x116   : > { %616 = vst.msk [vmem:[%s1470_s12 + $0x98] sm:$0xff] %vm596_vm2, %v590_v5  ;;  %1214 = vtanh.f32 %v505_v6  ;;  %v1205_v9 = vpop.eup %1204  ;;  %v552_v10 = vadd.f32 1.0, %v1203_v8  ;;  %v434_v11 = vpop.f32.mrb[20].mxu0 }
 0x117   : > { %1216 = vtanh.f32 %v519_v7  ;;  %v490_v12 = vpop.f32.mrb[20].mxu1  ;;  %v566_v14 = vadd.f32 1.0, %v1205_v9  ;;  %v435_v15 = vadd.f32 %v1456_v18, %v434_v11  ;;  %v1031_v16 = vpop.f32.mrb[21].mxu0 }
 0x118   : > { %v1207_v13 = vpop.eup %1206  ;;  %v491_v17 = vadd.f32 %v1456_v18, %v490_v12  ;;  %v1059_v19 = vpop.f32.mrb[21].mxu1  ;;  %v577_v21 = vmul.f32 0.5, %v552_v10 }
 0x119   : > { %v1209_v20 = vpop.eup %1208  ;;  %v553_v22 = vadd.f32 1.0, %v1207_v13  ;;  %v437_v23 = vpop.f32.mrb[22].mxu0  ;;  %v591_v25 = vmul.f32 0.5, %v566_v14  ;;  %v506_v27 = vmul.f32 0.5, %v435_v15 }
 0x11a   : > { %v493_v24 = vpop.f32.mrb[22].mxu1  ;;  %v567_v26 = vadd.f32 1.0, %v1209_v20  ;;  %v438_v28 = vadd.f32 %v1456_v18, %v437_v23  ;;  %v1032_v29 = vpop.f32.mrb[23].mxu0  ;;  %603 = vst.msk [vmem:[%s1470_s12 + $0x30] sm:$0xff] %vm596_vm2, %v577_v21  ;;  %v520_v32 = vmul.f32 0.5, %v491_v17 }
 0x11b   : > { %v1060_v30 = vpop.f32.mrb[23].mxu1  ;;  %v578_v31 = vmul.f32 0.5, %v553_v22  ;;  %617 = vst.msk [vmem:[%s1470_s12 + $0xa0] sm:$0xff] %vm596_vm2, %v591_v25  ;;  %1218 = vtanh.f32 %v506_v27 }
 0x11c   : > { %v592_v33 = vmul.f32 0.5, %v567_v26  ;;  %v507_v34 = vmul.f32 0.5, %v438_v28  ;;  %1220 = vtanh.f32 %v520_v32 }
 0x11d   : > { %604 = vst.msk [vmem:[%s1470_s12 + $0x38] sm:$0xff] %vm596_vm2, %v578_v31  ;;  %v1211_v35 = vpop.eup %1210 }
 0x11e   : > { %618 = vst.msk [vmem:[%s1470_s12 + $0xa8] sm:$0xff] %vm596_vm2, %v592_v33  ;;  %1222 = vtanh.f32 %v507_v34  ;;  %v1213_v36 = vpop.eup %1212  ;;  %v554_v37 = vadd.f32 1.0, %v1211_v35  ;;  %v442_v38 = vpop.f32.mrb[24].mxu0 }
 0x11f   : > { %v568_v40 = vadd.f32 1.0, %v1213_v36  ;;  %v443_v41 = vadd.f32 %v1456_v18, %v442_v38  ;;  %v1035_v42 = vpop.f32.mrb[25].mxu0 }
 0x120   : > { %v1215_v39 = vpop.eup %1214  ;;  %v579_v44 = vmul.f32 0.5, %v554_v37  ;;  %v445_v46 = vpop.f32.mrb[26].mxu0 }
 0x121   : > { %v1217_v43 = vpop.eup %1216  ;;  %v555_v45 = vadd.f32 1.0, %v1215_v39  ;;  %v593_v47 = vmul.f32 0.5, %v568_v40  ;;  %v508_v49 = vmul.f32 0.5, %v443_v41  ;;  %v446_v50 = vadd.f32 %v1456_v18, %v445_v46  ;;  %v1036_v51 = vpop.f32.mrb[27].mxu0 }
 0x122   : > { %v569_v48 = vadd.f32 1.0, %v1217_v43  ;;  %605 = vst.msk [vmem:[%s1470_s12 + $0x40] sm:$0xff] %vm596_vm2, %v579_v44 }
 0x123   : > { %v580_v52 = vmul.f32 0.5, %v555_v45  ;;  %619 = vst.msk [vmem:[%s1470_s12 + $0xb0] sm:$0xff] %vm596_vm2, %v593_v47  ;;  %1224 = vtanh.f32 %v508_v49  ;;  %v509_v54 = vmul.f32 0.5, %v446_v50 }
 0x124   : > { %v594_v53 = vmul.f32 0.5, %v569_v48 }
 0x125   : > { %606 = vst.msk [vmem:[%s1470_s12 + $0x48] sm:$0xff] %vm596_vm2, %v580_v52  ;;  %v1219_v55 = vpop.eup %1218  ;;  %1226 = vtanh.f32 %v509_v54 }
 0x126   : > { %620 = vst.msk [vmem:[%s1470_s12 + $0xb8] sm:$0xff] %vm596_vm2, %v594_v53  ;;  %v1221_v56 = vpop.eup %1220  ;;  %v556_v18 = vadd.f32 1.0, %v1219_v55 }
 0x127   : > { %v570_v58 = vadd.f32 1.0, %v1221_v56 }
 0x128   : > { %v1223_v57 = vpop.eup %1222  ;;  %v581_v59 = vmul.f32 0.5, %v556_v18 }
 0x129   : > { %v557_v60 = vadd.f32 1.0, %v1223_v57  ;;  %v595_v61 = vmul.f32 0.5, %v570_v58 }
 0x12a   : > { %607 = vst.msk [vmem:[%s1470_s12 + $0x50] sm:$0xff] %vm596_vm2, %v581_v59 }
 0x12b   : > { %v582_v62 = vmul.f32 0.5, %v557_v60  ;;  %621 = vst.msk [vmem:[%s1470_s12 + $0xc0] sm:$0xff] %vm596_vm2, %v595_v61 }
 0x12d   : > { %608 = vst.msk [vmem:[%s1470_s12 + $0x58] sm:$0xff] %vm596_vm2, %v582_v62  ;;  %v1225_v63 = vpop.eup %1224 }
 0x12e   : > { %v558_v0 = vadd.f32 1.0, %v1225_v63  ;;  %628 = sbr.rel (!%p1367_p4) target bundleno = 374 (0x176), region = 36 }
 0x12f   : > { %v1227_v1 = vpop.eup %1226 }
 0x130   : > { %v583_v2 = vmul.f32 0.5, %v558_v0  ;;  %v559_v3 = vadd.f32 1.0, %v1227_v1 }
 0x132   : > { %609 = vst.msk [vmem:[%s1470_s12 + $0x60] sm:$0xff] %vm596_vm2, %v583_v2  ;;  %v584_v4 = vmul.f32 0.5, %v559_v3 }
 0x134   : > { %610 = vst.msk [vmem:[%s1470_s12 + $0x68] sm:$0xff] %vm596_vm2, %v584_v4 }
 0x135   : > { %s1667_s14 = smov (!%p631_p8, %s630_s14), 25 }
 0x136   : > { %s971_s23 = sshll.u32 %s1667_s14, 7 }
 0x137   : > { %p974_p9 = scmp.eq.s32.totalorder %s971_s23, 0 }
 0x138   : > { %1228 = sdivrem.u32 (!%p974_p9), %s1667_s14, 25 }
 0x139   : > { %639 = sbr.rel (%p974_p9) target bundleno = 374 (0x176), region = 40 }
 0x141   : > { %s1549_s20 = spop.drf %1228 }
 0x142   : > { %p975_p10 = scmp.le.s32.totalorder %s1549_s20, 0 }
 0x143   : > { %s1658_s15 = smov (!%p975_p10), %s1543_s22  ;;  %s1659_s24 = smov (!%p975_p10), %s1470_s12 }
 0x144   : > { %891 = sbr.rel (%p975_p10) target bundleno = 345 (0x159), region = 116  ;;  %s1558_s25 = smov (!%p975_p10), 0  }
 0x145   : > { %s1560_s26 = smov (!%p975_p10), 0  }
 0x14b LB: >> { %v751_v5 = vld [vmem:[%s1294_s24] sm:$0xff]  ;;  %v753_v6 = vld [vmem:[%s1294_s24 + $0x8] sm:$0xff]  ;;  %v755_v7 = vld [vmem:[%s1294_s24 + $0x10] sm:$0xff]  ;;  %s801_s27 = sadd.s32 1, %s1298_s25  ;;  %s745_s26 = sadd.s32 1, %s1302_s26   ;;  %s1302_s26 = sphi %s1560_s26, %s745_s26   ;;  %s1298_s25 = sphi %s1558_s25, %s1662_s25   ;;  %s1294_s24 = sphi %s1659_s24, %s1661_s24   ;;  %s1290_s15 = sphi %s1658_s15, %s1660_s15  }
 0x14c   : >> { %752 = vst [vmem:[%s1290_s15] sm:$0xff] %v751_v5  ;;  %754 = vst [vmem:[%s1290_s15 + $0x8] sm:$0xff] %v753_v6  ;;  %v757_v8 = vld [vmem:[%s1294_s24 + $0x18] sm:$0xff]  ;;  %v759_v9 = vld [vmem:[%s1294_s24 + $0x20] sm:$0xff]  ;;  %p802_p11 = scmp.ge.s32.totalorder %s801_s27, %s1549_s20  ;;  %p744_p12 = scmp.ge.s32.totalorder %s745_s26, %s1549_s20 }
 0x14d   : >> { %756 = vst [vmem:[%s1290_s15 + $0x10] sm:$0xff] %v755_v7  ;;  %v761_v10 = vld [vmem:[%s1294_s24 + $0x28] sm:$0xff]  ;;  %758 = vst [vmem:[%s1290_s15 + $0x18] sm:$0xff] %v757_v8  ;;  %v763_v11 = vld [vmem:[%s1294_s24 + $0x30] sm:$0xff] }
 0x14e   : >> { %760 = vst [vmem:[%s1290_s15 + $0x20] sm:$0xff] %v759_v9  ;;  %762 = vst [vmem:[%s1290_s15 + $0x28] sm:$0xff] %v761_v10  ;;  %v765_v12 = vld [vmem:[%s1294_s24 + $0x38] sm:$0xff]  ;;  %v767_v13 = vld [vmem:[%s1294_s24 + $0x40] sm:$0xff]  ;;  %s1669_s27 = smov (%p802_p11, %s801_s27), 0 }
 0x14f   : >> { %764 = vst [vmem:[%s1290_s15 + $0x30] sm:$0xff] %v763_v11  ;;  %766 = vst [vmem:[%s1290_s15 + $0x38] sm:$0xff] %v765_v12  ;;  %v769_v14 = vld [vmem:[%s1294_s24 + $0x48] sm:$0xff]  ;;  %v771_v15 = vld [vmem:[%s1294_s24 + $0x50] sm:$0xff]  ;;  %s804_s28 = smul.u32 200, %s1669_s27  ;;  %s1662_s25 = smov %s1669_s27 }
 0x150   : >> { %768 = vst [vmem:[%s1290_s15 + $0x40] sm:$0xff] %v767_v13  ;;  %v773_v16 = vld [vmem:[%s1294_s24 + $0x58] sm:$0xff]  ;;  %770 = vst [vmem:[%s1290_s15 + $0x48] sm:$0xff] %v769_v14  ;;  %v775_v17 = vld [vmem:[%s1294_s24 + $0x60] sm:$0xff] }
 0x151   : >> { %772 = vst [vmem:[%s1290_s15 + $0x50] sm:$0xff] %v771_v15  ;;  %774 = vst [vmem:[%s1290_s15 + $0x58] sm:$0xff] %v773_v16  ;;  %v777_v19 = vld [vmem:[%s1294_s24 + $0x68] sm:$0xff]  ;;  %v779_v20 = vld [vmem:[%s1294_s24 + $0x70] sm:$0xff]  ;;  %s806_s29 = scalar_lea.vmem %s1470_s12, %s804_s28 [#allocation2]   ;;  %s807_s30 = scalar_lea.vmem %s1543_s22, %s804_s28  }
 0x152   : >> { %776 = vst [vmem:[%s1290_s15 + $0x60] sm:$0xff] %v775_v17  ;;  %778 = vst [vmem:[%s1290_s15 + $0x68] sm:$0xff] %v777_v19  ;;  %v781_v21 = vld [vmem:[%s1294_s24 + $0x78] sm:$0xff]  ;;  %v783_v22 = vld [vmem:[%s1294_s24 + $0x80] sm:$0xff]  ;;  %747 = sbr.rel (!%p744_p12) target bundleno = 331 (0x14b), region = 122 }
 0x153   : >> { %780 = vst [vmem:[%s1290_s15 + $0x70] sm:$0xff] %v779_v20  ;;  %v785_v23 = vld [vmem:[%s1294_s24 + $0x88] sm:$0xff]  ;;  %782 = vst [vmem:[%s1290_s15 + $0x78] sm:$0xff] %v781_v21  ;;  %v787_v24 = vld [vmem:[%s1294_s24 + $0x90] sm:$0xff] }
 0x154   : >> { %784 = vst [vmem:[%s1290_s15 + $0x80] sm:$0xff] %v783_v22  ;;  %786 = vst [vmem:[%s1290_s15 + $0x88] sm:$0xff] %v785_v23  ;;  %v789_v25 = vld [vmem:[%s1294_s24 + $0x98] sm:$0xff]  ;;  %v791_v26 = vld [vmem:[%s1294_s24 + $0xa0] sm:$0xff] }
 0x155   : >> { %788 = vst [vmem:[%s1290_s15 + $0x90] sm:$0xff] %v787_v24  ;;  %790 = vst [vmem:[%s1290_s15 + $0x98] sm:$0xff] %v789_v25  ;;  %v793_v27 = vld [vmem:[%s1294_s24 + $0xa8] sm:$0xff]  ;;  %v795_v28 = vld [vmem:[%s1294_s24 + $0xb0] sm:$0xff] }
 0x156   : >> { %792 = vst [vmem:[%s1290_s15 + $0xa0] sm:$0xff] %v791_v26  ;;  %v797_v29 = vld [vmem:[%s1294_s24 + $0xb8] sm:$0xff]  ;;  %794 = vst [vmem:[%s1290_s15 + $0xa8] sm:$0xff] %v793_v27  ;;  %v799_v30 = vld [vmem:[%s1294_s24 + $0xc0] sm:$0xff]  ;;  %s1661_s24 = smov %s806_s29 }
 0x157   : >> { %796 = vst [vmem:[%s1290_s15 + $0xb0] sm:$0xff] %v795_v28  ;;  %798 = vst [vmem:[%s1290_s15 + $0xb8] sm:$0xff] %v797_v29 }
 0x158   : >> { %800 = vst [vmem:[%s1290_s15 + $0xc0] sm:$0xff] %v799_v30  ;;  %s1660_s15 = smov %s807_s30 }
 0x159 PF: > { %1230 = sdivrem.u32 %s1667_s14, 25 }
 0x15a   : > { %s976_s4 = smul.u32 200, %s1549_s20 }
 0x15c   : > { %s812_s5 = scalar_lea.vmem %s1470_s12, %s976_s4 [#allocation2]   ;;  %s814_s6 = scalar_lea.vmem %s1543_s22, %s976_s4  }
 0x162   : > { %s1231_s7 = spop.drf %1230 }
 0x163   : > { %p978_p13 = scmp.le.s32.totalorder %s1231_s7, 0 }
 0x164   : > { %s1304_s8 = smov (!%p978_p13), %s814_s6   ;;  %s1308_s9 = smov (!%p978_p13), %s812_s5  }
 0x165   : > { %905 = sbr.rel (%p978_p13) target bundleno = 374 (0x176), region = 127  ;;  %s1312_s10 = smov (!%p978_p13), 0  }
 0x166   : > { %s1316_s11 = smov (!%p978_p13), 0  }
 0x16c LB: >> { %v824_v31 = vld [vmem:[%s1310_s9] sm:$0xff]  ;;  %s826_s17 = sadd.s32 1, %s1314_s10  ;;  %s818_s11 = sadd.s32 1, %s1318_s11   ;;  %s1318_s11 = sphi %s1316_s11, %s818_s11   ;;  %s1314_s10 = sphi %s1312_s10, %s1313_s10   ;;  %s1310_s9 = sphi %s1308_s9, %s831_s9   ;;  %s1306_s8 = sphi %s1304_s8, %s832_s8  }
 0x16d   : >> { %825 = vst [vmem:[%s1306_s8] sm:$0xff] %v824_v31  ;;  %p827_p0 = scmp.ge.s32.totalorder %s826_s17, %s1231_s7  ;;  %p817_p1 = scmp.ge.s32.totalorder %s818_s11, %s1231_s7 }
 0x16f   : >> { %s1671_s17 = smov (%p827_p0, %s826_s17), 0  ;;  %820 = sbr.rel (!%p817_p1) target bundleno = 364 (0x16c), region = 133 }
 0x170   : >> { %s979_s12 = sshll.u32 %s1671_s17, 3  ;;  %s1313_s10 = smov %s1671_s17  }
 0x171   : >> { %s831_s9 = scalar_lea.vmem %s812_s5, %s979_s12 [#allocation2]   ;;  %s832_s8 = scalar_lea.vmem %s814_s6, %s979_s12  }
 0x176 PF: > { %p10_p2 = scmp.ge.s32.totalorder %s1357_s16, 4   ;;  %s1663_s12 = smov %s1282_s13 }
 0x177   : > { %s1664_s13 = smov %s1365_s19  ;;  %s1665_s14 = smov %s1357_s16 }
 0x178   :  { %12 = sbr.rel (!%p10_p2) target bundleno = 2 (0x2), region = 144 }

</bundles_post_ra>
